<compile_context>
chip_gen: v7x
topology: tpu7x:2x2x1
jax: 0.10.0
libtpu: 0.0.40
codegen_flags: <defaults>
</compile_context>

<pallas_src>
import functools

import jax
import jax.numpy as jnp
from jax.experimental import pallas as pl
from jax.experimental.pallas import tpu as pltpu

EPS = 1e-5
_VMEM_LIMIT_CACHE = [None]


def _vmem_limit_bytes():
    """Generation-aware scoped-VMEM limit: ~75% of physical, capped at 100 MiB."""
    if _VMEM_LIMIT_CACHE[0] is None:
        cap = 64 * 1024 * 1024                       # safe default (v7x physical)
        try:
            cap = int(getattr(pltpu.get_tpu_info(), "vmem_capacity_bytes", cap))
        except Exception:
            pass
        _VMEM_LIMIT_CACHE[0] = min(cap * 3 // 4, 100 * 1024 * 1024)
    return _VMEM_LIMIT_CACHE[0]


def _cparams(semantics):
    return pltpu.CompilerParams(dimension_semantics=semantics,
                                vmem_limit_bytes=_vmem_limit_bytes())


def _write_partial_stats(y, sum_ref, ssq_ref):
    """Per-tile partial BN statistics (reduced across tiles in the wrapper).

    Emitting independent per-tile partials (instead of a resident accumulator
    on an 'arbitrary' grid axis) keeps the grid axis 'parallel' so v7x can
    shard it across both TensorCores.  `y` must be the f32 matmul result.
    """
    sum_ref[...] = jnp.sum(y, axis=0).reshape(1, 1, -1)
    ssq_ref[...] = jnp.sum(y * y, axis=0).reshape(1, 1, -1)


# ---------------------------------------------------------------------------
# Stage kernels
# ---------------------------------------------------------------------------
def _conv1x1_stats_kernel(x_ref, w_ref, y_ref, sum_ref, ssq_ref, *, mm_dtype):
    """y = x @ w (1x1 conv over a (rows, Cin) slab); emit partial BN stats."""
    y = jnp.dot(x_ref[...].astype(mm_dtype), w_ref[...],
                preferred_element_type=jnp.float32)
    y_ref[...] = y.astype(y_ref.dtype)
    _write_partial_stats(y, sum_ref, ssq_ref)


def _bn_relu_conv1x1_stats_kernel(y_in_ref, scale_ref, shift_ref, w_ref,
                                  y_ref, sum_ref, ssq_ref, *, mm_dtype):
    """y = relu(bn(y_in)) @ w; emit partial BN stats of y.  Elementwise in f32."""
    a = jnp.maximum(
        y_in_ref[...].astype(jnp.float32) * scale_ref[...] + shift_ref[...], 0.0)
    y = jnp.dot(a.astype(mm_dtype), w_ref[...],
                preferred_element_type=jnp.float32)
    y_ref[...] = y.astype(y_ref.dtype)
    _write_partial_stats(y, sum_ref, ssq_ref)


def _bn_relu_conv_kxk_stats_kernel(y_in_ref, scale_ref, shift_ref, w_ref,
                                   y_ref, sum_ref, ssq_ref, pad_ref,
                                   *, h, w, f1, f2, k):
    """Per image: a = relu(bn(y_in)); y = conv_kxk(a) via kj-grouped im2col.

    Only k sublane-unaligned (W-axis) slices are taken (one per w-shift); the
    k row shifts are cheap leading-dim offsets.  Each dot has contraction
    depth k*f1 and accumulates into an f32 register tile.
    """
    p = k // 2

    # Zero only the halo strips; done every step so the kernel stays correct
    # when the (parallel) image axis is sharded across TensorCores (each core
    # owns its own scratch buffer).  The halo is tiny relative to the conv.
    pad_ref[0:p, :, :] = jnp.zeros((p, w + 2 * p, f1), pad_ref.dtype)
    pad_ref[p + h:h + 2 * p, :, :] = jnp.zeros((p, w + 2 * p, f1), pad_ref.dtype)
    pad_ref[:, 0:p, :] = jnp.zeros((h + 2 * p, p, f1), pad_ref.dtype)
    pad_ref[:, p + w:w + 2 * p, :] = jnp.zeros((h + 2 * p, p, f1), pad_ref.dtype)

    a = jnp.maximum(
        y_in_ref[0].astype(jnp.float32) * scale_ref[...] + shift_ref[...], 0.0)
    pad_ref[p:p + h, p:p + w, :] = a.astype(pad_ref.dtype)      # interior only

    acc = jnp.zeros((h * w, f2), jnp.float32)
    for kj in range(k):                                   # static Python loop
        col = pad_ref[:, kj:kj + w, :]                    # ONE unaligned slice
        slab = jnp.concatenate(
            [col[ki:ki + h].reshape(h * w, f1) for ki in range(k)], axis=-1)
        acc = acc + jnp.dot(slab, w_ref[kj],
                            preferred_element_type=jnp.float32)
    y_ref[0] = acc.reshape(h, w, f2).astype(y_ref.dtype)
    _write_partial_stats(acc, sum_ref, ssq_ref)


def _bn_add_relu_kernel(y_ref, scale_ref, shift_ref, x_ref, o_ref):
    o_ref[...] = jnp.maximum(
        y_ref[...].astype(jnp.float32) * scale_ref[...] + shift_ref[...]
        + x_ref[...], 0.0)


# ---------------------------------------------------------------------------
# Wrapper helpers
# ---------------------------------------------------------------------------
def _bn_scale_shift(s_part, q_part, count, gamma, beta):
    """Reduce per-tile partial stats and fold into per-channel (scale, shift)."""
    s = jnp.sum(s_part, axis=0)                       # (1, f)
    q = jnp.sum(q_part, axis=0)                       # (1, f)
    mean = s / count
    var = jnp.maximum(q / count - mean * mean, 0.0)   # clamp: avoid negative var
    scale = gamma * jax.lax.rsqrt(var + EPS)
    return scale, beta - mean * scale


def _pick_row_tile(m, target):
    """Row tile for the (rows, channels) stages.

    Largest multiple-of-8 divisor of m that is <= target; if none exists, the
    SMALLEST multiple-of-8 divisor above target (never silently the whole
    activation), so a pathological m cannot produce one giant VMEM-busting
    tile.  Only if m has no multiple-of-8 divisor at all (tiny / odd shapes)
    is the whole array used as a single tile.
    """
    if m <= target:
        return m
    divisors = [d for d in range(8, m + 1, 8) if m % d == 0]
    below = [d for d in divisors if d <= target]
    if below:
        return max(below)
    if divisors:
        return min(divisors)
    return m


@functools.partial(jax.jit, static_argnums=(2,),
                   static_argnames=("tile_rows", "matmul_dtype", "act_dtype"))
def id_block(x_nchw, params, k, *, tile_rows=None,
             matmul_dtype=jnp.bfloat16, act_dtype=None):
    assert k % 2 == 1, "IdBlock requires odd kernel_size (padding = k // 2)"
    if act_dtype is None:
        act_dtype = matmul_dtype
    n, c, h, w = x_nchw.shape
    f1 = params["w1"].shape[1]
    f2 = params["w2"].shape[3]
    f3 = params["w3"].shape[1]
    assert f3 == c, "identity block requires f3 == in_channels"
    p = k // 2
    m = n * h * w
    if tile_rows is None:
        # Bigger row tiles on 128-MiB-VMEM chips (v5e/v6e), tighter on v7x.
        tile_rows = 2048 if _vmem_limit_bytes() >= 80 * 1024 * 1024 else 1024
    tm = _pick_row_tile(m, tile_rows)
    gm = m // tm

    x_nhwc = jnp.transpose(x_nchw, (0, 2, 3, 1)).astype(jnp.float32)
    x2d = x_nhwc.reshape(m, c)   # f32 shortcut; also donated to the final output

    # Weights pre-cast once to the matmul dtype; f32 accumulation via
    # preferred_element_type.  kxk weights are regrouped per w-shift:
    # (kh, kw, f1, f2) -> (kw, kh*f1, f2) to match the kj-grouped im2col.
    w1 = params["w1"].astype(matmul_dtype)                               # (C, f1)
    w2 = jnp.transpose(params["w2"], (1, 0, 2, 3)).reshape(
        k, k * f1, f2).astype(matmul_dtype)                              # (k, k*f1, f2)
    w3 = params["w3"].astype(matmul_dtype)                               # (f2, f3)

    row_spec_c = pl.BlockSpec((tm, c), lambda i: (i, 0))
    row_spec_f1 = pl.BlockSpec((tm, f1), lambda i: (i, 0))
    row_spec_f2 = pl.BlockSpec((tm, f2), lambda i: (i, 0))
    row_spec_f3 = pl.BlockSpec((tm, f3), lambda i: (i, 0))

    def chan_spec(f):
        return pl.BlockSpec((1, f), lambda i: (0, 0))

    def stats_spec(f):
        return pl.BlockSpec((1, 1, f), lambda i: (i, 0, 0))

    def stats_out(g, f):
        return (jax.ShapeDtypeStruct((g, 1, f), jnp.float32),
                jax.ShapeDtypeStruct((g, 1, f), jnp.float32))

    # ---- stage 1: conv1 (1x1) + BN1 partial stats ---------------------------
    y1, s1, q1 = pl.pallas_call(
        functools.partial(_conv1x1_stats_kernel, mm_dtype=matmul_dtype),
        grid=(gm,),
        out_shape=(jax.ShapeDtypeStruct((m, f1), act_dtype),) + stats_out(gm, f1),
        in_specs=[row_spec_c,
                  pl.BlockSpec((c, f1), lambda i: (0, 0))],
        out_specs=(row_spec_f1, stats_spec(f1), stats_spec(f1)),
        compiler_params=_cparams(("parallel",)),
    )(x2d, w1)
    scale1, shift1 = _bn_scale_shift(s1, q1, m, params["g1"], params["be1"])

    # ---- stage 2: bn1 + relu + conv2 (kxk, kj-grouped im2col) + BN2 stats ---
    y2, s2, q2 = pl.pallas_call(
        functools.partial(_bn_relu_conv_kxk_stats_kernel,
                          h=h, w=w, f1=f1, f2=f2, k=k),
        grid=(n,),
        out_shape=(jax.ShapeDtypeStruct((n, h, w, f2), act_dtype),)
        + stats_out(n, f2),
        in_specs=[pl.BlockSpec((1, h, w, f1), lambda i: (i, 0, 0, 0)),
                  chan_spec(f1), chan_spec(f1),
                  pl.BlockSpec((k, k * f1, f2), lambda i: (0, 0, 0))],
        out_specs=(pl.BlockSpec((1, h, w, f2), lambda i: (i, 0, 0, 0)),
                   stats_spec(f2), stats_spec(f2)),
        scratch_shapes=[pltpu.VMEM((h + 2 * p, w + 2 * p, f1), matmul_dtype)],
        compiler_params=_cparams(("parallel",)),
    )(y1.reshape(n, h, w, f1), scale1, shift1, w2)
    scale2, shift2 = _bn_scale_shift(s2, q2, m, params["g2"], params["be2"])

    # ---- stage 3: bn2 + relu + conv3 (1x1) + BN3 partial stats --------------
    y3, s3, q3 = pl.pallas_call(
        functools.partial(_bn_relu_conv1x1_stats_kernel, mm_dtype=matmul_dtype),
        grid=(gm,),
        out_shape=(jax.ShapeDtypeStruct((m, f3), act_dtype),) + stats_out(gm, f3),
        in_specs=[row_spec_f2, chan_spec(f2), chan_spec(f2),
                  pl.BlockSpec((f2, f3), lambda i: (0, 0))],
        out_specs=(row_spec_f3, stats_spec(f3), stats_spec(f3)),
        compiler_params=_cparams(("parallel",)),
    )(y2.reshape(m, f2), scale2, shift2, w3)
    scale3, shift3 = _bn_scale_shift(s3, q3, m, params["g3"], params["be3"])

    # ---- stage 4: bn3 + identity shortcut + relu ----------------------------
    # Output is written over the f32 shortcut buffer (same shape/dtype).
    out2d = pl.pallas_call(
        _bn_add_relu_kernel,
        grid=(gm,),
        out_shape=jax.ShapeDtypeStruct((m, c), jnp.float32),
        in_specs=[row_spec_f3, chan_spec(f3), chan_spec(f3), row_spec_c],
        out_specs=row_spec_c,
        input_output_aliases={3: 0},
        compiler_params=_cparams(("parallel",)),
    )(y3, scale3, shift3, x2d)

    return jnp.transpose(out2d.reshape(n, h, w, c), (0, 3, 1, 2))  # back to NCHW


# ---------------------------------------------------------------------------
# Parameters & pure-JAX reference
# ---------------------------------------------------------------------------
def make_params(key, in_channels, k, filters):
    f1, f2, f3 = filters
    keys = jax.random.split(key, 12)

    def nrm(kk, shape, scale=0.1):
        return jax.random.normal(kk, shape, jnp.float32) * scale

    def unif(kk, shape):
        return jax.random.uniform(kk, shape, jnp.float32, 0.5, 1.5)

    return {
        # conv weights channel-last: 1x1 as (Cin, Cout), kxk as (kh, kw, Cin, Cout)
        "w1": nrm(keys[0], (in_channels, f1)),
        "b1": nrm(keys[1], (1, f1)),
        "g1": unif(keys[2], (1, f1)),
        "be1": nrm(keys[3], (1, f1)),
        "w2": nrm(keys[4], (k, k, f1, f2)),
        "b2": nrm(keys[5], (1, f2)),
        "g2": unif(keys[6], (1, f2)),
        "be2": nrm(keys[7], (1, f2)),
        "w3": nrm(keys[8], (f2, f3)),
        "b3": nrm(keys[9], (1, f3)),
        "g3": unif(keys[10], (1, f3)),
        "be3": nrm(keys[11], (1, f3)),
    }


def id_block_reference(x_nchw, params, k):
    """Pure-JAX f32 reference with the module's math (conv biases included)."""
    x = jnp.transpose(x_nchw, (0, 2, 3, 1)).astype(jnp.float32)

    def conv1x1(y, wgt, b):
        return jnp.einsum("nhwc,cf->nhwf", y, wgt) + b.reshape(1, 1, 1, -1)

    def bn(y, g, be):
        mean = jnp.mean(y, axis=(0, 1, 2), keepdims=True)
        var = jnp.maximum(
            jnp.mean(y * y, axis=(0, 1, 2), keepdims=True) - mean * mean, 0.0)
        return (y - mean) * jax.lax.rsqrt(var + EPS) * g.reshape(1, 1, 1, -1) \
            + be.reshape(1, 1, 1, -1)

    y = jax.nn.relu(bn(conv1x1(x, params["w1"], params["b1"]),
                       params["g1"], params["be1"]))
    y2 = jax.lax.conv_general_dilated(
        y, params["w2"], window_strides=(1, 1),
        padding=[(k // 2, k // 2), (k // 2, k // 2)],
        dimension_numbers=("NHWC", "HWIO", "NHWC")) + params["b2"].reshape(1, 1, 1, -1)
    y2 = jax.nn.relu(bn(y2, params["g2"], params["be2"]))
    y3 = bn(conv1x1(y2, params["w3"], params["b3"]), params["g3"], params["be3"])
    return jnp.transpose(jax.nn.relu(y3 + x), (0, 3, 1, 2))


if __name__ == "__main__":
    # IdBlock(in_channels=4, kernel_size=3, filters=(8, 8, 4)) on x: (2, 4, 16, 16)
    N, C, H, W = 2, 4, 16, 16
    K = 3
    FILTERS = (8, 8, 4)          # f3 == C for the identity shortcut

    key = jax.random.PRNGKey(0)
    kx, kp = jax.random.split(key)
    x = jax.random.normal(kx, (N, C, H, W), jnp.float32)
    params = make_params(kp, C, K, FILTERS)

    # tile_rows=128 forces a multi-step grid even at this tiny shape so the
    # multi-tile partial-stats path is exercised; the default (generation-aware,
    # 1024/2048) is for real ResNet shapes.
    out_bf16 = jax.block_until_ready(id_block(x, params, K, tile_rows=128))
    out_f32 = jax.block_until_ready(
        id_block(x, params, K, tile_rows=128, matmul_dtype=jnp.float32))
    ref = jax.block_until_ready(id_block_reference(x, params, K))

    assert out_bf16.shape == (N, C, H, W)
    assert jnp.all(jnp.isfinite(out_bf16))
    assert jnp.all(jnp.isfinite(out_f32))

    # f32 matmuls + f32 intermediates: tight check against the pure-JAX reference.
    err_f32 = float(jnp.max(jnp.abs(out_f32 - ref)))
    assert jnp.allclose(out_f32, ref, rtol=2e-3, atol=2e-3), \
        f"f32-path kernel mismatch: max abs diff {err_f32}"

    # bf16 matmuls + bf16 inter-stage activations: looser tolerance.
    err_bf16 = float(jnp.max(jnp.abs(out_bf16 - ref)))
    assert jnp.allclose(out_bf16, ref, rtol=7.5e-2, atol=7.5e-2), \
        f"bf16-path kernel mismatch vs f32 reference: max abs diff {err_bf16}"

    print("KERNEL_OK")
</pallas_src>

<mosaic_0001>
module attributes {stable_mosaic.version = 11 : i64} {
  func.func @_conv1x1_stats_kernel(%arg0: i32, %arg1: memref<128x4xf32, #tpu.memory_space<vmem>>, %arg2: memref<4x8xbf16, #tpu.memory_space<vmem>>, %arg3: memref<128x8xbf16, #tpu.memory_space<vmem>>, %arg4: memref<1x1x8xf32, #tpu.memory_space<vmem>>, %arg5: memref<1x1x8xf32, #tpu.memory_space<vmem>>) attributes {dimension_semantics = [#tpu.dimension_semantics<parallel>], iteration_bounds = array<i64: 4>, scalar_prefetch = 0 : i64, scratch_operands = 0 : i64, tpu.core_type = #tpu.core_type<tc>, window_params = [{transform_indices = @transform_0, window_bounds = array<i64: 128, 4>}, {pipeline_mode = #tpu.pipeline_mode<synchronous>, transform_indices = @transform_1, window_bounds = array<i64: 4, 8>}, {transform_indices = @transform_2, window_bounds = array<i64: 128, 8>}, {transform_indices = @transform_3, window_bounds = array<i64: 1, 1, 8>}, {transform_indices = @transform_4, window_bounds = array<i64: 1, 1, 8>}]} {
    %c0 = arith.constant 0 : index
    %c0_0 = arith.constant 0 : index
    %0 = vector.load %arg1[%c0, %c0_0] : memref<128x4xf32, #tpu.memory_space<vmem>>, vector<128x4xf32>
    %1 = arith.truncf %0 : vector<128x4xf32> to vector<128x4xbf16>
    %c0_1 = arith.constant 0 : index
    %c0_2 = arith.constant 0 : index
    %2 = vector.load %arg2[%c0_1, %c0_2] : memref<4x8xbf16, #tpu.memory_space<vmem>>, vector<4x8xbf16>
    %cst = arith.constant dense<0.000000e+00> : vector<128x8xf32>
    %3 = tpu.matmul %1, %2, %cst {dimension_numbers = #tpu.dot_dimension_numbers<[1], [0], [0], [1], [0, 0, 1, 1], [], []>} : vector<128x4xbf16>, vector<4x8xbf16>, vector<128x8xf32> -> vector<128x8xf32>
    %4 = arith.truncf %3 : vector<128x8xf32> to vector<128x8xbf16>
    %c0_3 = arith.constant 0 : index
    %c0_4 = arith.constant 0 : index
    %5 = vector.load %arg3[%c0_3, %c0_4] : memref<128x8xbf16, #tpu.memory_space<vmem>>, vector<128x8xbf16>
    tpu.vector_store %arg3[%c0_3, %c0_4], %4 {strides = array<i32>} : memref<128x8xbf16, #tpu.memory_space<vmem>>, vector<128x8xbf16>,
    %cst_5 = arith.constant dense<0.000000e+00> : vector<8xf32>
    %6 = vector.multi_reduction <add>, %3, %cst_5 [0] : vector<128x8xf32> to vector<8xf32>
    %7 = vector.shape_cast %6 : vector<8xf32> to vector<1x1x8xf32>
    %c0_6 = arith.constant 0 : index
    %c0_7 = arith.constant 0 : index
    %c0_8 = arith.constant 0 : index
    %8 = vector.load %arg4[%c0_6, %c0_7, %c0_8] : memref<1x1x8xf32, #tpu.memory_space<vmem>>, vector<1x1x8xf32>
    tpu.vector_store %arg4[%c0_6, %c0_7, %c0_8], %7 {strides = array<i32>} : memref<1x1x8xf32, #tpu.memory_space<vmem>>, vector<1x1x8xf32>,
    %9 = arith.mulf %3, %3 : vector<128x8xf32>
    %cst_9 = arith.constant dense<0.000000e+00> : vector<8xf32>
    %10 = vector.multi_reduction <add>, %9, %cst_9 [0] : vector<128x8xf32> to vector<8xf32>
    %11 = vector.shape_cast %10 : vector<8xf32> to vector<1x1x8xf32>
    %c0_10 = arith.constant 0 : index
    %c0_11 = arith.constant 0 : index
    %c0_12 = arith.constant 0 : index
    %12 = vector.load %arg5[%c0_10, %c0_11, %c0_12] : memref<1x1x8xf32, #tpu.memory_space<vmem>>, vector<1x1x8xf32>
    tpu.vector_store %arg5[%c0_10, %c0_11, %c0_12], %11 {strides = array<i32>} : memref<1x1x8xf32, #tpu.memory_space<vmem>>, vector<1x1x8xf32>,
    return
  }
  func.func @transform_0(%arg0: i32) -> (i32, i32) {
    %c0_i32 = arith.constant 0 : i32
    %c0_i32_0 = arith.constant 0 : i32
    return %arg0, %c0_i32 : i32, i32
  }
  func.func @transform_1(%arg0: i32) -> (i32, i32) {
    %c0_i32 = arith.constant 0 : i32
    %c0_i32_0 = arith.constant 0 : i32
    %c0_i32_1 = arith.constant 0 : i32
    return %c0_i32, %c0_i32_0 : i32, i32
  }
  func.func @transform_2(%arg0: i32) -> (i32, i32) {
    %c0_i32 = arith.constant 0 : i32
    %c0_i32_0 = arith.constant 0 : i32
    return %arg0, %c0_i32 : i32, i32
  }
  func.func @transform_3(%arg0: i32) -> (i32, i32, i32) {
    %c0_i32 = arith.constant 0 : i32
    %c0_i32_0 = arith.constant 0 : i32
    %c0_i32_1 = arith.constant 0 : i32
    return %arg0, %c0_i32, %c0_i32_0 : i32, i32, i32
  }
  func.func @transform_4(%arg0: i32) -> (i32, i32, i32) {
    %c0_i32 = arith.constant 0 : i32
    %c0_i32_0 = arith.constant 0 : i32
    %c0_i32_1 = arith.constant 0 : i32
    return %arg0, %c0_i32, %c0_i32_0 : i32, i32, i32
  }
}

module attributes {stable_mosaic.version = 11 : i64} {
  func.func @_bn_relu_conv1x1_stats_kernel(%arg0: i32, %arg1: memref<128x8xbf16, #tpu.memory_space<vmem>>, %arg2: memref<1x8xf32, #tpu.memory_space<vmem>>, %arg3: memref<1x8xf32, #tpu.memory_space<vmem>>, %arg4: memref<8x4xbf16, #tpu.memory_space<vmem>>, %arg5: memref<128x4xbf16, #tpu.memory_space<vmem>>, %arg6: memref<1x1x4xf32, #tpu.memory_space<vmem>>, %arg7: memref<1x1x4xf32, #tpu.memory_space<vmem>>) attributes {dimension_semantics = [#tpu.dimension_semantics<parallel>], iteration_bounds = array<i64: 4>, scalar_prefetch = 0 : i64, scratch_operands = 0 : i64, tpu.core_type = #tpu.core_type<tc>, window_params = [{transform_indices = @transform_0, window_bounds = array<i64: 128, 8>}, {pipeline_mode = #tpu.pipeline_mode<synchronous>, transform_indices = @transform_1, window_bounds = array<i64: 1, 8>}, {pipeline_mode = #tpu.pipeline_mode<synchronous>, transform_indices = @transform_2, window_bounds = array<i64: 1, 8>}, {pipeline_mode = #tpu.pipeline_mode<synchronous>, transform_indices = @transform_3, window_bounds = array<i64: 8, 4>}, {transform_indices = @transform_4, window_bounds = array<i64: 128, 4>}, {transform_indices = @transform_5, window_bounds = array<i64: 1, 1, 4>}, {transform_indices = @transform_6, window_bounds = array<i64: 1, 1, 4>}]} {
    %c0 = arith.constant 0 : index
    %c0_0 = arith.constant 0 : index
    %0 = vector.load %arg1[%c0, %c0_0] : memref<128x8xbf16, #tpu.memory_space<vmem>>, vector<128x8xbf16>
    %1 = arith.extf %0 : vector<128x8xbf16> to vector<128x8xf32>
    %c0_1 = arith.constant 0 : index
    %c0_2 = arith.constant 0 : index
    %2 = vector.load %arg2[%c0_1, %c0_2] : memref<1x8xf32, #tpu.memory_space<vmem>>, vector<1x8xf32>
    %3 = vector.broadcast %2 : vector<1x8xf32> to vector<128x8xf32>
    %4 = arith.mulf %1, %3 : vector<128x8xf32>
    %c0_3 = arith.constant 0 : index
    %c0_4 = arith.constant 0 : index
    %5 = vector.load %arg3[%c0_3, %c0_4] : memref<1x8xf32, #tpu.memory_space<vmem>>, vector<1x8xf32>
    %6 = vector.broadcast %5 : vector<1x8xf32> to vector<128x8xf32>
    %7 = arith.addf %4, %6 : vector<128x8xf32>
    %cst = arith.constant 0.000000e+00 : f32
    %8 = vector.broadcast %cst : f32 to vector<128x8xf32>
    %9 = arith.maximumf %7, %8 : vector<128x8xf32>
    %10 = arith.truncf %9 : vector<128x8xf32> to vector<128x8xbf16>
    %c0_5 = arith.constant 0 : index
    %c0_6 = arith.constant 0 : index
    %11 = vector.load %arg4[%c0_5, %c0_6] : memref<8x4xbf16, #tpu.memory_space<vmem>>, vector<8x4xbf16>
    %cst_7 = arith.constant dense<0.000000e+00> : vector<128x4xf32>
    %12 = tpu.matmul %10, %11, %cst_7 {dimension_numbers = #tpu.dot_dimension_numbers<[1], [0], [0], [1], [0, 0, 1, 1], [], []>} : vector<128x8xbf16>, vector<8x4xbf16>, vector<128x4xf32> -> vector<128x4xf32>
    %13 = arith.truncf %12 : vector<128x4xf32> to vector<128x4xbf16>
    %c0_8 = arith.constant 0 : index
    %c0_9 = arith.constant 0 : index
    %14 = vector.load %arg5[%c0_8, %c0_9] : memref<128x4xbf16, #tpu.memory_space<vmem>>, vector<128x4xbf16>
    tpu.vector_store %arg5[%c0_8, %c0_9], %13 {strides = array<i32>} : memref<128x4xbf16, #tpu.memory_space<vmem>>, vector<128x4xbf16>,
    %cst_10 = arith.constant dense<0.000000e+00> : vector<4xf32>
    %15 = vector.multi_reduction <add>, %12, %cst_10 [0] : vector<128x4xf32> to vector<4xf32>
    %16 = vector.shape_cast %15 : vector<4xf32> to vector<1x1x4xf32>
    %c0_11 = arith.constant 0 : index
    %c0_12 = arith.constant 0 : index
    %c0_13 = arith.constant 0 : index
    %17 = vector.load %arg6[%c0_11, %c0_12, %c0_13] : memref<1x1x4xf32, #tpu.memory_space<vmem>>, vector<1x1x4xf32>
    tpu.vector_store %arg6[%c0_11, %c0_12, %c0_13], %16 {strides = array<i32>} : memref<1x1x4xf32, #tpu.memory_space<vmem>>, vector<1x1x4xf32>,
    %18 = arith.mulf %12, %12 : vector<128x4xf32>
    %cst_14 = arith.constant dense<0.000000e+00> : vector<4xf32>
    %19 = vector.multi_reduction <add>, %18, %cst_14 [0] : vector<128x4xf32> to vector<4xf32>
    %20 = vector.shape_cast %19 : vector<4xf32> to vector<1x1x4xf32>
    %c0_15 = arith.constant 0 : index
    %c0_16 = arith.constant 0 : index
    %c0_17 = arith.constant 0 : index
    %21 = vector.load %arg7[%c0_15, %c0_16, %c0_17] : memref<1x1x4xf32, #tpu.memory_space<vmem>>, vector<1x1x4xf32>
    tpu.vector_store %arg7[%c0_15, %c0_16, %c0_17], %20 {strides = array<i32>} : memref<1x1x4xf32, #tpu.memory_space<vmem>>, vector<1x1x4xf32>,
    return
  }
  func.func @transform_0(%arg0: i32) -> (i32, i32) {
    %c0_i32 = arith.constant 0 : i32
    %c0_i32_0 = arith.constant 0 : i32
    return %arg0, %c0_i32 : i32, i32
  }
  func.func @transform_1(%arg0: i32) -> (i32, i32) {
    %c0_i32 = arith.constant 0 : i32
    %c0_i32_0 = arith.constant 0 : i32
    %c0_i32_1 = arith.constant 0 : i32
    return %c0_i32, %c0_i32_0 : i32, i32
  }
  func.func @transform_2(%arg0: i32) -> (i32, i32) {
    %c0_i32 = arith.constant 0 : i32
    %c0_i32_0 = arith.constant 0 : i32
    %c0_i32_1 = arith.constant 0 : i32
    return %c0_i32, %c0_i32_0 : i32, i32
  }
  func.func @transform_3(%arg0: i32) -> (i32, i32) {
    %c0_i32 = arith.constant 0 : i32
    %c0_i32_0 = arith.constant 0 : i32
    %c0_i32_1 = arith.constant 0 : i32
    return %c0_i32, %c0_i32_0 : i32, i32
  }
  func.func @transform_4(%arg0: i32) -> (i32, i32) {
    %c0_i32 = arith.constant 0 : i32
    %c0_i32_0 = arith.constant 0 : i32
    return %arg0, %c0_i32 : i32, i32
  }
  func.func @transform_5(%arg0: i32) -> (i32, i32, i32) {
    %c0_i32 = arith.constant 0 : i32
    %c0_i32_0 = arith.constant 0 : i32
    %c0_i32_1 = arith.constant 0 : i32
    return %arg0, %c0_i32, %c0_i32_0 : i32, i32, i32
  }
  func.func @transform_6(%arg0: i32) -> (i32, i32, i32) {
    %c0_i32 = arith.constant 0 : i32
    %c0_i32_0 = arith.constant 0 : i32
    %c0_i32_1 = arith.constant 0 : i32
    return %arg0, %c0_i32, %c0_i32_0 : i32, i32, i32
  }
}

module attributes {stable_mosaic.version = 11 : i64} {
  func.func @_bn_relu_conv_kxk_stats_kernel(%arg0: i32, %arg1: memref<1x16x16x8xbf16, #tpu.memory_space<vmem>>, %arg2: memref<1x8xf32, #tpu.memory_space<vmem>>, %arg3: memref<1x8xf32, #tpu.memory_space<vmem>>, %arg4: memref<3x24x8xbf16, #tpu.memory_space<vmem>>, %arg5: memref<1x16x16x8xbf16, #tpu.memory_space<vmem>>, %arg6: memref<1x1x8xf32, #tpu.memory_space<vmem>>, %arg7: memref<1x1x8xf32, #tpu.memory_space<vmem>>, %arg8: memref<18x18x8xbf16, #tpu.memory_space<vmem>>) attributes {dimension_semantics = [#tpu.dimension_semantics<parallel>], iteration_bounds = array<i64: 2>, scalar_prefetch = 0 : i64, scratch_operands = 1 : i64, tpu.core_type = #tpu.core_type<tc>, window_params = [{transform_indices = @transform_0, window_bounds = array<i64: 1, 16, 16, 8>}, {pipeline_mode = #tpu.pipeline_mode<synchronous>, transform_indices = @transform_1, window_bounds = array<i64: 1, 8>}, {pipeline_mode = #tpu.pipeline_mode<synchronous>, transform_indices = @transform_2, window_bounds = array<i64: 1, 8>}, {pipeline_mode = #tpu.pipeline_mode<synchronous>, transform_indices = @transform_3, window_bounds = array<i64: 3, 24, 8>}, {transform_indices = @transform_4, window_bounds = array<i64: 1, 16, 16, 8>}, {transform_indices = @transform_5, window_bounds = array<i64: 1, 1, 8>}, {transform_indices = @transform_6, window_bounds = array<i64: 1, 1, 8>}]} {
    %cst = arith.constant 0.000000e+00 : bf16
    %0 = vector.broadcast %cst : bf16 to vector<1x18x8xbf16>
    %c0 = arith.constant 0 : index
    %c0_0 = arith.constant 0 : index
    %c0_1 = arith.constant 0 : index
    %1 = vector.load %arg8[%c0, %c0_0, %c0_1] : memref<18x18x8xbf16, #tpu.memory_space<vmem>>, vector<1x18x8xbf16>
    tpu.vector_store %arg8[%c0, %c0_0, %c0_1], %0 {strides = array<i32>} : memref<18x18x8xbf16, #tpu.memory_space<vmem>>, vector<1x18x8xbf16>,
    %cst_2 = arith.constant 0.000000e+00 : bf16
    %2 = vector.broadcast %cst_2 : bf16 to vector<1x18x8xbf16>
    %c17 = arith.constant 17 : index
    %c0_3 = arith.constant 0 : index
    %c0_4 = arith.constant 0 : index
    %3 = vector.load %arg8[%c17, %c0_3, %c0_4] : memref<18x18x8xbf16, #tpu.memory_space<vmem>>, vector<1x18x8xbf16>
    tpu.vector_store %arg8[%c17, %c0_3, %c0_4], %2 {strides = array<i32>} : memref<18x18x8xbf16, #tpu.memory_space<vmem>>, vector<1x18x8xbf16>,
    %cst_5 = arith.constant 0.000000e+00 : bf16
    %4 = vector.broadcast %cst_5 : bf16 to vector<18x1x8xbf16>
    %c0_6 = arith.constant 0 : index
    %c0_7 = arith.constant 0 : index
    %c0_8 = arith.constant 0 : index
    %5 = vector.load %arg8[%c0_6, %c0_7, %c0_8] : memref<18x18x8xbf16, #tpu.memory_space<vmem>>, vector<18x1x8xbf16>
    tpu.vector_store %arg8[%c0_6, %c0_7, %c0_8], %4 {strides = array<i32>} : memref<18x18x8xbf16, #tpu.memory_space<vmem>>, vector<18x1x8xbf16>,
    %cst_9 = arith.constant 0.000000e+00 : bf16
    %6 = vector.broadcast %cst_9 : bf16 to vector<18x1x8xbf16>
    %c0_10 = arith.constant 0 : index
    %c17_11 = arith.constant 17 : index
    %c0_12 = arith.constant 0 : index
    %7 = vector.load %arg8[%c0_10, %c17_11, %c0_12] : memref<18x18x8xbf16, #tpu.memory_space<vmem>>, vector<18x1x8xbf16>
    tpu.vector_store %arg8[%c0_10, %c17_11, %c0_12], %6 {strides = array<i32>} : memref<18x18x8xbf16, #tpu.memory_space<vmem>>, vector<18x1x8xbf16>,
    %c0_13 = arith.constant 0 : index
    %c0_14 = arith.constant 0 : index
    %c0_15 = arith.constant 0 : index
    %c0_16 = arith.constant 0 : index
    %8 = vector.load %arg1[%c0_13, %c0_14, %c0_15, %c0_16] : memref<1x16x16x8xbf16, #tpu.memory_space<vmem>>, vector<1x16x16x8xbf16>
    %9 = vector.shape_cast %8 : vector<1x16x16x8xbf16> to vector<16x16x8xbf16>
    %10 = arith.extf %9 : vector<16x16x8xbf16> to vector<16x16x8xf32>
    %c0_17 = arith.constant 0 : index
    %c0_18 = arith.constant 0 : index
    %11 = vector.load %arg2[%c0_17, %c0_18] : memref<1x8xf32, #tpu.memory_space<vmem>>, vector<1x8xf32>
    %12 = vector.shape_cast %11 : vector<1x8xf32> to vector<1x1x8xf32>
    %13 = vector.broadcast %12 : vector<1x1x8xf32> to vector<16x16x8xf32>
    %14 = arith.mulf %10, %13 : vector<16x16x8xf32>
    %c0_19 = arith.constant 0 : index
    %c0_20 = arith.constant 0 : index
    %15 = vector.load %arg3[%c0_19, %c0_20] : memref<1x8xf32, #tpu.memory_space<vmem>>, vector<1x8xf32>
    %16 = vector.shape_cast %15 : vector<1x8xf32> to vector<1x1x8xf32>
    %17 = vector.broadcast %16 : vector<1x1x8xf32> to vector<16x16x8xf32>
    %18 = arith.addf %14, %17 : vector<16x16x8xf32>
    %cst_21 = arith.constant 0.000000e+00 : f32
    %19 = vector.broadcast %cst_21 : f32 to vector<16x16x8xf32>
    %20 = arith.maximumf %18, %19 : vector<16x16x8xf32>
    %21 = arith.truncf %20 : vector<16x16x8xf32> to vector<16x16x8xbf16>
    %c1 = arith.constant 1 : index
    %c1_22 = arith.constant 1 : index
    %c0_23 = arith.constant 0 : index
    %22 = vector.load %arg8[%c1, %c1_22, %c0_23] : memref<18x18x8xbf16, #tpu.memory_space<vmem>>, vector<16x16x8xbf16>
    tpu.vector_store %arg8[%c1, %c1_22, %c0_23], %21 {strides = array<i32>} : memref<18x18x8xbf16, #tpu.memory_space<vmem>>, vector<16x16x8xbf16>,
    %cst_24 = arith.constant 0.000000e+00 : f32
    %23 = vector.broadcast %cst_24 : f32 to vector<256x8xf32>
    %c0_25 = arith.constant 0 : index
    %c0_26 = arith.constant 0 : index
    %c0_27 = arith.constant 0 : index
    %24 = vector.load %arg8[%c0_25, %c0_26, %c0_27] : memref<18x18x8xbf16, #tpu.memory_space<vmem>>, vector<18x16x8xbf16>
    %25 = vector.extract_strided_slice %24 {offsets = [0, 0, 0], sizes = [16, 16, 8], strides = [1, 1, 1]} : vector<18x16x8xbf16> to vector<16x16x8xbf16>
    %26 = vector.shape_cast %25 : vector<16x16x8xbf16> to vector<256x8xbf16>
    %27 = vector.extract_strided_slice %24 {offsets = [1, 0, 0], sizes = [16, 16, 8], strides = [1, 1, 1]} : vector<18x16x8xbf16> to vector<16x16x8xbf16>
    %28 = vector.shape_cast %27 : vector<16x16x8xbf16> to vector<256x8xbf16>
    %29 = vector.extract_strided_slice %24 {offsets = [2, 0, 0], sizes = [16, 16, 8], strides = [1, 1, 1]} : vector<18x16x8xbf16> to vector<16x16x8xbf16>
    %30 = vector.shape_cast %29 : vector<16x16x8xbf16> to vector<256x8xbf16>
    %31 = tpu.concatenate %26, %28, %30 in 1 : vector<256x8xbf16>, vector<256x8xbf16>, vector<256x8xbf16> -> vector<256x24xbf16>
    %c0_28 = arith.constant 0 : index
    %c0_29 = arith.constant 0 : index
    %c0_30 = arith.constant 0 : index
    %32 = vector.load %arg4[%c0_28, %c0_29, %c0_30] : memref<3x24x8xbf16, #tpu.memory_space<vmem>>, vector<1x24x8xbf16>
    %33 = vector.shape_cast %32 : vector<1x24x8xbf16> to vector<24x8xbf16>
    %cst_31 = arith.constant dense<0.000000e+00> : vector<256x8xf32>
    %34 = tpu.matmul %31, %33, %cst_31 {dimension_numbers = #tpu.dot_dimension_numbers<[1], [0], [0], [1], [0, 0, 1, 1], [], []>} : vector<256x24xbf16>, vector<24x8xbf16>, vector<256x8xf32> -> vector<256x8xf32>
    %35 = arith.addf %23, %34 : vector<256x8xf32>
    %c0_32 = arith.constant 0 : index
    %c1_33 = arith.constant 1 : index
    %c0_34 = arith.constant 0 : index
    %36 = vector.load %arg8[%c0_32, %c1_33, %c0_34] : memref<18x18x8xbf16, #tpu.memory_space<vmem>>, vector<18x16x8xbf16>
    %37 = vector.extract_strided_slice %36 {offsets = [0, 0, 0], sizes = [16, 16, 8], strides = [1, 1, 1]} : vector<18x16x8xbf16> to vector<16x16x8xbf16>
    %38 = vector.shape_cast %37 : vector<16x16x8xbf16> to vector<256x8xbf16>
    %39 = vector.extract_strided_slice %36 {offsets = [1, 0, 0], sizes = [16, 16, 8], strides = [1, 1, 1]} : vector<18x16x8xbf16> to vector<16x16x8xbf16>
    %40 = vector.shape_cast %39 : vector<16x16x8xbf16> to vector<256x8xbf16>
    %41 = vector.extract_strided_slice %36 {offsets = [2, 0, 0], sizes = [16, 16, 8], strides = [1, 1, 1]} : vector<18x16x8xbf16> to vector<16x16x8xbf16>
    %42 = vector.shape_cast %41 : vector<16x16x8xbf16> to vector<256x8xbf16>
    %43 = tpu.concatenate %38, %40, %42 in 1 : vector<256x8xbf16>, vector<256x8xbf16>, vector<256x8xbf16> -> vector<256x24xbf16>
    %c1_35 = arith.constant 1 : index
    %c0_36 = arith.constant 0 : index
    %c0_37 = arith.constant 0 : index
    %44 = vector.load %arg4[%c1_35, %c0_36, %c0_37] : memref<3x24x8xbf16, #tpu.memory_space<vmem>>, vector<1x24x8xbf16>
    %45 = vector.shape_cast %44 : vector<1x24x8xbf16> to vector<24x8xbf16>
    %cst_38 = arith.constant dense<0.000000e+00> : vector<256x8xf32>
    %46 = tpu.matmul %43, %45, %cst_38 {dimension_numbers = #tpu.dot_dimension_numbers<[1], [0], [0], [1], [0, 0, 1, 1], [], []>} : vector<256x24xbf16>, vector<24x8xbf16>, vector<256x8xf32> -> vector<256x8xf32>
    %47 = arith.addf %35, %46 : vector<256x8xf32>
    %c0_39 = arith.constant 0 : index
    %c2 = arith.constant 2 : index
    %c0_40 = arith.constant 0 : index
    %48 = vector.load %arg8[%c0_39, %c2, %c0_40] : memref<18x18x8xbf16, #tpu.memory_space<vmem>>, vector<18x16x8xbf16>
    %49 = vector.extract_strided_slice %48 {offsets = [0, 0, 0], sizes = [16, 16, 8], strides = [1, 1, 1]} : vector<18x16x8xbf16> to vector<16x16x8xbf16>
    %50 = vector.shape_cast %49 : vector<16x16x8xbf16> to vector<256x8xbf16>
    %51 = vector.extract_strided_slice %48 {offsets = [1, 0, 0], sizes = [16, 16, 8], strides = [1, 1, 1]} : vector<18x16x8xbf16> to vector<16x16x8xbf16>
    %52 = vector.shape_cast %51 : vector<16x16x8xbf16> to vector<256x8xbf16>
    %53 = vector.extract_strided_slice %48 {offsets = [2, 0, 0], sizes = [16, 16, 8], strides = [1, 1, 1]} : vector<18x16x8xbf16> to vector<16x16x8xbf16>
    %54 = vector.shape_cast %53 : vector<16x16x8xbf16> to vector<256x8xbf16>
    %55 = tpu.concatenate %50, %52, %54 in 1 : vector<256x8xbf16>, vector<256x8xbf16>, vector<256x8xbf16> -> vector<256x24xbf16>
    %c2_41 = arith.constant 2 : index
    %c0_42 = arith.constant 0 : index
    %c0_43 = arith.constant 0 : index
    %56 = vector.load %arg4[%c2_41, %c0_42, %c0_43] : memref<3x24x8xbf16, #tpu.memory_space<vmem>>, vector<1x24x8xbf16>
    %57 = vector.shape_cast %56 : vector<1x24x8xbf16> to vector<24x8xbf16>
    %cst_44 = arith.constant dense<0.000000e+00> : vector<256x8xf32>
    %58 = tpu.matmul %55, %57, %cst_44 {dimension_numbers = #tpu.dot_dimension_numbers<[1], [0], [0], [1], [0, 0, 1, 1], [], []>} : vector<256x24xbf16>, vector<24x8xbf16>, vector<256x8xf32> -> vector<256x8xf32>
    %59 = arith.addf %47, %58 : vector<256x8xf32>
    %60 = vector.shape_cast %59 : vector<256x8xf32> to vector<16x16x8xf32>
    %61 = arith.truncf %60 : vector<16x16x8xf32> to vector<16x16x8xbf16>
    %c0_45 = arith.constant 0 : index
    %c0_46 = arith.constant 0 : index
    %c0_47 = arith.constant 0 : index
    %c0_48 = arith.constant 0 : index
    %62 = vector.load %arg5[%c0_45, %c0_46, %c0_47, %c0_48] : memref<1x16x16x8xbf16, #tpu.memory_space<vmem>>, vector<1x16x16x8xbf16>
    %63 = vector.shape_cast %62 : vector<1x16x16x8xbf16> to vector<16x16x8xbf16>
    %64 = vector.shape_cast %61 : vector<16x16x8xbf16> to vector<1x16x16x8xbf16>
    tpu.vector_store %arg5[%c0_45, %c0_46, %c0_47, %c0_48], %64 {strides = array<i32>} : memref<1x16x16x8xbf16, #tpu.memory_space<vmem>>, vector<1x16x16x8xbf16>,
    %cst_49 = arith.constant dense<0.000000e+00> : vector<8xf32>
    %65 = vector.multi_reduction <add>, %59, %cst_49 [0] : vector<256x8xf32> to vector<8xf32>
    %66 = vector.shape_cast %65 : vector<8xf32> to vector<1x1x8xf32>
    %c0_50 = arith.constant 0 : index
    %c0_51 = arith.constant 0 : index
    %c0_52 = arith.constant 0 : index
    %67 = vector.load %arg6[%c0_50, %c0_51, %c0_52] : memref<1x1x8xf32, #tpu.memory_space<vmem>>, vector<1x1x8xf32>
    tpu.vector_store %arg6[%c0_50, %c0_51, %c0_52], %66 {strides = array<i32>} : memref<1x1x8xf32, #tpu.memory_space<vmem>>, vector<1x1x8xf32>,
    %68 = arith.mulf %59, %59 : vector<256x8xf32>
    %cst_53 = arith.constant dense<0.000000e+00> : vector<8xf32>
    %69 = vector.multi_reduction <add>, %68, %cst_53 [0] : vector<256x8xf32> to vector<8xf32>
    %70 = vector.shape_cast %69 : vector<8xf32> to vector<1x1x8xf32>
    %c0_54 = arith.constant 0 : index
    %c0_55 = arith.constant 0 : index
    %c0_56 = arith.constant 0 : index
    %71 = vector.load %arg7[%c0_54, %c0_55, %c0_56] : memref<1x1x8xf32, #tpu.memory_space<vmem>>, vector<1x1x8xf32>
    tpu.vector_store %arg7[%c0_54, %c0_55, %c0_56], %70 {strides = array<i32>} : memref<1x1x8xf32, #tpu.memory_space<vmem>>, vector<1x1x8xf32>,
    return
  }
  func.func @transform_0(%arg0: i32) -> (i32, i32, i32, i32) {
    %c0_i32 = arith.constant 0 : i32
    %c0_i32_0 = arith.constant 0 : i32
    %c0_i32_1 = arith.constant 0 : i32
    %c0_i32_2 = arith.constant 0 : i32
    return %arg0, %c0_i32, %c0_i32_0, %c0_i32_1 : i32, i32, i32, i32
  }
  func.func @transform_1(%arg0: i32) -> (i32, i32) {
    %c0_i32 = arith.constant 0 : i32
    %c0_i32_0 = arith.constant 0 : i32
    %c0_i32_1 = arith.constant 0 : i32
    return %c0_i32, %c0_i32_0 : i32, i32
  }
  func.func @transform_2(%arg0: i32) -> (i32, i32) {
    %c0_i32 = arith.constant 0 : i32
    %c0_i32_0 = arith.constant 0 : i32
    %c0_i32_1 = arith.constant 0 : i32
    return %c0_i32, %c0_i32_0 : i32, i32
  }
  func.func @transform_3(%arg0: i32) -> (i32, i32, i32) {
    %c0_i32 = arith.constant 0 : i32
    %c0_i32_0 = arith.constant 0 : i32
    %c0_i32_1 = arith.constant 0 : i32
    %c0_i32_2 = arith.constant 0 : i32
    return %c0_i32, %c0_i32_0, %c0_i32_1 : i32, i32, i32
  }
  func.func @transform_4(%arg0: i32) -> (i32, i32, i32, i32) {
    %c0_i32 = arith.constant 0 : i32
    %c0_i32_0 = arith.constant 0 : i32
    %c0_i32_1 = arith.constant 0 : i32
    %c0_i32_2 = arith.constant 0 : i32
    return %arg0, %c0_i32, %c0_i32_0, %c0_i32_1 : i32, i32, i32, i32
  }
  func.func @transform_5(%arg0: i32) -> (i32, i32, i32) {
    %c0_i32 = arith.constant 0 : i32
    %c0_i32_0 = arith.constant 0 : i32
    %c0_i32_1 = arith.constant 0 : i32
    return %arg0, %c0_i32, %c0_i32_0 : i32, i32, i32
  }
  func.func @transform_6(%arg0: i32) -> (i32, i32, i32) {
    %c0_i32 = arith.constant 0 : i32
    %c0_i32_0 = arith.constant 0 : i32
    %c0_i32_1 = arith.constant 0 : i32
    return %arg0, %c0_i32, %c0_i32_0 : i32, i32, i32
  }
}

module attributes {stable_mosaic.version = 11 : i64} {
  func.func @_bn_add_relu_kernel(%arg0: i32, %arg1: memref<128x4xbf16, #tpu.memory_space<vmem>>, %arg2: memref<1x4xf32, #tpu.memory_space<vmem>>, %arg3: memref<1x4xf32, #tpu.memory_space<vmem>>, %arg4: memref<128x4xf32, #tpu.memory_space<vmem>>, %arg5: memref<128x4xf32, #tpu.memory_space<vmem>>) attributes {dimension_semantics = [#tpu.dimension_semantics<parallel>], iteration_bounds = array<i64: 4>, scalar_prefetch = 0 : i64, scratch_operands = 0 : i64, tpu.core_type = #tpu.core_type<tc>, window_params = [{transform_indices = @transform_0, window_bounds = array<i64: 128, 4>}, {pipeline_mode = #tpu.pipeline_mode<synchronous>, transform_indices = @transform_1, window_bounds = array<i64: 1, 4>}, {pipeline_mode = #tpu.pipeline_mode<synchronous>, transform_indices = @transform_2, window_bounds = array<i64: 1, 4>}, {transform_indices = @transform_3, window_bounds = array<i64: 128, 4>}, {transform_indices = @transform_4, window_bounds = array<i64: 128, 4>}]} {
    %c0 = arith.constant 0 : index
    %c0_0 = arith.constant 0 : index
    %0 = vector.load %arg1[%c0, %c0_0] : memref<128x4xbf16, #tpu.memory_space<vmem>>, vector<128x4xbf16>
    %1 = arith.extf %0 : vector<128x4xbf16> to vector<128x4xf32>
    %c0_1 = arith.constant 0 : index
    %c0_2 = arith.constant 0 : index
    %2 = vector.load %arg2[%c0_1, %c0_2] : memref<1x4xf32, #tpu.memory_space<vmem>>, vector<1x4xf32>
    %3 = vector.broadcast %2 : vector<1x4xf32> to vector<128x4xf32>
    %4 = arith.mulf %1, %3 : vector<128x4xf32>
    %c0_3 = arith.constant 0 : index
    %c0_4 = arith.constant 0 : index
    %5 = vector.load %arg3[%c0_3, %c0_4] : memref<1x4xf32, #tpu.memory_space<vmem>>, vector<1x4xf32>
    %6 = vector.broadcast %5 : vector<1x4xf32> to vector<128x4xf32>
    %7 = arith.addf %4, %6 : vector<128x4xf32>
    %c0_5 = arith.constant 0 : index
    %c0_6 = arith.constant 0 : index
    %8 = vector.load %arg4[%c0_5, %c0_6] : memref<128x4xf32, #tpu.memory_space<vmem>>, vector<128x4xf32>
    %9 = arith.addf %7, %8 : vector<128x4xf32>
    %cst = arith.constant 0.000000e+00 : f32
    %10 = vector.broadcast %cst : f32 to vector<128x4xf32>
    %11 = arith.maximumf %9, %10 : vector<128x4xf32>
    %c0_7 = arith.constant 0 : index
    %c0_8 = arith.constant 0 : index
    %12 = vector.load %arg5[%c0_7, %c0_8] : memref<128x4xf32, #tpu.memory_space<vmem>>, vector<128x4xf32>
    tpu.vector_store %arg5[%c0_7, %c0_8], %11 {strides = array<i32>} : memref<128x4xf32, #tpu.memory_space<vmem>>, vector<128x4xf32>,
    return
  }
  func.func @transform_0(%arg0: i32) -> (i32, i32) {
    %c0_i32 = arith.constant 0 : i32
    %c0_i32_0 = arith.constant 0 : i32
    return %arg0, %c0_i32 : i32, i32
  }
  func.func @transform_1(%arg0: i32) -> (i32, i32) {
    %c0_i32 = arith.constant 0 : i32
    %c0_i32_0 = arith.constant 0 : i32
    %c0_i32_1 = arith.constant 0 : i32
    return %c0_i32, %c0_i32_0 : i32, i32
  }
  func.func @transform_2(%arg0: i32) -> (i32, i32) {
    %c0_i32 = arith.constant 0 : i32
    %c0_i32_0 = arith.constant 0 : i32
    %c0_i32_1 = arith.constant 0 : i32
    return %c0_i32, %c0_i32_0 : i32, i32
  }
  func.func @transform_3(%arg0: i32) -> (i32, i32) {
    %c0_i32 = arith.constant 0 : i32
    %c0_i32_0 = arith.constant 0 : i32
    return %arg0, %c0_i32 : i32, i32
  }
  func.func @transform_4(%arg0: i32) -> (i32, i32) {
    %c0_i32 = arith.constant 0 : i32
    %c0_i32_0 = arith.constant 0 : i32
    return %arg0, %c0_i32 : i32, i32
  }
}

</mosaic_0001>

<bundles_post_ra>
// kernel: id_block.6
= control target key start
LH: loop header
LB: loop body
LE: loop exit
PB: predicated region body
PF: predicated region fallthrough
CT: control target
= control target key end

     0   :  { %s957_s21 = smov 0   ;;  %s1135_s0 = inlined_call_operand.vmem [shape: bf16[512,8], index: 0, kind: input, shape index: {}]   ;;  %s1136_s1 = inlined_call_operand.vmem [shape: f32[1,8], index: 1, kind: input, shape index: {}]   ;;  %s1137_s2 = inlined_call_operand.vmem [shape: f32[1,8], index: 2, kind: input, shape index: {}]   ;;  %s1138_s3 = inlined_call_operand.vmem [shape: bf16[8,4], index: 3, kind: input, shape index: {}]   ;;  %s1139_s4 = inlined_call_operand.vmem [shape: bf16[512,4], index: 4, kind: output, shape index: {0}]   ;;  %s1140_s5 = inlined_call_operand.vmem [shape: f32[4,1,4], index: 5, kind: output, shape index: {1}]   ;;  %s1141_s6 = inlined_call_operand.vmem [shape: f32[4,1,4], index: 6, kind: output, shape index: {2}]  }
   0x1 LB: > { %s963_s22 = sadd.s32 4294967295, %s920_s21   ;;  %p787_p0 = scmp.ge.s32.totalorder %s920_s21, 1  ;;  %s920_s21 = sphi %s957_s21, %s17_s21  }
   0x2   : > { %p218_p1 = scmp.lt.s32.totalorder %s920_s21, 5 }
   0x4   : > { %p219_p2 = pnand %p787_p0, %p218_p1 }
   0x5   : > { %v375_v0 = vld [vmem:[%s1138_s3] sm:$0xf] (!%p219_p2)  ;;  %vm401_vm0 = vcmask (!%p219_p2), 1043456   ;;  %s788_s25 = sshll.u32 (!%p219_p2), %s963_s22, 4  ;;  %vm376_vm1 = vcmask (!%p219_p2), 64512   ;;  %vm566_vm2 = vcmask (!%p219_p2), 27648  }
   0x6   : > { %222 = sbr.rel (%p219_p2) target bundleno = 289 (0x121), region = 36  ;;  %904 = vmatprep.subr.msk.bf16.mxu0 (!%p219_p2), %vm401_vm0, %v375_v0  ;;  %v403_v1 = vsel (!%p219_p2), %vm401_vm0, %v375_v0, 0  ;;  %p255_p3 = scmp.lt.s32.totalorder (!%p219_p2), %s788_s25, 63  ;;  %905 = vmatprep.subr.msk.bf16.mxu1 (!%p219_p2), %vm401_vm0, %v375_v0  ;;  %v984_v2 = vld [vmem:[%s1136_s1] ss:$0 sm:$0xff] (!%p219_p2)  ;;  %vm583_vm3 = vcmask (!%p219_p2), 31744  }
   0x7   : > { %885 = vmatpush3.bf16.msra.mxu0 (!%p219_p2), %v403_v1  ;;  %903 = vmatpush3.bf16.msra.mxu1 (!%p219_p2), %v403_v1  ;;  %v993_v11 = vld [vmem:[%s1137_s2] ss:$0 sm:$0xff] (!%p219_p2)  ;;  %p266_p4 = scmp.lt.s32.totalorder (!%p219_p2), %s963_s22, 3  ;;  %vm621_vm4 = vcmask (!%p219_p2), 24576  }
   0xd   : > { %s1143_s25 = smov (!%p255_p3, %s788_s25), 63  ;;  %s1145_s22 = smov (!%p266_p4, %s963_s22), 3 }
   0xe   : > { %s789_s26 = sshll.u32 %s1143_s25, 2  ;;  %s268_s15 = scalar_lea.vmem %s1140_s5, %s1145_s22 }
   0xf   : > { %s979_s29 = scalar_lea.vmem %s1135_s0, %s789_s26  ;;  %s1044_s12 = scalar_lea.vmem %s1139_s4, %s789_s26 }
  0x10   : > { %v837_v3 = vld [vmem:[%s979_s29] sm:$0xff]   ;;  %v868_v4 = vld [vmem:[%s979_s29 + $0x8] sm:$0xff]   ;;  %v869_v5 = vld [vmem:[%s979_s29 + $0x10] sm:$0xff]   ;;  %s271_s18 = scalar_lea.vmem %s1141_s6, %s1145_s22 }
  0x11   : > { %v838_v6 = vunpack.c.l.bf16 %v837_v3  ;;  %v839_v7 = vunpack.c.h.bf16 %v837_v3  ;;  %v842_v8 = vunpack.c.l.bf16 %v868_v4  ;;  %v843_v9 = vunpack.c.h.bf16 %v868_v4  ;;  %v870_v10 = vld [vmem:[%s979_s29 + $0x18] sm:$0xff]   ;;  %v871_v32 = vld [vmem:[%s979_s29 + $0x20] sm:$0xff]   ;;  %v872_v37 = vld [vmem:[%s979_s29 + $0x28] sm:$0xff]  }
  0x12   : > { %v846_v12 = vunpack.c.l.bf16 %v869_v5  ;;  %v847_v13 = vunpack.c.h.bf16 %v869_v5  ;;  %v850_v14 = vunpack.c.l.bf16 %v870_v10  ;;  %v851_v15 = vunpack.c.h.bf16 %v870_v10  ;;  %v873_v42 = vld [vmem:[%s979_s29 + $0x30] sm:$0xff]   ;;  %v874_v47 = vld [vmem:[%s979_s29 + $0x38] sm:$0xff]  }
  0x13   : > { %v312_v16 = vmul.f32 %v838_v6, %v984_v2  ;;  %v313_v17 = vmul.f32 %v839_v7, %v984_v2  ;;  %v314_v18 = vmul.f32 %v842_v8, %v984_v2  ;;  %v315_v19 = vmul.f32 %v843_v9, %v984_v2 }
  0x14   : > { %v316_v20 = vmul.f32 %v846_v12, %v984_v2  ;;  %v317_v21 = vmul.f32 %v847_v13, %v984_v2  ;;  %v318_v22 = vmul.f32 %v850_v14, %v984_v2  ;;  %v319_v23 = vmul.f32 %v851_v15, %v984_v2 }
  0x15   : > { %v335_v24 = vadd.f32 %v993_v11, %v312_v16  ;;  %v336_v25 = vadd.f32 %v993_v11, %v313_v17  ;;  %v337_v26 = vadd.f32 %v993_v11, %v314_v18  ;;  %v338_v27 = vadd.f32 %v993_v11, %v315_v19 }
  0x16   : > { %v339_v28 = vadd.f32 %v993_v11, %v316_v20  ;;  %v340_v29 = vadd.f32 %v993_v11, %v317_v21  ;;  %v341_v30 = vadd.f32 %v993_v11, %v318_v22  ;;  %v342_v31 = vadd.f32 %v993_v11, %v319_v23 }
  0x17   : > { %v351_v33 = vmax.f32 %v335_v24, 0.0  ;;  %v352_v34 = vmax.f32 %v336_v25, 0.0  ;;  %v353_v35 = vmax.f32 %v337_v26, 0.0  ;;  %v354_v36 = vmax.f32 %v338_v27, 0.0 }
  0x18   : > { %v355_v38 = vmax.f32 %v339_v28, 0.0  ;;  %v356_v39 = vmax.f32 %v340_v29, 0.0  ;;  %v357_v40 = vmax.f32 %v341_v30, 0.0  ;;  %v358_v41 = vmax.f32 %v342_v31, 0.0 }
  0x19   : > { %v367_v43 = vpack.c.bf16 %v352_v34, %v351_v33  ;;  %v368_v44 = vpack.c.bf16 %v354_v36, %v353_v35  ;;  %v854_v45 = vunpack.c.l.bf16 %v871_v32  ;;  %v855_v46 = vunpack.c.h.bf16 %v871_v32 }
  0x1a   : > { %v369_v48 = vpack.c.bf16 %v356_v39, %v355_v38  ;;  %v370_v49 = vpack.c.bf16 %v358_v41, %v357_v40  ;;  %v858_v50 = vunpack.c.l.bf16 %v872_v37  ;;  %v859_v51 = vunpack.c.h.bf16 %v872_v37 }
  0x1b   : > { %886 = vmatprep.mubr.msk.bf16.mxu0 %vm376_vm1, %v367_v43  ;;  %v320_v52 = vmul.f32 %v854_v45, %v984_v2  ;;  %v321_v53 = vmul.f32 %v855_v46, %v984_v2  ;;  %v862_v54 = vunpack.c.l.bf16 %v873_v42  ;;  %v863_v55 = vunpack.c.h.bf16 %v873_v42 }
  0x1c   : > { %887 = vmatmul.mubr.msk.bf16.vlgmr.msra.gmra.mrb[0].mxu0 %vm376_vm1, %v368_v44  ;;  %v322_v56 = vmul.f32 %v858_v50, %v984_v2  ;;  %v323_v57 = vmul.f32 %v859_v51, %v984_v2  ;;  %v866_v58 = vunpack.c.l.bf16 %v874_v47  ;;  %v867_v59 = vunpack.c.h.bf16 %v874_v47 }
  0x1d   : > { %890 = vmatprep.mubr.msk.bf16.mxu0 %vm376_vm1, %v369_v48  ;;  %v343_v60 = vadd.f32 %v993_v11, %v320_v52  ;;  %v344_v61 = vadd.f32 %v993_v11, %v321_v53  ;;  %v324_v62 = vmul.f32 %v862_v54, %v984_v2  ;;  %v325_v63 = vmul.f32 %v863_v55, %v984_v2 }
  0x1e   : > { %v345_v0 = vadd.f32 %v993_v11, %v322_v56  ;;  %v346_v1 = vadd.f32 %v993_v11, %v323_v57  ;;  %v326_v3 = vmul.f32 %v866_v58, %v984_v2  ;;  %v327_v4 = vmul.f32 %v867_v59, %v984_v2 }
  0x1f   : > { %v359_v5 = vmax.f32 %v343_v60, 0.0  ;;  %v360_v6 = vmax.f32 %v344_v61, 0.0  ;;  %v347_v7 = vadd.f32 %v993_v11, %v324_v62  ;;  %v348_v8 = vadd.f32 %v993_v11, %v325_v63 }
  0x20   : > { %v361_v9 = vmax.f32 %v345_v0, 0.0  ;;  %v362_v10 = vmax.f32 %v346_v1, 0.0  ;;  %v349_v12 = vadd.f32 %v993_v11, %v326_v3  ;;  %v350_v13 = vadd.f32 %v993_v11, %v327_v4 }
  0x21   : > { %v371_v14 = vpack.c.bf16 %v360_v6, %v359_v5  ;;  %v363_v15 = vmax.f32 %v347_v7, 0.0  ;;  %v364_v16 = vmax.f32 %v348_v8, 0.0 }
  0x22   : > { %v372_v17 = vpack.c.bf16 %v362_v10, %v361_v9  ;;  %v365_v18 = vmax.f32 %v349_v12, 0.0  ;;  %v366_v19 = vmax.f32 %v350_v13, 0.0 }
  0x23   : > { %894 = vmatprep.mubr.msk.bf16.mxu1 %vm376_vm1, %v371_v14  ;;  %v373_v2 = vpack.c.bf16 %v364_v16, %v363_v15 }
  0x24   : > { %891 = vmatmul.mubr.msk.bf16.gmra.mrb[4].mxu0 %vm376_vm1, %v370_v49  ;;  %895 = vmatmul.mubr.msk.bf16.vlgmr.msra.gmra.mrb[0].mxu1 %vm376_vm1, %v372_v17  ;;  %v374_v20 = vpack.c.bf16 %v366_v19, %v365_v18 }
  0x25   : > { %898 = vmatprep.mubr.msk.bf16.mxu1 %vm376_vm1, %v373_v2 }
  0x2c   : > { %899 = vmatmul.mubr.msk.bf16.gmra.mrb[4].mxu1 %vm376_vm1, %v374_v20 }
  0xef   : > { %v888_v11 = vpop.f32.mrb[0].mxu0 }
  0xf0   : > { %v822_v21 = vpack.c.bf16 %v888_v11, %v888_v11  ;;  %v439_v22 = vpop.f32.mrb[1].mxu0  ;;  %v625_v26 = vmul.f32 %v888_v11, %v888_v11  ;;  %v587_v35 = vsel %vm583_vm3, %v888_v11, 0.0 }
  0xf1   : > { %v820_v23 = vpack.c.bf16 %v439_v22, %v439_v22  ;;  %v623_v24 = vmul.f32 %v439_v22, %v439_v22  ;;  %v889_v25 = vpop.f32.mrb[2].mxu0  ;;  %v584_v29 = vsel %vm583_vm3, %v439_v22, 0.0 }
  0xf2   : > { %569 = vst.msk [vmem:[%s1044_s12 + $0x8] sm:$0xf] %vm566_vm2, %v822_v21  ;;  %v823_v27 = vpack.c.bf16 %v889_v25, %v889_v25  ;;  %v442_v28 = vpop.f32.mrb[3].mxu0  ;;  %v626_v33 = vmul.f32 %v889_v25, %v889_v25  ;;  %v642_v40 = vsel %vm583_vm3, %v625_v26, 0.0  ;;  %v589_v43 = vsel %vm583_vm3, %v889_v25, 0.0 }
  0xf3   : > { %567 = vst.msk [vmem:[%s1044_s12] sm:$0xf] %vm566_vm2, %v820_v23  ;;  %v821_v30 = vpack.c.bf16 %v442_v28, %v442_v28  ;;  %v585_v31 = vsel %vm583_vm3, %v442_v28, 0.0  ;;  %v624_v32 = vmul.f32 %v442_v28, %v442_v28  ;;  %v639_v36 = vsel %vm583_vm3, %v623_v24, 0.0 }
  0xf4   : > { %570 = vst.msk [vmem:[%s1044_s12 + $0xc] sm:$0xf] %vm566_vm2, %v823_v27  ;;  %v586_v34 = vadd.f32 %v585_v31, %v584_v29  ;;  %v644_v44 = vsel %vm583_vm3, %v626_v33, 0.0 }
  0xf5   : > { %568 = vst.msk [vmem:[%s1044_s12 + $0x4] sm:$0xf] %vm566_vm2, %v821_v30  ;;  %v640_v37 = vsel %vm583_vm3, %v624_v32, 0.0 }
  0xf6   : > { %v588_v38 = vadd.f32 %v587_v35, %v586_v34  ;;  %v641_v39 = vadd.f32 %v640_v37, %v639_v36 }
  0xf7   : > { %v892_v41 = vpop.f32.mrb[4].mxu0  ;;  %v1060_v42 = vpop.f32.mrb[0].mxu1 }
  0xf8   : > { %v643_v45 = vadd.f32 %v642_v40, %v641_v39  ;;  %v826_v46 = vpack.c.bf16 %v892_v41, %v892_v41  ;;  %v455_v47 = vpop.f32.mrb[5].mxu0  ;;  %v471_v48 = vpop.f32.mrb[1].mxu1  ;;  %v590_v50 = vadd.f32 %v589_v43, %v588_v38  ;;  %v629_v59 = vmul.f32 %v892_v41, %v892_v41 }
  0xf9   : > { %v824_v49 = vpack.c.bf16 %v455_v47, %v455_v47  ;;  %v591_v51 = vsel %vm583_vm3, %v455_v47, 0.0  ;;  %v627_v52 = vmul.f32 %v455_v47, %v455_v47  ;;  %v893_v53 = vpop.f32.mrb[6].mxu0  ;;  %v1065_v54 = vpop.f32.mrb[2].mxu1  ;;  %v830_v3 = vpack.c.bf16 %v1060_v42, %v1060_v42 }
  0xfa   : > { %573 = vst.msk [vmem:[%s1044_s12 + $0x18] sm:$0xf] %vm566_vm2, %v826_v46  ;;  %v645_v55 = vadd.f32 %v644_v44, %v643_v45  ;;  %v827_v56 = vpack.c.bf16 %v893_v53, %v893_v53  ;;  %v458_v57 = vpop.f32.mrb[7].mxu0  ;;  %v474_v58 = vpop.f32.mrb[3].mxu1  ;;  %v592_v60 = vadd.f32 %v591_v51, %v590_v50  ;;  %v595_v4 = vsel %vm583_vm3, %v892_v41, 0.0 }
  0xfb   : > { %571 = vst.msk [vmem:[%s1044_s12 + $0x10] sm:$0xf] %vm566_vm2, %v824_v49  ;;  %v646_v61 = vsel %vm583_vm3, %v627_v52, 0.0  ;;  %v825_v62 = vpack.c.bf16 %v458_v57, %v458_v57  ;;  %v593_v0 = vsel %vm583_vm3, %v458_v57, 0.0  ;;  %v628_v1 = vmul.f32 %v458_v57, %v458_v57  ;;  %577 = vst.msk [vmem:[%s1044_s12 + $0x28] sm:$0xf] %vm566_vm2, %v830_v3 }
  0xfc   : > { %v647_v63 = vadd.f32 %v646_v61, %v645_v55  ;;  %574 = vst.msk [vmem:[%s1044_s12 + $0x1c] sm:$0xf] %vm566_vm2, %v827_v56  ;;  %v594_v5 = vadd.f32 %v593_v0, %v592_v60  ;;  %v630_v6 = vmul.f32 %v893_v53, %v893_v53  ;;  %v828_v8 = vpack.c.bf16 %v471_v48, %v471_v48 }
  0xfd   : > { %572 = vst.msk [vmem:[%s1044_s12 + $0x14] sm:$0xf] %vm566_vm2, %v825_v62  ;;  %v648_v7 = vsel %vm583_vm3, %v628_v1, 0.0  ;;  %v631_v9 = vmul.f32 %v471_v48, %v471_v48  ;;  %v831_v13 = vpack.c.bf16 %v1065_v54, %v1065_v54  ;;  %v650_v15 = vsel %vm583_vm3, %v629_v59, 0.0 }
  0xfe   : > { %v596_v10 = vadd.f32 %v595_v4, %v594_v5  ;;  %v649_v12 = vadd.f32 %v648_v7, %v647_v63  ;;  %v597_v16 = vsel %vm583_vm3, %v893_v53, 0.0  ;;  %575 = vst.msk [vmem:[%s1044_s12 + $0x20] sm:$0xf] %vm566_vm2, %v828_v8  ;;  %v599_v17 = vsel %vm583_vm3, %v471_v48, 0.0 }
  0xff   : > { %v900_v14 = vpop.f32.mrb[4].mxu1  ;;  %v829_v2 = vpack.c.bf16 %v474_v58, %v474_v58  ;;  %578 = vst.msk [vmem:[%s1044_s12 + $0x2c] sm:$0xf] %vm566_vm2, %v831_v13  ;;  %v652_v21 = vsel %vm583_vm3, %v630_v6, 0.0  ;;  %v654_v22 = vsel %vm583_vm3, %v631_v9, 0.0  ;;  %v632_v23 = vmul.f32 %v474_v58, %v474_v58 }
 0x100   : > { %v487_v18 = vpop.f32.mrb[5].mxu1  ;;  %v651_v19 = vadd.f32 %v650_v15, %v649_v12  ;;  %v598_v20 = vadd.f32 %v597_v16, %v596_v10  ;;  %v834_v24 = vpack.c.bf16 %v900_v14, %v900_v14  ;;  %v633_v29 = vmul.f32 %v1060_v42, %v1060_v42 }
 0x101   : > { %v901_v11 = vpop.f32.mrb[6].mxu1  ;;  %576 = vst.msk [vmem:[%s1044_s12 + $0x24] sm:$0xf] %vm566_vm2, %v829_v2  ;;  %v832_v28 = vpack.c.bf16 %v487_v18, %v487_v18  ;;  %v601_v30 = vsel %vm583_vm3, %v474_v58, 0.0  ;;  %v603_v32 = vsel %vm583_vm3, %v1060_v42, 0.0  ;;  %v634_v35 = vmul.f32 %v1065_v54, %v1065_v54 }
 0x102   : > { %v490_v25 = vpop.f32.mrb[7].mxu1  ;;  %v600_v26 = vadd.f32 %v599_v17, %v598_v20  ;;  %v653_v27 = vadd.f32 %v652_v21, %v651_v19  ;;  %581 = vst.msk [vmem:[%s1044_s12 + $0x38] sm:$0xf] %vm566_vm2, %v834_v24  ;;  %v835_v31 = vpack.c.bf16 %v901_v11, %v901_v11  ;;  %v656_v36 = vsel %vm583_vm3, %v632_v23, 0.0 }
 0x103   : > { %579 = vst.msk [vmem:[%s1044_s12 + $0x30] sm:$0xf] %vm566_vm2, %v832_v28  ;;  %v635_v37 = vmul.f32 %v487_v18, %v487_v18  ;;  %v833_v38 = vpack.c.bf16 %v490_v25, %v490_v25  ;;  %v658_v41 = vsel %vm583_vm3, %v633_v29, 0.0  ;;  %v605_v42 = vsel %vm583_vm3, %v1065_v54, 0.0 }
 0x104   : > { %v655_v33 = vadd.f32 %v654_v22, %v653_v27  ;;  %v602_v34 = vadd.f32 %v601_v30, %v600_v26  ;;  %582 = vst.msk [vmem:[%s1044_s12 + $0x3c] sm:$0xf] %vm566_vm2, %v835_v31  ;;  %v607_v43 = vsel %vm583_vm3, %v487_v18, 0.0  ;;  %v660_v46 = vsel %vm583_vm3, %v634_v35, 0.0 }
 0x105   : > { %580 = vst.msk [vmem:[%s1044_s12 + $0x34] sm:$0xf] %vm566_vm2, %v833_v38  ;;  %v662_v47 = vsel %vm583_vm3, %v635_v37, 0.0  ;;  %v636_v48 = vmul.f32 %v490_v25, %v490_v25  ;;  %v637_v51 = vmul.f32 %v900_v14, %v900_v14  ;;  %v609_v52 = vsel %vm583_vm3, %v490_v25, 0.0 }
 0x106   : > { %v604_v39 = vadd.f32 %v603_v32, %v602_v34  ;;  %v657_v40 = vadd.f32 %v656_v36, %v655_v33  ;;  %v611_v54 = vsel %vm583_vm3, %v900_v14, 0.0  ;;  %v638_v56 = vmul.f32 %v901_v11, %v901_v11 }
 0x107   : > { %v664_v57 = vsel %vm583_vm3, %v636_v48, 0.0  ;;  %v666_v60 = vsel %vm583_vm3, %v637_v51, 0.0  ;;  %v613_v61 = vsel %vm583_vm3, %v901_v11, 0.0 }
 0x108   : > { %v659_v44 = vadd.f32 %v658_v41, %v657_v40  ;;  %v606_v45 = vadd.f32 %v605_v42, %v604_v39  ;;  %v668_v0 = vsel %vm583_vm3, %v638_v56, 0.0 }
 0x10a   : > { %v608_v49 = vadd.f32 %v607_v43, %v606_v45  ;;  %v661_v50 = vadd.f32 %v660_v46, %v659_v44 }
 0x10c   : > { %v663_v53 = vadd.f32 %v662_v47, %v661_v50  ;;  %v610_v55 = vadd.f32 %v609_v52, %v608_v49 }
 0x10e   : > { %v612_v58 = vadd.f32 %v611_v54, %v610_v55  ;;  %v665_v59 = vadd.f32 %v664_v57, %v663_v53 }
 0x110   : > { %v614_v62 = vadd.f32 %v613_v61, %v612_v58  ;;  %v667_v63 = vadd.f32 %v666_v60, %v665_v59 }
 0x112   : > { %v615_v1 = vrot.slane %v614_v62, 4  ;;  %v669_v3 = vadd.f32 %v668_v0, %v667_v63 }
 0x114   : > { %v616_v4 = vadd.f32 %v615_v1, %v614_v62  ;;  %v670_v5 = vrot.slane %v669_v3, 4 }
 0x116   : > { %v617_v6 = vrot.slane %v616_v4, 2  ;;  %v671_v7 = vadd.f32 %v670_v5, %v669_v3 }
 0x118   : > { %v618_v8 = vadd.f32 %v617_v6, %v616_v4  ;;  %v672_v9 = vrot.slane %v671_v7, 2 }
 0x11a   : > { %v619_v10 = vrot.slane %v618_v8, 1  ;;  %v673_v12 = vadd.f32 %v672_v9, %v671_v7 }
 0x11c   : > { %v620_v13 = vadd.f32 %v619_v10, %v618_v8  ;;  %v674_v14 = vrot.slane %v673_v12, 1 }
 0x11e   : > { %622 = vst.msk [vmem:[%s268_s15] sm:$0x1] %vm621_vm4, %v620_v13  ;;  %v675_v15 = vadd.f32 %v674_v14, %v673_v12 }
 0x120   : > { %676 = vst.msk [vmem:[%s271_s18] sm:$0x1] %vm621_vm4, %v675_v15 }
 0x121 PF: > { %s17_s21 = sadd.s32 1, %s920_s21  }
 0x122   : > { %p14_p5 = scmp.ge.s32.totalorder %s17_s21, 6  }
 0x124   :  { %16 = sbr.rel (!%p14_p5) target bundleno = 1 (0x1), region = 90 }

// kernel: id_block.4
= control target key start
LH: loop header
LB: loop body
LE: loop exit
PB: predicated region body
PF: predicated region fallthrough
CT: control target
= control target key end

     0   :  { %s774_s15 = smov 0   ;;  %s911_s0 = inlined_call_operand.vmem [shape: f32[512,4], index: 0, kind: input, shape index: {}]   ;;  %s912_s1 = inlined_call_operand.vmem [shape: bf16[4,8], index: 1, kind: input, shape index: {}]   ;;  %s913_s2 = inlined_call_operand.vmem [shape: bf16[512,8], index: 2, kind: output, shape index: {0}]   ;;  %s914_s3 = inlined_call_operand.vmem [shape: f32[4,1,8], index: 3, kind: output, shape index: {1}]   ;;  %s915_s4 = inlined_call_operand.vmem [shape: f32[4,1,8], index: 4, kind: output, shape index: {2}]  }
   0x1 LB: > { %s780_s16 = sadd.s32 4294967295, %s747_s15   ;;  %p655_p0 = scmp.ge.s32.totalorder %s747_s15, 1  ;;  %s747_s15 = sphi %s774_s15, %s15_s15  }
   0x2   : > { %p168_p1 = scmp.lt.s32.totalorder %s747_s15, 5 }
   0x4   : > { %p169_p2 = pnand %p655_p0, %p168_p1 }
   0x5   : > { %v243_v0 = vld [vmem:[%s912_s1] sm:$0x3] (!%p169_p2)  ;;  %vm269_vm0 = vcmask (!%p169_p2), 1041408   ;;  %s656_s19 = sshll.u32 (!%p169_p2), %s780_s16, 4  ;;  %vm244_vm1 = vcmask (!%p169_p2), 31744   ;;  %vm434_vm2 = vcmask (!%p169_p2), 60416  }
   0x6   : > { %172 = sbr.rel (%p169_p2) target bundleno = 281 (0x119), region = 28  ;;  %731 = vmatprep.subr.msk.bf16.mxu0 (!%p169_p2), %vm269_vm0, %v243_v0  ;;  %v271_v1 = vsel (!%p169_p2), %vm269_vm0, %v243_v0, 0  ;;  %p201_p3 = scmp.lt.s32.totalorder (!%p169_p2), %s656_s19, 63  ;;  %732 = vmatprep.subr.msk.bf16.mxu1 (!%p169_p2), %vm269_vm0, %v243_v0  ;;  %vm451_vm3 = vcmask (!%p169_p2), 64512   ;;  %vm489_vm4 = vcmask (!%p169_p2), 57344  }
   0x7   : > { %712 = vmatpush3.bf16.msra.mxu0 (!%p169_p2), %v271_v1  ;;  %730 = vmatpush3.bf16.msra.mxu1 (!%p169_p2), %v271_v1  ;;  %p212_p4 = scmp.lt.s32.totalorder (!%p169_p2), %s780_s16, 3 }
   0xd   : > { %s917_s19 = smov (!%p201_p3, %s656_s19), 63  ;;  %s919_s16 = smov (!%p212_p4, %s780_s16), 3 }
   0xe   : > { %s657_s20 = sshll.u32 %s917_s19, 3  ;;  %s659_s24 = sshll.u32 %s917_s19, 2 }
   0xf   : > { %s204_s23 = scalar_lea.vmem %s911_s0, %s657_s20  ;;  %s806_s27 = scalar_lea.vmem %s913_s2, %s659_s24 }
  0x10   : > { %v219_v2 = vld [vmem:[%s204_s23] sm:$0xff]  ;;  %v220_v3 = vld [vmem:[%s204_s23 + $0x8] sm:$0xff]  ;;  %v221_v4 = vld [vmem:[%s204_s23 + $0x10] sm:$0xff]  ;;  %s214_s30 = scalar_lea.vmem %s914_s3, %s919_s16  ;;  %s217_s7 = scalar_lea.vmem %s915_s4, %s919_s16 }
  0x11   : > { %v235_v5 = vpack.c.bf16 %v220_v3, %v219_v2  ;;  %v222_v6 = vld [vmem:[%s204_s23 + $0x18] sm:$0xff]  ;;  %v223_v7 = vld [vmem:[%s204_s23 + $0x20] sm:$0xff]  ;;  %v224_v8 = vld [vmem:[%s204_s23 + $0x28] sm:$0xff] }
  0x12   : > { %v236_v9 = vpack.c.bf16 %v222_v6, %v221_v4  ;;  %v237_v10 = vpack.c.bf16 %v224_v8, %v223_v7  ;;  %v227_v11 = vld [vmem:[%s204_s23 + $0x40] sm:$0xff]  ;;  %v228_v12 = vld [vmem:[%s204_s23 + $0x48] sm:$0xff]  ;;  %v229_v13 = vld [vmem:[%s204_s23 + $0x50] sm:$0xff] }
  0x13   : > { %713 = vmatprep.mubr.msk.bf16.mxu0 %vm244_vm1, %v235_v5  ;;  %v230_v14 = vld [vmem:[%s204_s23 + $0x58] sm:$0xff]  ;;  %v239_v15 = vpack.c.bf16 %v228_v12, %v227_v11  ;;  %v231_v17 = vld [vmem:[%s204_s23 + $0x60] sm:$0xff]  ;;  %v232_v18 = vld [vmem:[%s204_s23 + $0x68] sm:$0xff] }
  0x14   : > { %714 = vmatmul.mubr.msk.bf16.vlgmr.msra.gmra.mrb[0].mxu0 %vm244_vm1, %v236_v9  ;;  %v240_v16 = vpack.c.bf16 %v230_v14, %v229_v13  ;;  %v225_v19 = vld [vmem:[%s204_s23 + $0x30] sm:$0xff]  ;;  %v226_v20 = vld [vmem:[%s204_s23 + $0x38] sm:$0xff]  ;;  %v241_v21 = vpack.c.bf16 %v232_v18, %v231_v17 }
  0x15   : > { %717 = vmatprep.mubr.msk.bf16.mxu0 %vm244_vm1, %v237_v10  ;;  %721 = vmatprep.mubr.msk.bf16.mxu1 %vm244_vm1, %v239_v15  ;;  %v238_v22 = vpack.c.bf16 %v226_v20, %v225_v19  ;;  %v233_v23 = vld [vmem:[%s204_s23 + $0x70] sm:$0xff]  ;;  %v234_v24 = vld [vmem:[%s204_s23 + $0x78] sm:$0xff] }
  0x16   : > { %722 = vmatmul.mubr.msk.bf16.vlgmr.msra.gmra.mrb[0].mxu1 %vm244_vm1, %v240_v16  ;;  %v242_v25 = vpack.c.bf16 %v234_v24, %v233_v23 }
  0x17   : > { %725 = vmatprep.mubr.msk.bf16.mxu1 %vm244_vm1, %v241_v21 }
  0x1c   : > { %718 = vmatmul.mubr.msk.bf16.gmra.mrb[4].mxu0 %vm244_vm1, %v238_v22 }
  0x1e   : > { %726 = vmatmul.mubr.msk.bf16.gmra.mrb[4].mxu1 %vm244_vm1, %v242_v25 }
  0xe7   : > { %v715_v26 = vpop.f32.mrb[0].mxu0 }
  0xe8   : > { %v688_v27 = vpack.c.bf16 %v715_v26, %v715_v26  ;;  %v307_v28 = vpop.f32.mrb[1].mxu0  ;;  %v493_v32 = vmul.f32 %v715_v26, %v715_v26  ;;  %v455_v45 = vsel %vm451_vm3, %v715_v26, 0.0 }
  0xe9   : > { %v686_v29 = vpack.c.bf16 %v307_v28, %v307_v28  ;;  %v491_v30 = vmul.f32 %v307_v28, %v307_v28  ;;  %v716_v31 = vpop.f32.mrb[2].mxu0  ;;  %v810_v35 = vpop.f32.mrb[0].mxu1  ;;  %v452_v36 = vsel %vm451_vm3, %v307_v28, 0.0 }
  0xea   : > { %437 = vst.msk [vmem:[%s806_s27 + $0x8] sm:$0xf] %vm434_vm2, %v688_v27  ;;  %v689_v33 = vpack.c.bf16 %v716_v31, %v716_v31  ;;  %v310_v34 = vpop.f32.mrb[3].mxu0  ;;  %v339_v40 = vpop.f32.mrb[1].mxu1  ;;  %v494_v41 = vmul.f32 %v716_v31, %v716_v31  ;;  %v696_v43 = vpack.c.bf16 %v810_v35, %v810_v35  ;;  %v510_v53 = vsel %vm451_vm3, %v493_v32, 0.0 }
  0xeb   : > { %435 = vst.msk [vmem:[%s806_s27] sm:$0xf] %vm434_vm2, %v686_v29  ;;  %v687_v37 = vpack.c.bf16 %v310_v34, %v310_v34  ;;  %v453_v38 = vsel %vm451_vm3, %v310_v34, 0.0  ;;  %v492_v39 = vmul.f32 %v310_v34, %v310_v34  ;;  %v820_v44 = vpop.f32.mrb[2].mxu1  ;;  %v507_v46 = vsel %vm451_vm3, %v491_v30, 0.0 }
  0xec   : > { %438 = vst.msk [vmem:[%s806_s27 + $0xc] sm:$0xf] %vm434_vm2, %v689_v33  ;;  %v454_v42 = vadd.f32 %v453_v38, %v452_v36  ;;  %v694_v48 = vpack.c.bf16 %v339_v40, %v339_v40  ;;  %v827_v49 = vpop.f32.mrb[3].mxu1  ;;  %445 = vst.msk [vmem:[%s806_s27 + $0x28] sm:$0xf] %vm434_vm2, %v696_v43  ;;  %v697_v52 = vpack.c.bf16 %v820_v44, %v820_v44  ;;  %v457_v56 = vsel %vm451_vm3, %v716_v31, 0.0 }
  0xed   : > { %436 = vst.msk [vmem:[%s806_s27 + $0x4] sm:$0xf] %vm434_vm2, %v687_v37  ;;  %v508_v47 = vsel %vm451_vm3, %v492_v39, 0.0  ;;  %v695_v55 = vpack.c.bf16 %v827_v49, %v827_v49  ;;  %v512_v57 = vsel %vm451_vm3, %v494_v41, 0.0  ;;  %v499_v16 = vmul.f32 %v339_v40, %v339_v40 }
  0xee   : > { %v456_v50 = vadd.f32 %v455_v45, %v454_v42  ;;  %v509_v51 = vadd.f32 %v508_v47, %v507_v46  ;;  %443 = vst.msk [vmem:[%s806_s27 + $0x20] sm:$0xf] %vm434_vm2, %v694_v48  ;;  %446 = vst.msk [vmem:[%s806_s27 + $0x2c] sm:$0xf] %vm434_vm2, %v697_v52  ;;  %v467_v27 = vsel %vm451_vm3, %v339_v40, 0.0  ;;  %v500_v33 = vmul.f32 %v827_v49, %v827_v49 }
  0xef   : > { %v719_v54 = vpop.f32.mrb[4].mxu0  ;;  %444 = vst.msk [vmem:[%s806_s27 + $0x24] sm:$0xf] %vm434_vm2, %v695_v55  ;;  %v522_v32 = vsel %vm451_vm3, %v499_v16, 0.0  ;;  %v501_v38 = vmul.f32 %v810_v35, %v810_v35  ;;  %v469_v39 = vsel %vm451_vm3, %v827_v49, 0.0  ;;  %v471_v42 = vsel %vm451_vm3, %v810_v35, 0.0 }
  0xf0   : > { %v511_v58 = vadd.f32 %v510_v53, %v509_v51  ;;  %v692_v59 = vpack.c.bf16 %v719_v54, %v719_v54  ;;  %v323_v60 = vpop.f32.mrb[5].mxu0  ;;  %v458_v62 = vadd.f32 %v457_v56, %v456_v50  ;;  %v497_v10 = vmul.f32 %v719_v54, %v719_v54 }
  0xf1   : > { %v690_v61 = vpack.c.bf16 %v323_v60, %v323_v60  ;;  %v459_v63 = vsel %vm451_vm3, %v323_v60, 0.0  ;;  %v495_v0 = vmul.f32 %v323_v60, %v323_v60  ;;  %v720_v1 = vpop.f32.mrb[6].mxu0  ;;  %v847_v5 = vpop.f32.mrb[4].mxu1  ;;  %v463_v18 = vsel %vm451_vm3, %v719_v54, 0.0 }
  0xf2   : > { %441 = vst.msk [vmem:[%s806_s27 + $0x18] sm:$0xf] %vm434_vm2, %v692_v59  ;;  %v513_v2 = vadd.f32 %v512_v57, %v511_v58  ;;  %v693_v3 = vpack.c.bf16 %v720_v1, %v720_v1  ;;  %v326_v4 = vpop.f32.mrb[7].mxu0  ;;  %v460_v6 = vadd.f32 %v459_v63, %v458_v62  ;;  %v355_v9 = vpop.f32.mrb[5].mxu1  ;;  %v498_v19 = vmul.f32 %v720_v1, %v720_v1 }
  0xf3   : > { %439 = vst.msk [vmem:[%s806_s27 + $0x10] sm:$0xf] %vm434_vm2, %v690_v61  ;;  %v514_v7 = vsel %vm451_vm3, %v495_v0, 0.0  ;;  %v691_v8 = vpack.c.bf16 %v326_v4, %v326_v4  ;;  %v461_v12 = vsel %vm451_vm3, %v326_v4, 0.0  ;;  %v496_v13 = vmul.f32 %v326_v4, %v326_v4  ;;  %v728_v14 = vpop.f32.mrb[6].mxu1 }
  0xf4   : > { %v515_v11 = vadd.f32 %v514_v7, %v513_v2  ;;  %442 = vst.msk [vmem:[%s806_s27 + $0x1c] sm:$0xf] %vm434_vm2, %v693_v3  ;;  %v462_v15 = vadd.f32 %v461_v12, %v460_v6  ;;  %v358_v17 = vpop.f32.mrb[7].mxu1  ;;  %v700_v21 = vpack.c.bf16 %v847_v5, %v847_v5  ;;  %v698_v24 = vpack.c.bf16 %v355_v9, %v355_v9 }
  0xf5   : > { %440 = vst.msk [vmem:[%s806_s27 + $0x14] sm:$0xf] %vm434_vm2, %v691_v8  ;;  %v516_v20 = vsel %vm451_vm3, %v496_v13, 0.0  ;;  %v518_v25 = vsel %vm451_vm3, %v497_v10, 0.0  ;;  %v465_v26 = vsel %vm451_vm3, %v720_v1, 0.0  ;;  %v701_v28 = vpack.c.bf16 %v728_v14, %v728_v14 }
  0xf6   : > { %v464_v22 = vadd.f32 %v463_v18, %v462_v15  ;;  %v517_v23 = vadd.f32 %v516_v20, %v515_v11  ;;  %449 = vst.msk [vmem:[%s806_s27 + $0x38] sm:$0xf] %vm434_vm2, %v700_v21  ;;  %447 = vst.msk [vmem:[%s806_s27 + $0x30] sm:$0xf] %vm434_vm2, %v698_v24  ;;  %v520_v31 = vsel %vm451_vm3, %v498_v19, 0.0  ;;  %v699_v34 = vpack.c.bf16 %v358_v17, %v358_v17 }
  0xf7   : > { %450 = vst.msk [vmem:[%s806_s27 + $0x3c] sm:$0xf] %vm434_vm2, %v701_v28  ;;  %v502_v43 = vmul.f32 %v820_v44, %v820_v44  ;;  %v524_v45 = vsel %vm451_vm3, %v500_v33, 0.0  ;;  %v503_v46 = vmul.f32 %v355_v9, %v355_v9  ;;  %v526_v50 = vsel %vm451_vm3, %v501_v38, 0.0 }
  0xf8   : > { %v519_v29 = vadd.f32 %v518_v25, %v517_v23  ;;  %v466_v30 = vadd.f32 %v465_v26, %v464_v22  ;;  %448 = vst.msk [vmem:[%s806_s27 + $0x34] sm:$0xf] %vm434_vm2, %v699_v34  ;;  %v473_v49 = vsel %vm451_vm3, %v820_v44, 0.0  ;;  %v475_v51 = vsel %vm451_vm3, %v355_v9, 0.0 }
  0xf9   : > { %v528_v54 = vsel %vm451_vm3, %v502_v43, 0.0  ;;  %v530_v35 = vsel %vm451_vm3, %v503_v46, 0.0  ;;  %v504_v55 = vmul.f32 %v358_v17, %v358_v17  ;;  %v505_v58 = vmul.f32 %v847_v5, %v847_v5 }
  0xfa   : > { %v468_v36 = vadd.f32 %v467_v27, %v466_v30  ;;  %v521_v37 = vadd.f32 %v520_v31, %v519_v29  ;;  %v477_v59 = vsel %vm451_vm3, %v358_v17, 0.0  ;;  %v479_v44 = vsel %vm451_vm3, %v847_v5, 0.0 }
  0xfb   : > { %v506_v62 = vmul.f32 %v728_v14, %v728_v14  ;;  %v532_v63 = vsel %vm451_vm3, %v504_v55, 0.0  ;;  %v534_v2 = vsel %vm451_vm3, %v505_v58, 0.0  ;;  %v481_v3 = vsel %vm451_vm3, %v728_v14, 0.0 }
  0xfc   : > { %v523_v40 = vadd.f32 %v522_v32, %v521_v37  ;;  %v470_v41 = vadd.f32 %v469_v39, %v468_v36 }
  0xfd   : > { %v536_v7 = vsel %vm451_vm3, %v506_v62, 0.0 }
  0xfe   : > { %v472_v47 = vadd.f32 %v471_v42, %v470_v41  ;;  %v525_v48 = vadd.f32 %v524_v45, %v523_v40 }
 0x100   : > { %v527_v52 = vadd.f32 %v526_v50, %v525_v48  ;;  %v474_v53 = vadd.f32 %v473_v49, %v472_v47 }
 0x102   : > { %v476_v56 = vadd.f32 %v475_v51, %v474_v53  ;;  %v529_v57 = vadd.f32 %v528_v54, %v527_v52 }
 0x104   : > { %v531_v60 = vadd.f32 %v530_v35, %v529_v57  ;;  %v478_v61 = vadd.f32 %v477_v59, %v476_v56 }
 0x106   : > { %v480_v0 = vadd.f32 %v479_v44, %v478_v61  ;;  %v533_v1 = vadd.f32 %v532_v63, %v531_v60 }
 0x108   : > { %v482_v4 = vadd.f32 %v481_v3, %v480_v0  ;;  %v535_v6 = vadd.f32 %v534_v2, %v533_v1 }
 0x10a   : > { %v483_v8 = vrot.slane %v482_v4, 4  ;;  %v537_v9 = vadd.f32 %v536_v7, %v535_v6 }
 0x10c   : > { %v484_v10 = vadd.f32 %v483_v8, %v482_v4  ;;  %v538_v11 = vrot.slane %v537_v9, 4 }
 0x10e   : > { %v485_v5 = vrot.slane %v484_v10, 2  ;;  %v539_v12 = vadd.f32 %v538_v11, %v537_v9 }
 0x110   : > { %v486_v13 = vadd.f32 %v485_v5, %v484_v10  ;;  %v540_v15 = vrot.slane %v539_v12, 2 }
 0x112   : > { %v487_v16 = vrot.slane %v486_v13, 1  ;;  %v541_v17 = vadd.f32 %v540_v15, %v539_v12 }
 0x114   : > { %v488_v14 = vadd.f32 %v487_v16, %v486_v13  ;;  %v542_v18 = vrot.slane %v541_v17, 1 }
 0x116   : > { %490 = vst.msk [vmem:[%s214_s30] sm:$0x1] %vm489_vm4, %v488_v14  ;;  %v543_v19 = vadd.f32 %v542_v18, %v541_v17 }
 0x118   : > { %544 = vst.msk [vmem:[%s217_s7] sm:$0x1] %vm489_vm4, %v543_v19 }
 0x119 PF: > { %s15_s15 = sadd.s32 1, %s747_s15  }
 0x11a   : > { %p12_p5 = scmp.ge.s32.totalorder %s15_s15, 6  }
 0x11c   :  { %14 = sbr.rel (!%p12_p5) target bundleno = 1 (0x1), region = 82 }

// kernel: id_block.7
= control target key start
LH: loop header
LB: loop body
LE: loop exit
PB: predicated region body
PF: predicated region fallthrough
CT: control target
= control target key end

     0   :  { %s529_s15 = smov 0   ;;  %s615_s0 = inlined_call_operand.vmem [shape: bf16[512,4], index: 0, kind: input, shape index: {}]   ;;  %s616_s1 = inlined_call_operand.vmem [shape: f32[1,4], index: 1, kind: input, shape index: {}]   ;;  %s617_s2 = inlined_call_operand.vmem [shape: f32[1,4], index: 2, kind: input, shape index: {}]   ;;  %s618_s3 = inlined_call_operand.vmem [shape: f32[512,4], index: 3, kind: input, shape index: {}, may-alias: {3,4}]   ;;  %s619_s4 = inlined_call_operand.vmem [shape: f32[512,4], index: 4, kind: output, shape index: {}, may-alias: {3,4}]  }
   0x1 LB: > { %s434_s16 = sadd.s32 4294967295, %s502_s15   ;;  %p438_p0 = scmp.ge.s32.totalorder %s502_s15, 1  ;;  %s502_s15 = sphi %s529_s15, %s14_s15  }
   0x2   : > { %p174_p1 = scmp.lt.s32.totalorder %s502_s15, 5 }
   0x4   : > { %p175_p2 = pnand %p438_p0, %p174_p1 }
   0x5   : > { %s439_s17 = sshll.u32 (!%p175_p2), %s434_s16, 4  ;;  %v445_v16 = vld [vmem:[%s616_s1] ss:$0 sm:$0xff] (!%p175_p2)  ;;  %vm349_vm0 = vcmask (!%p175_p2), 31744  }
   0x6   : > { %178 = sbr.rel (%p175_p2) target bundleno = 43 (0x2b), region = 36  ;;  %p206_p3 = scmp.lt.s32.totalorder (!%p175_p2), %s439_s17, 63  ;;  %v446_v33 = vld [vmem:[%s617_s2] ss:$0 sm:$0xff] (!%p175_p2) }
   0xd   : > { %s621_s17 = smov (!%p206_p3, %s439_s17), 63 }
   0xe   : > { %s440_s18 = sshll.u32 %s621_s17, 2  ;;  %s442_s22 = sshll.u32 %s621_s17, 3 }
   0xf   : > { %s209_s21 = scalar_lea.vmem %s615_s0, %s440_s18  ;;  %s552_s27 = scalar_lea.vmem %s618_s3, %s442_s22 }
  0x10   : > { %v450_v0 = vld [vmem:[%s209_s21] sm:$0xff]   ;;  %v481_v1 = vld [vmem:[%s209_s21 + $0x8] sm:$0xff]   ;;  %v482_v2 = vld [vmem:[%s209_s21 + $0x10] sm:$0xff]   ;;  %s578_s6 = scalar_lea.vmem %s619_s4, %s442_s22 }
  0x11   : > { %v451_v3 = vunpack.c.l.bf16 %v450_v0  ;;  %v452_v4 = vunpack.c.h.bf16 %v450_v0  ;;  %v455_v5 = vunpack.c.l.bf16 %v481_v1  ;;  %v456_v6 = vunpack.c.h.bf16 %v481_v1  ;;  %v483_v7 = vld [vmem:[%s209_s21 + $0x18] sm:$0xff]   ;;  %v484_v8 = vld [vmem:[%s209_s21 + $0x20] sm:$0xff]   ;;  %v485_v9 = vld [vmem:[%s209_s21 + $0x28] sm:$0xff]  }
  0x12   : > { %v459_v10 = vunpack.c.l.bf16 %v482_v2  ;;  %v460_v11 = vunpack.c.h.bf16 %v482_v2  ;;  %v463_v12 = vunpack.c.l.bf16 %v483_v7  ;;  %v464_v13 = vunpack.c.h.bf16 %v483_v7  ;;  %v486_v14 = vld [vmem:[%s209_s21 + $0x30] sm:$0xff]   ;;  %v487_v15 = vld [vmem:[%s209_s21 + $0x38] sm:$0xff]   ;;  %v301_v42 = vld [vmem:[%s552_s27] sm:$0xff] }
  0x13   : > { %v467_v17 = vunpack.c.l.bf16 %v484_v8  ;;  %v468_v18 = vunpack.c.h.bf16 %v484_v8  ;;  %v471_v19 = vunpack.c.l.bf16 %v485_v9  ;;  %v472_v20 = vunpack.c.h.bf16 %v485_v9  ;;  %v302_v47 = vld [vmem:[%s552_s27 + $0x8] sm:$0xff]  ;;  %v303_v48 = vld [vmem:[%s552_s27 + $0x10] sm:$0xff]  ;;  %v304_v49 = vld [vmem:[%s552_s27 + $0x18] sm:$0xff] }
  0x14   : > { %v475_v21 = vunpack.c.l.bf16 %v486_v14  ;;  %v476_v22 = vunpack.c.h.bf16 %v486_v14  ;;  %v479_v23 = vunpack.c.l.bf16 %v487_v15  ;;  %v480_v24 = vunpack.c.h.bf16 %v487_v15  ;;  %v305_v54 = vld [vmem:[%s552_s27 + $0x20] sm:$0xff]  ;;  %v306_v55 = vld [vmem:[%s552_s27 + $0x28] sm:$0xff]  ;;  %v307_v56 = vld [vmem:[%s552_s27 + $0x30] sm:$0xff] }
  0x15   : > { %v262_v25 = vmul.f32 %v451_v3, %v445_v16  ;;  %v263_v26 = vmul.f32 %v452_v4, %v445_v16  ;;  %v264_v27 = vmul.f32 %v455_v5, %v445_v16  ;;  %v265_v28 = vmul.f32 %v456_v6, %v445_v16  ;;  %v308_v61 = vld [vmem:[%s552_s27 + $0x38] sm:$0xff]  ;;  %v309_v62 = vld [vmem:[%s552_s27 + $0x40] sm:$0xff]  ;;  %v310_v63 = vld [vmem:[%s552_s27 + $0x48] sm:$0xff] }
  0x16   : > { %v266_v29 = vmul.f32 %v459_v10, %v445_v16  ;;  %v267_v30 = vmul.f32 %v460_v11, %v445_v16  ;;  %v268_v31 = vmul.f32 %v463_v12, %v445_v16  ;;  %v269_v32 = vmul.f32 %v464_v13, %v445_v16  ;;  %v311_v4 = vld [vmem:[%s552_s27 + $0x50] sm:$0xff]  ;;  %v312_v5 = vld [vmem:[%s552_s27 + $0x58] sm:$0xff]  ;;  %v313_v6 = vld [vmem:[%s552_s27 + $0x60] sm:$0xff] }
  0x17   : > { %v270_v34 = vmul.f32 %v467_v17, %v445_v16  ;;  %v271_v35 = vmul.f32 %v468_v18, %v445_v16  ;;  %v272_v36 = vmul.f32 %v471_v19, %v445_v16  ;;  %v273_v37 = vmul.f32 %v472_v20, %v445_v16  ;;  %v314_v7 = vld [vmem:[%s552_s27 + $0x68] sm:$0xff]  ;;  %v315_v8 = vld [vmem:[%s552_s27 + $0x70] sm:$0xff]  ;;  %v316_v9 = vld [vmem:[%s552_s27 + $0x78] sm:$0xff] }
  0x18   : > { %v274_v38 = vmul.f32 %v475_v21, %v445_v16  ;;  %v275_v39 = vmul.f32 %v476_v22, %v445_v16  ;;  %v276_v40 = vmul.f32 %v479_v23, %v445_v16  ;;  %v277_v41 = vmul.f32 %v480_v24, %v445_v16 }
  0x19   : > { %v285_v43 = vadd.f32 %v446_v33, %v262_v25  ;;  %v286_v44 = vadd.f32 %v446_v33, %v263_v26  ;;  %v287_v45 = vadd.f32 %v446_v33, %v264_v27  ;;  %v288_v46 = vadd.f32 %v446_v33, %v265_v28 }
  0x1a   : > { %v289_v50 = vadd.f32 %v446_v33, %v266_v29  ;;  %v290_v51 = vadd.f32 %v446_v33, %v267_v30  ;;  %v291_v52 = vadd.f32 %v446_v33, %v268_v31  ;;  %v292_v53 = vadd.f32 %v446_v33, %v269_v32 }
  0x1b   : > { %v293_v57 = vadd.f32 %v446_v33, %v270_v34  ;;  %v294_v58 = vadd.f32 %v446_v33, %v271_v35  ;;  %v295_v59 = vadd.f32 %v446_v33, %v272_v36  ;;  %v296_v60 = vadd.f32 %v446_v33, %v273_v37 }
  0x1c   : > { %v297_v0 = vadd.f32 %v446_v33, %v274_v38  ;;  %v298_v1 = vadd.f32 %v446_v33, %v275_v39  ;;  %v299_v2 = vadd.f32 %v446_v33, %v276_v40  ;;  %v300_v3 = vadd.f32 %v446_v33, %v277_v41 }
  0x1d   : > { %v317_v10 = vadd.f32 %v301_v42, %v285_v43  ;;  %v318_v11 = vadd.f32 %v302_v47, %v286_v44  ;;  %v319_v12 = vadd.f32 %v303_v48, %v287_v45  ;;  %v320_v13 = vadd.f32 %v304_v49, %v288_v46 }
  0x1e   : > { %v321_v14 = vadd.f32 %v305_v54, %v289_v50  ;;  %v322_v15 = vadd.f32 %v306_v55, %v290_v51  ;;  %v323_v16 = vadd.f32 %v307_v56, %v291_v52  ;;  %v324_v17 = vadd.f32 %v308_v61, %v292_v53 }
  0x1f   : > { %v325_v18 = vadd.f32 %v309_v62, %v293_v57  ;;  %v326_v19 = vadd.f32 %v310_v63, %v294_v58  ;;  %v327_v20 = vadd.f32 %v311_v4, %v295_v59  ;;  %v328_v21 = vadd.f32 %v312_v5, %v296_v60 }
  0x20   : > { %v329_v22 = vadd.f32 %v313_v6, %v297_v0  ;;  %v330_v23 = vadd.f32 %v314_v7, %v298_v1  ;;  %v331_v24 = vadd.f32 %v315_v8, %v299_v2  ;;  %v332_v25 = vadd.f32 %v316_v9, %v300_v3 }
  0x21   : > { %v333_v26 = vmax.f32 %v317_v10, 0.0  ;;  %v334_v27 = vmax.f32 %v318_v11, 0.0  ;;  %v335_v28 = vmax.f32 %v319_v12, 0.0  ;;  %v336_v29 = vmax.f32 %v320_v13, 0.0 }
  0x22   : > { %v337_v30 = vmax.f32 %v321_v14, 0.0  ;;  %v338_v31 = vmax.f32 %v322_v15, 0.0  ;;  %v339_v32 = vmax.f32 %v323_v16, 0.0  ;;  %v340_v33 = vmax.f32 %v324_v17, 0.0 }
  0x23   : > { %v341_v34 = vmax.f32 %v325_v18, 0.0  ;;  %v342_v35 = vmax.f32 %v326_v19, 0.0  ;;  %v343_v36 = vmax.f32 %v327_v20, 0.0  ;;  %v344_v37 = vmax.f32 %v328_v21, 0.0  ;;  %350 = vst.msk [vmem:[%s578_s6] sm:$0xff] %vm349_vm0, %v333_v26  ;;  %351 = vst.msk [vmem:[%s578_s6 + $0x8] sm:$0xff] %vm349_vm0, %v334_v27 }
  0x24   : > { %352 = vst.msk [vmem:[%s578_s6 + $0x10] sm:$0xff] %vm349_vm0, %v335_v28  ;;  %353 = vst.msk [vmem:[%s578_s6 + $0x18] sm:$0xff] %vm349_vm0, %v336_v29  ;;  %v345_v38 = vmax.f32 %v329_v22, 0.0  ;;  %v346_v39 = vmax.f32 %v330_v23, 0.0  ;;  %v347_v40 = vmax.f32 %v331_v24, 0.0  ;;  %v348_v41 = vmax.f32 %v332_v25, 0.0 }
  0x25   : > { %354 = vst.msk [vmem:[%s578_s6 + $0x20] sm:$0xff] %vm349_vm0, %v337_v30  ;;  %355 = vst.msk [vmem:[%s578_s6 + $0x28] sm:$0xff] %vm349_vm0, %v338_v31 }
  0x26   : > { %356 = vst.msk [vmem:[%s578_s6 + $0x30] sm:$0xff] %vm349_vm0, %v339_v32  ;;  %357 = vst.msk [vmem:[%s578_s6 + $0x38] sm:$0xff] %vm349_vm0, %v340_v33 }
  0x27   : > { %358 = vst.msk [vmem:[%s578_s6 + $0x40] sm:$0xff] %vm349_vm0, %v341_v34  ;;  %359 = vst.msk [vmem:[%s578_s6 + $0x48] sm:$0xff] %vm349_vm0, %v342_v35 }
  0x28   : > { %360 = vst.msk [vmem:[%s578_s6 + $0x50] sm:$0xff] %vm349_vm0, %v343_v36  ;;  %361 = vst.msk [vmem:[%s578_s6 + $0x58] sm:$0xff] %vm349_vm0, %v344_v37 }
  0x29   : > { %362 = vst.msk [vmem:[%s578_s6 + $0x60] sm:$0xff] %vm349_vm0, %v345_v38  ;;  %363 = vst.msk [vmem:[%s578_s6 + $0x68] sm:$0xff] %vm349_vm0, %v346_v39 }
  0x2a   : > { %364 = vst.msk [vmem:[%s578_s6 + $0x70] sm:$0xff] %vm349_vm0, %v347_v40  ;;  %365 = vst.msk [vmem:[%s578_s6 + $0x78] sm:$0xff] %vm349_vm0, %v348_v41 }
  0x2b PF: > { %s14_s15 = sadd.s32 1, %s502_s15  }
  0x2c   : > { %p11_p4 = scmp.ge.s32.totalorder %s14_s15, 6  }
  0x2e   :  { %13 = sbr.rel (!%p11_p4) target bundleno = 1 (0x1), region = 69 }

// kernel: id_block.5
= control target key start
LH: loop header
LB: loop body
LE: loop exit
PB: predicated region body
PF: predicated region fallthrough
CT: control target
= control target key end

     0   :  { %s4172_s21 = smov 0   ;;  %s5787_s0 = inlined_call_operand.vmem [shape: bf16[2,16,16,8], index: 0, kind: input, shape index: {}]   ;;  %s5788_s1 = inlined_call_operand.vmem [shape: f32[1,8], index: 1, kind: input, shape index: {}]   ;;  %s5789_s2 = inlined_call_operand.vmem [shape: f32[1,8], index: 2, kind: input, shape index: {}]   ;;  %s5790_s3 = inlined_call_operand.vmem [shape: bf16[3,24,8], index: 3, kind: input, shape index: {}]   ;;  %s5791_s4 = inlined_call_operand.vmem [shape: bf16[2,16,16,8], index: 4, kind: output, shape index: {0}]   ;;  %s5792_s5 = inlined_call_operand.vmem [shape: f32[2,1,8], index: 5, kind: output, shape index: {1}]   ;;  %s5793_s6 = inlined_call_operand.vmem [shape: f32[2,1,8], index: 6, kind: output, shape index: {2}]  }
   0x1 LB: > { %s3500_s22 = sadd.s32 4294967295, %s4132_s21   ;;  %p3504_p0 = scmp.ge.s32.totalorder %s4132_s21, 1  ;;  %s4132_s21 = sphi %s4172_s21, %s17_s21  }
   0x2   : > { %p217_p1 = scmp.lt.s32.totalorder %s4132_s21, 3 }
   0x4   : > { %p218_p2 = pnand %p3504_p0, %p217_p1 }
   0x6   : > { %221 = sbr.rel (%p218_p2) target bundleno = 650 (0x28a), region = 36 }
   0xd   : > { %p253_p3 = scmp.lt.s32.totalorder %s3500_s22, 1  ;;  %vm273_vm0 = vcmask 57344   ;;  %vm280_vm1 = vsmask.f32 256  ;;  %v288_v1 = vld [vmem:[#allocation2 + $0x18] sm:$0x1] }
   0xe   : > { %vm4182_vm2 = vmand %vm273_vm0, %vm280_vm1  ;;  %vm336_vm3 = vsmask.f32 7938  ;;  %v285_v4 = vld [vmem:[#allocation2 + $0xc] sm:$0x1]  ;;  %v291_v5 = vld [vmem:[#allocation2 + $0x24] sm:$0x1] }
   0xf   : > { %s5919_s22 = smov (!%p253_p3, %s3500_s22), 1  ;;  %v289_v2 = vsel %vm4182_vm2, 0, %v288_v1  ;;  %vm4192_vm4 = vmand %vm273_vm0, %vm336_vm3  ;;  %v4200_v6 = vld [vmem:[%s5788_s1] ss:$0 sm:$0xff]  ;;  %v286_v7 = vsel %vm4182_vm2, 0, %v285_v4  ;;  %v292_v8 = vsel %vm4182_vm2, 0, %v291_v5 }
  0x10   : > { %290 = vst [vmem:[#allocation2 + $0x18] sm:$0x1] %v289_v2  ;;  %s3709_s23 = sshll.u32 %s5919_s22, 7  ;;  %v294_v9 = vld [vmem:[#allocation2 + $0x30] sm:$0x1]  ;;  %vm270_vm5 = vcmask 60416   ;;  %s265_s10 = scalar_lea.vmem %s5792_s5, %s5919_s22 }
  0x11   : > { %s4211_s28 = scalar_lea.vmem %s5787_s0, %s3709_s23  ;;  %287 = vst [vmem:[#allocation2 + $0xc] sm:$0x1] %v286_v7  ;;  %293 = vst [vmem:[#allocation2 + $0x24] sm:$0x1] %v292_v8  ;;  %v295_v10 = vsel %vm4182_vm2, 0, %v294_v9  ;;  %s4134_s7 = smov 8  }
  0x12   : > { %v300_v11 = vld [vmem:[#allocation2 + $0x48] sm:$0x1]  ;;  %v344_v12 = vld [vmem:[#allocation2 + $0x20] sm:$0x1]  ;;  %v3840_v15 = vld [vmem:[%s4211_s28 + $0x10] sm:$0xff]   ;;  %s4135_s8 = smov 16   ;;  %s268_s13 = scalar_lea.vmem %s5793_s6, %s5919_s22 }
  0x13   : > { %v3839_v13 = vld [vmem:[%s4211_s28 + $0x8] sm:$0xff]   ;;  %v3776_v14 = vld [vmem:[%s4211_s28] sm:$0xff]   ;;  %296 = vst [vmem:[#allocation2 + $0x30] sm:$0x1] %v295_v10  ;;  %v301_v16 = vsel %vm4182_vm2, 0, %v300_v11  ;;  %v345_v17 = vsel %vm4192_vm4, 0, %v344_v12  ;;  %v3785_v24 = vunpack.c.l.bf16 %v3840_v15  ;;  %v3786_v25 = vunpack.c.h.bf16 %v3840_v15  ;;  %vm4253_vm8 = vmand %vm270_vm5, %vm336_vm3 }
  0x14   : > { %v3781_v18 = vunpack.c.l.bf16 %v3839_v13  ;;  %v3782_v19 = vunpack.c.h.bf16 %v3839_v13  ;;  %v3777_v20 = vunpack.c.l.bf16 %v3776_v14  ;;  %v3778_v21 = vunpack.c.h.bf16 %v3776_v14  ;;  %v3841_v22 = vld [vmem:[%s4211_s28 + $0x18] sm:$0xff]   ;;  %302 = vst [vmem:[#allocation2 + $0x48] sm:$0x1] %v301_v16  ;;  %346 = vst [vmem:[#allocation2 + $0x20] sm:$0x1] %v345_v17 }
  0x15   : > { %v4226_v23 = vld [vmem:[%s5789_s2] ss:$0 sm:$0xff]  ;;  %v3789_v26 = vunpack.c.l.bf16 %v3841_v22  ;;  %v3790_v27 = vunpack.c.h.bf16 %v3841_v22  ;;  %v467_v32 = vmul.f32 %v3785_v24, %v4200_v6  ;;  %v468_v33 = vmul.f32 %v3786_v25, %v4200_v6 }
  0x16   : > { %v465_v28 = vmul.f32 %v3781_v18, %v4200_v6  ;;  %v466_v29 = vmul.f32 %v3782_v19, %v4200_v6  ;;  %v463_v30 = vmul.f32 %v3777_v20, %v4200_v6  ;;  %v464_v31 = vmul.f32 %v3778_v21, %v4200_v6 }
  0x17   : > { %v469_v34 = vmul.f32 %v3789_v26, %v4200_v6  ;;  %v470_v35 = vmul.f32 %v3790_v27, %v4200_v6  ;;  %v506_v40 = vadd.f32 %v4226_v23, %v467_v32  ;;  %v507_v41 = vadd.f32 %v4226_v23, %v468_v33  ;;  %v994_v12 = vld [vmem:[#allocation2 + $0x18] sm:$0xf]  ;;  %v3843_v32 = vld [vmem:[%s4211_s28 + $0x28] sm:$0xff]  }
  0x18   : > { %v504_v36 = vadd.f32 %v4226_v23, %v465_v28  ;;  %v505_v37 = vadd.f32 %v4226_v23, %v466_v29  ;;  %v502_v38 = vadd.f32 %v4226_v23, %v463_v30  ;;  %v503_v39 = vadd.f32 %v4226_v23, %v464_v31  ;;  %v987_v20 = vld [vmem:[#allocation2 + $0xc] sm:$0xf]  ;;  %v1001_v31 = vld [vmem:[#allocation2 + $0x24] sm:$0xf] }
  0x19   : > { %v508_v42 = vadd.f32 %v4226_v23, %v469_v34  ;;  %v509_v43 = vadd.f32 %v4226_v23, %v470_v35  ;;  %v538_v48 = vmax.f32 %v506_v40, 0.0  ;;  %v539_v49 = vmax.f32 %v507_v41, 0.0 }
  0x1a   : > { %v536_v44 = vmax.f32 %v504_v36, 0.0  ;;  %v537_v45 = vmax.f32 %v505_v37, 0.0  ;;  %v534_v46 = vmax.f32 %v502_v38, 0.0  ;;  %v535_v47 = vmax.f32 %v503_v39, 0.0  ;;  %v297_v38 = vld [vmem:[#allocation2 + $0x3c] sm:$0x1] }
  0x1b   : > { %v540_v50 = vmax.f32 %v508_v42, 0.0  ;;  %v541_v51 = vmax.f32 %v509_v43, 0.0  ;;  %vm662_vm6 = vsmask.f32 4368  ;;  %v3715_v56 = vpack.c.bf16 %v538_v48, %v538_v48  ;;  %v998_v37 = vld [vmem:[#allocation2 + $0x20] sm:$0x1] }
  0x1c   : > { %v3713_v52 = vpack.c.bf16 %v536_v44, %v536_v44  ;;  %v3714_v53 = vpack.c.bf16 %v537_v45, %v537_v45  ;;  %v3711_v54 = vpack.c.bf16 %v534_v46, %v534_v46  ;;  %v3712_v55 = vpack.c.bf16 %v535_v47, %v535_v47  ;;  %vm4247_vm7 = vmor %vm280_vm1, %vm662_vm6  ;;  %v1008_v42 = vld [vmem:[#allocation2 + $0x30] sm:$0xf]  ;;  %v4277_v47 = vld [vmem:[%s4211_s28 + $0x20] sm:$0xff]  }
  0x1d   : > { %v3716_v57 = vpack.c.bf16 %v539_v49, %v539_v49  ;;  %v4244_v58 = vpack.c.bf16 %v540_v50, %v540_v50  ;;  %v699_v9 = vshrl.u32 %v3715_v56, 16  ;;  %v3718_v10 = vpack.c.bf16 %v541_v51, %v541_v51  ;;  %v347_v48 = vld [vmem:[#allocation2 + $0x2c] sm:$0x1] }
  0x1e   : > { %v682_v59 = vshrl.u32 %v3713_v52, 16  ;;  %v685_v60 = vshll.u32 %v3713_v52, 16  ;;  %v690_v61 = vshrl.u32 %v3714_v53, 16  ;;  %v693_v62 = vshll.u32 %v3714_v53, 16 }
  0x1f   : > { %v665_v63 = vshrl.u32 %v3711_v54, 16  ;;  %v668_v1 = vshll.u32 %v3711_v54, 16  ;;  %v673_v2 = vshrl.u32 %v3712_v55, 16  ;;  %v676_v4 = vshll.u32 %v3712_v55, 16 }
  0x20   : > { %v684_v7 = vrot.slane %v682_v59, 7  ;;  %v692_v8 = vrot.slane %v690_v61, 7  ;;  %v702_v15 = vshll.u32 %v3715_v56, 16  ;;  %v707_v16 = vshrl.u32 %v3716_v57, 16 }
  0x21   : > { %v667_v13 = vrot.slane %v665_v63, 7  ;;  %v4257_v14 = vrot.slane %v673_v2, 7  ;;  %v710_v21 = vshll.u32 %v3716_v57, 16  ;;  %v701_v29 = vrot.slane %v699_v9, 7 }
  0x22   : > { %v687_v17 = vor.u32 %v685_v60, %v684_v7  ;;  %v688_v18 = vrot.slane %v684_v7, 4  ;;  %v695_v19 = vor.u32 %v693_v62, %v692_v8  ;;  %v697_v22 = vrot.slane %v692_v8, 4 }
  0x23   : > { %v670_v24 = vor.u32 %v668_v1, %v667_v13  ;;  %v671_v25 = vrot.slane %v667_v13, 4  ;;  %v678_v26 = vor.u32 %v676_v4, %v4257_v14  ;;  %v4264_v30 = vrot.slane %v707_v16, 7 }
  0x24   : > { %v696_v27 = vsel %vm4247_vm7, %v688_v18, %v695_v19  ;;  %v995_v28 = vsel %vm4253_vm8, %v687_v17, %v994_v12  ;;  %v716_v35 = vshrl.u32 %v4244_v58, 16  ;;  %v719_v36 = vshll.u32 %v4244_v58, 16 }
  0x25   : > { %996 = vst [vmem:[#allocation2 + $0x18] sm:$0xf] %v995_v28  ;;  %997 = vst.msk [vmem:[#allocation2 + $0x1c] sm:$0xf] %vm270_vm5, %v696_v27  ;;  %v679_v33 = vsel %vm4247_vm7, %v671_v25, %v678_v26  ;;  %v988_v34 = vsel %vm4253_vm8, %v670_v24, %v987_v20  ;;  %v704_v39 = vor.u32 %v702_v15, %v701_v29  ;;  %v705_v40 = vrot.slane %v701_v29, 4 }
  0x26   : > { %989 = vst [vmem:[#allocation2 + $0xc] sm:$0xf] %v988_v34  ;;  %990 = vst.msk [vmem:[#allocation2 + $0x10] sm:$0xf] %vm270_vm5, %v679_v33  ;;  %v712_v41 = vor.u32 %v710_v21, %v4264_v30  ;;  %v718_v43 = vrot.slane %v716_v35, 7  ;;  %v724_v44 = vshrl.u32 %v3718_v10, 16  ;;  %v3797_v46 = vunpack.c.l.bf16 %v3843_v32 }
  0x27   : > { %v727_v45 = vshll.u32 %v3718_v10, 16  ;;  %v1002_v50 = vsel %vm4253_vm8, %v704_v39, %v1001_v31  ;;  %v3798_v51 = vunpack.c.h.bf16 %v3843_v32  ;;  %v999_v52 = vsel %vm4182_vm2, %v697_v22, %v998_v37 }
  0x28   : > { %v713_v49 = vsel %vm4247_vm7, %v705_v40, %v712_v41  ;;  %v680_v53 = vrot.slane %v4257_v14, 4  ;;  %1003 = vst [vmem:[#allocation2 + $0x24] sm:$0xf] %v1002_v50  ;;  %v721_v54 = vor.u32 %v719_v36, %v718_v43  ;;  %v4287_v55 = vrot.slane %v724_v44, 7  ;;  %1000 = vst [vmem:[#allocation2 + $0x20] sm:$0x1] %v999_v52 }
  0x29   : > { %1004 = vst.msk [vmem:[#allocation2 + $0x28] sm:$0xf] %vm270_vm5, %v713_v49  ;;  %v473_v56 = vmul.f32 %v3797_v46, %v4200_v6  ;;  %v714_v57 = vrot.slane %v4264_v30, 4  ;;  %v722_v58 = vrot.slane %v718_v43, 4  ;;  %v474_v59 = vmul.f32 %v3798_v51, %v4200_v6 }
  0x2a   : > { %v298_v60 = vsel %vm4182_vm2, 0, %v297_v38  ;;  %v729_v61 = vor.u32 %v727_v45, %v4287_v55  ;;  %v731_v62 = vrot.slane %v4287_v55, 4  ;;  %v1009_v63 = vsel %vm4253_vm8, %v721_v54, %v1008_v42  ;;  %v1022_v54 = vld [vmem:[#allocation2 + $0x48] sm:$0xf] }
  0x2b   : > { %v512_v1 = vadd.f32 %v4226_v23, %v473_v56  ;;  %299 = vst [vmem:[#allocation2 + $0x3c] sm:$0x1] %v298_v60  ;;  %1010 = vst [vmem:[#allocation2 + $0x30] sm:$0xf] %v1009_v63  ;;  %v513_v7 = vadd.f32 %v4226_v23, %v474_v59  ;;  %vm1392_vm9 = vsmask.f32 3328  ;;  %v3793_v8 = vunpack.c.l.bf16 %v4277_v47 }
  0x2c   : > { %v1103_v2 = vld [vmem:[#allocation2 + $0x18] sm:$0xf]  ;;  %v4299_v4 = vld [vmem:[#allocation2 + $0x1c] sm:$0xf]  ;;  %vm1393_vm10 = vsmask.f32 7440  ;;  %v3794_v9 = vunpack.c.h.bf16 %v4277_v47  ;;  %v730_v21 = vsel %vm4247_vm7, %v722_v58, %v729_v61 }
  0x2d   : > { %v348_v10 = vsel %vm4192_vm4, 0, %v347_v48  ;;  %v4307_v12 = vcombine.low %v1103_v2, %v4299_v4  ;;  %v1444_v13 = vshrl.u32 %v1103_v2, 16  ;;  %v1447_v15 = vshll.u32 %v1103_v2, 16  ;;  %v1101_v17 = vld [vmem:[#allocation2 + $0xc] sm:$0xf]  ;;  %vm4349_vm11 = vmor %vm1392_vm9, %vm1393_vm10 }
  0x2e   : > { %v1457_v16 = vshrl.u32 %v4299_v4, 16  ;;  %349 = vst [vmem:[#allocation2 + $0x2c] sm:$0x1] %v348_v10  ;;  %v4310_v18 = vld [vmem:[#allocation2 + $0x10] sm:$0xf]  ;;  %v1420_v19 = vshrl.u32 %v1101_v17, 16 }
  0x2f   : > { %v1423_v20 = vshll.u32 %v1101_v17, 16  ;;  %v544_v22 = vmax.f32 %v512_v1, 0.0  ;;  %v1446_v24 = vrot.slane %v1444_v13, 4  ;;  %v1449_v25 = vrot.slane %v1447_v15, 5  ;;  %1222 = vrot.lane.b32.xlu1 %v4307_v12, %s4134_s7  ;;  %1011 = vst.msk [vmem:[#allocation2 + $0x34] sm:$0xf] %vm270_vm5, %v730_v21 }
  0x30   : > { %v4317_v26 = vcombine.low %v1101_v17, %v4310_v18  ;;  %v1429_v27 = vshll.u32 %v4310_v18, 16  ;;  %v1422_v28 = vrot.slane %v1420_v19, 4  ;;  %v1433_v31 = vshrl.u32 %v4310_v18, 16  ;;  %v1105_v32 = vld [vmem:[#allocation2 + $0x24] sm:$0xf] }
  0x31   : > { %v1425_v29 = vrot.slane %v1423_v20, 5  ;;  %v545_v33 = vmax.f32 %v513_v7, 0.0  ;;  %v4324_v34 = vld [vmem:[#allocation2 + $0x28] sm:$0xf]  ;;  %v1468_v35 = vshrl.u32 %v1105_v32, 16  ;;  %v1471_v36 = vshll.u32 %v1105_v32, 16 }
  0x32   : > { %1220 = vrot.lane.b32.xlu0 %v4317_v26, %s4134_s7  ;;  %v3721_v37 = vpack.c.bf16 %v544_v22, %v544_v22  ;;  %v1450_v38 = vor.u32 %v1449_v25, %v1446_v24  ;;  %v4326_v40 = vrot.slane %v1433_v31, 4  ;;  %v4329_v41 = vcombine.low %v1105_v32, %v4324_v34  ;;  %v1107_v45 = vld [vmem:[#allocation2 + $0x30] sm:$0xf]  ;;  %v4336_v56 = vld [vmem:[#allocation2 + $0x20] sm:$0x1] }
  0x33   : > { %v1426_v39 = vor.u32 %v1425_v29, %v1422_v28  ;;  %v1481_v42 = vshrl.u32 %v4324_v34, 16  ;;  %1257 = vrot.lane.b32.xlu1 %v4307_v12, %s4135_s8  ;;  %v1470_v43 = vrot.slane %v1468_v35, 4  ;;  %v1473_v44 = vrot.slane %v1471_v36, 5 }
  0x34   : > { %v3722_v46 = vpack.c.bf16 %v545_v33, %v545_v33  ;;  %v750_v48 = vshrl.u32 %v3721_v37, 16  ;;  %v1492_v50 = vshrl.u32 %v1107_v45, 16  ;;  %v1495_v51 = vshll.u32 %v1107_v45, 16 }
  0x35   : > { %v4334_v49 = vrot.slane %v1426_v39, 4  ;;  %v753_v52 = vshll.u32 %v3721_v37, 16  ;;  %v1451_v61 = vrot.slane %v1450_v38, 4  ;;  %v1005_v63 = vld [vmem:[#allocation2 + $0x2c] sm:$0x1]  ;;  %v1453_v10 = vshll.u32 %v4299_v4, 16 }
  0x36   : > { %1259 = vrot.lane.b32.xlu0 %v4329_v41, %s4135_s8  ;;  %v752_v58 = vrot.slane %v750_v48, 7  ;;  %v758_v59 = vshrl.u32 %v3722_v46, 16  ;;  %v761_v60 = vshll.u32 %v3722_v46, 16  ;;  %v4340_v1 = vld [vmem:[#allocation2 + $0x34] sm:$0xf]  ;;  %v1494_v2 = vrot.slane %v1492_v50, 4 }
  0x37   : > { %v1497_v7 = vrot.slane %v1495_v51, 5  ;;  %v1459_v13 = vrot.slane %v1457_v16, 4  ;;  %v4344_v15 = vcombine.low %v1107_v45, %v4340_v1  ;;  %v1505_v17 = vshrl.u32 %v4340_v1, 16  ;;  %v350_v37 = vld [vmem:[#allocation2 + $0x38] sm:$0x1] }
  0x38   : > { %v755_v19 = vor.u32 %v753_v52, %v752_v58  ;;  %v756_v20 = vrot.slane %v752_v58, 4  ;;  %v4353_v22 = vrot.slane %v758_v59, 7  ;;  %v1455_v24 = vrot.slane %v1453_v10, 5 }
  0x39   : > { %v1463_v25 = vshll.u32 %v4336_v56, 16  ;;  %v471_v16 = vmul.f32 %v3793_v8, %v4200_v6  ;;  %1261 = vrot.lane.b32.xlu1 %v4344_v15, %s4135_s8  ;;  %v472_v29 = vmul.f32 %v3794_v9, %v4200_v6  ;;  %v1006_v31 = vsel %vm4182_vm2, %v714_v57, %v1005_v63 }
  0x3a   : > { %1224 = vrot.lane.b32.xlu0 %v4329_v41, %s4134_s7  ;;  %v1023_v28 = vsel %vm4253_vm8, %v755_v19, %v1022_v54  ;;  %v1477_v8 = vshll.u32 %v4324_v34, 16  ;;  %v763_v32 = vor.u32 %v761_v60, %v4353_v22  ;;  %v765_v33 = vrot.slane %v4353_v22, 4  ;;  %1007 = vst [vmem:[#allocation2 + $0x2c] sm:$0x1] %v1006_v31 }
  0x3b   : > { %1024 = vst [vmem:[#allocation2 + $0x48] sm:$0xf] %v1023_v28  ;;  %v1456_v35 = vsel %vm4349_vm11, %v1451_v61, %v1455_v24  ;;  %v1460_v36 = vor.u32 %v1459_v13, %v1455_v24  ;;  %v1465_v47 = vrot.slane %v1463_v25, 5  ;;  %v510_v9 = vadd.f32 %v4226_v23, %v471_v16 }
  0x3c   : > { %v511_v30 = vadd.f32 %v4226_v23, %v472_v29  ;;  %v1474_v38 = vor.u32 %v1473_v44, %v1470_v43  ;;  %v764_v57 = vsel %vm4247_vm7, %v756_v20, %v763_v32  ;;  %v4381_v45 = vrot.slane %v1477_v8, 5  ;;  %v341_v20 = vld [vmem:[#allocation2 + $0x14] sm:$0x1] }
  0x3d   : > { %v1461_v39 = vrot.slane %v1460_v36, 4  ;;  %v1483_v46 = vrot.slane %v1481_v42, 4  ;;  %1025 = vst.msk [vmem:[#allocation2 + $0x4c] sm:$0xf] %vm270_vm5, %v764_v57  ;;  %v542_v48 = vmax.f32 %v510_v9, 0.0  ;;  %v351_v52 = vsel %vm4192_vm4, 0, %v350_v37 }
  0x3e   : > { %1226 = vrot.lane.b32.xlu0 %v4344_v15, %s4134_s7  ;;  %v543_v50 = vmax.f32 %v511_v30, 0.0  ;;  %v4386_v51 = vrot.slane %v1474_v38, 4  ;;  %352 = vst [vmem:[#allocation2 + $0x38] sm:$0x1] %v351_v52  ;;  %v1498_v54 = vor.u32 %v1497_v7, %v1494_v2  ;;  %v1501_v42 = vshll.u32 %v4340_v1, 16 }
  0x3f   : > { %v1466_v43 = vsel %vm4349_vm11, %v1461_v39, %v1465_v47  ;;  %v1484_v44 = vor.u32 %v1483_v46, %v4381_v45  ;;  %v3719_v59 = vpack.c.bf16 %v542_v48, %v542_v48  ;;  %v1507_v19 = vrot.slane %v1505_v17, 4  ;;  %v1015_v37 = vld [vmem:[#allocation2 + $0x3c] sm:$0xf] }
  0x40   : > { %v4394_v58 = vcombine.low %v1456_v35, %v1466_v43  ;;  %v3720_v60 = vpack.c.bf16 %v543_v50, %v543_v50  ;;  %v1480_v61 = vsel %vm4349_vm11, %v4386_v51, %v4381_v45  ;;  %v4400_v10 = vrot.slane %v1498_v54, 4  ;;  %v353_v35 = vld [vmem:[#allocation2 + $0x44] sm:$0x1]  ;;  %v356_v43 = vld [vmem:[#allocation2 + $0x50] sm:$0x1] }
  0x41   : > { %v1485_v63 = vrot.slane %v1484_v44, 4  ;;  %v4402_v13 = vrot.slane %v1501_v42, 5  ;;  %v733_v2 = vshrl.u32 %v3719_v59, 16  ;;  %v736_v7 = vshll.u32 %v3719_v59, 16  ;;  %v4404_v31 = vld [vmem:[#allocation2 + $0x2c] sm:$0x1] }
  0x42   : > { %5841 = vst [vmem:[#allocation3_spill] sm:$0xff] %v4394_v58  ;;  %v1111_v24 = vld [vmem:[#allocation2 + $0x48] sm:$0xf]  ;;  %v741_v25 = vshrl.u32 %v3720_v60, 16  ;;  %v744_v16 = vshll.u32 %v3720_v60, 16  ;;  %v1487_v47 = vshll.u32 %v4404_v31, 16 }
  0x43   : > { %v1540_v28 = vshrl.u32 %v1111_v24, 16  ;;  %v1543_v29 = vshll.u32 %v1111_v24, 16  ;;  %v1504_v8 = vsel %vm4349_vm11, %v4400_v10, %v4402_v13  ;;  %v1508_v32 = vor.u32 %v1507_v19, %v4402_v13 }
  0x44   : > { %v735_v36 = vrot.slane %v733_v2, 7  ;;  %v4411_v17 = vrot.slane %v741_v25, 7  ;;  %v342_v9 = vsel %vm4192_vm4, 0, %v341_v20  ;;  %v1112_v30 = vld [vmem:[#allocation2 + $0x4c] sm:$0xf]  ;;  %v4420_v45 = vrot.slane %v1429_v27, 5 }
  0x45   : > { %v1542_v38 = vrot.slane %v1540_v28, 4  ;;  %v1545_v57 = vrot.slane %v1543_v29, 5  ;;  %v4416_v39 = vrot.slane %v1508_v32, 4  ;;  %343 = vst [vmem:[#allocation2 + $0x14] sm:$0x1] %v342_v9  ;;  %v4422_v46 = vcombine.low %v1111_v24, %v1112_v30  ;;  %v3844_v24 = vld [vmem:[%s4211_s28 + $0x30] sm:$0xff]  }
  0x46   : > { %v1553_v48 = vshrl.u32 %v1112_v30, 16  ;;  %v738_v50 = vor.u32 %v736_v7, %v735_v36  ;;  %v739_v51 = vrot.slane %v735_v36, 4  ;;  %v1012_v52 = vld [vmem:[#allocation2 + $0x38] sm:$0x1]  ;;  %v746_v44 = vor.u32 %v744_v16, %v4411_v17  ;;  %v359_v20 = vld [vmem:[#allocation2 + $0x5c] sm:$0x1] }
  0x47   : > { %v748_v54 = vrot.slane %v4411_v17, 4  ;;  %v1489_v42 = vrot.slane %v1487_v47, 5  ;;  %v1013_v59 = vsel %vm4182_vm2, %v731_v62, %v1012_v52  ;;  %1265 = vrot.lane.b32.xlu1 %v4422_v46, %s4135_s8  ;;  %v1432_v60 = vsel %vm4349_vm11, %v4334_v49, %v4420_v45  ;;  %v303_v62 = vld [vmem:[#allocation2 + $0x54] sm:$0x1]  ;;  %v306_v28 = vld [vmem:[#allocation2 + $0x60] sm:$0x1] }
  0x48   : > { %v1016_v27 = vsel %vm4253_vm8, %v738_v50, %v1015_v37  ;;  %1014 = vst [vmem:[#allocation2 + $0x38] sm:$0x1] %v1013_v59  ;;  %v1436_v19 = vor.u32 %v4326_v40, %v4420_v45  ;;  %v354_v55 = vsel %vm4192_vm4, 0, %v353_v35  ;;  %v747_v2 = vsel %vm4247_vm7, %v739_v51, %v746_v44  ;;  %v3845_v40 = vld [vmem:[%s4211_s28 + $0x38] sm:$0xff]   ;;  %v362_v37 = vld [vmem:[#allocation2 + $0x68] sm:$0x1] }
  0x49   : > { %1017 = vst [vmem:[#allocation2 + $0x3c] sm:$0xf] %v1016_v27  ;;  %v1490_v7 = vsel %vm4349_vm11, %v1485_v63, %v1489_v42  ;;  %355 = vst [vmem:[#allocation2 + $0x44] sm:$0x1] %v354_v55  ;;  %v357_v25 = vsel %vm4192_vm4, 0, %v356_v43  ;;  %v1546_v16 = vor.u32 %v1545_v57, %v1542_v38  ;;  %v1549_v35 = vshll.u32 %v1112_v30, 16 }
  0x4a   : > { %1018 = vst.msk [vmem:[#allocation2 + $0x40] sm:$0xf] %vm270_vm5, %v747_v2  ;;  %v4451_v29 = vcombine.low %v1480_v61, %v1490_v7  ;;  %v4453_v32 = vrot.slane %v1436_v19, 4  ;;  %358 = vst [vmem:[#allocation2 + $0x50] sm:$0x1] %v357_v25  ;;  %v1555_v36 = vrot.slane %v1553_v48, 4  ;;  %v3801_v38 = vunpack.c.l.bf16 %v3844_v24 }
  0x4b   : > { %v4455_v47 = vrot.slane %v1546_v16, 4  ;;  %v304_v63 = vsel %vm4182_vm2, 0, %v303_v62  ;;  %v360_v9 = vsel %vm4192_vm4, 0, %v359_v20  ;;  %v309_v57 = vld [vmem:[#allocation2 + $0x6c] sm:$0x1]  ;;  %1913 = vrot.lane.b32.xlu1 %v4394_v58, %s4135_s8  ;;  %v4463_v50 = vrot.slane %v1549_v35, 5 }
  0x4c   : > { %5842 = vst [vmem:[#allocation4_spill] sm:$0xff] %v4451_v29  ;;  %v991_v61 = vld [vmem:[#allocation2 + $0x14] sm:$0x1]  ;;  %305 = vst [vmem:[#allocation2 + $0x54] sm:$0x1] %v304_v63  ;;  %v3802_v30 = vunpack.c.h.bf16 %v3844_v24  ;;  %v307_v48 = vsel %vm4182_vm2, 0, %v306_v28  ;;  %v3805_v51 = vunpack.c.l.bf16 %v3845_v40  ;;  %v475_v44 = vmul.f32 %v3801_v38, %v4200_v6 }
  0x4d   : > { %361 = vst [vmem:[#allocation2 + $0x5c] sm:$0x1] %v360_v9  ;;  %v365_v52 = vld [vmem:[#allocation2 + $0x74] sm:$0x1]  ;;  %v992_v43 = vsel %vm4182_vm2, %v680_v53, %v991_v61  ;;  %308 = vst [vmem:[#allocation2 + $0x60] sm:$0x1] %v307_v48  ;;  %v3806_v42 = vunpack.c.h.bf16 %v3845_v40  ;;  %v1552_v27 = vsel %vm4349_vm11, %v4455_v47, %v4463_v50  ;;  %v1556_v19 = vor.u32 %v1555_v36, %v4463_v50 }
  0x4e   : > { %v363_v59 = vsel %vm4192_vm4, 0, %v362_v37  ;;  %993 = vst [vmem:[#allocation2 + $0x14] sm:$0x1] %v992_v43  ;;  %v476_v14 = vmul.f32 %v3802_v30, %v4200_v6  ;;  %v477_v55 = vmul.f32 %v3805_v51, %v4200_v6  ;;  %v514_v62 = vadd.f32 %v4226_v23, %v475_v44 }
  0x4f   : > { %364 = vst [vmem:[#allocation2 + $0x68] sm:$0x1] %v363_v59  ;;  %v4481_v53 = vld [vmem:[#allocation2 + $0x38] sm:$0x1]  ;;  %v478_v20 = vmul.f32 %v3806_v42, %v4200_v6  ;;  %v310_v24 = vsel %vm4182_vm2, 0, %v309_v57  ;;  %v366_v2 = vsel %vm4192_vm4, 0, %v365_v52  ;;  %1915 = vrot.lane.b32.xlu1 %v4451_v29, %s4135_s8 }
  0x50   : > { %v1109_v7 = vld [vmem:[#allocation2 + $0x3c] sm:$0xf]  ;;  %v1511_v25 = vshll.u32 %v4481_v53, 16  ;;  %v1019_v16 = vld [vmem:[#allocation2 + $0x44] sm:$0x1]  ;;  %v4492_v28 = vrot.slane %v1556_v19, 4  ;;  %v515_v40 = vadd.f32 %v4226_v23, %v476_v14  ;;  %v516_v35 = vadd.f32 %v4226_v23, %v477_v55 }
  0x51   : > { %311 = vst [vmem:[#allocation2 + $0x6c] sm:$0x1] %v310_v24  ;;  %367 = vst [vmem:[#allocation2 + $0x74] sm:$0x1] %v366_v2  ;;  %v4496_v36 = vld [vmem:[#allocation2 + $0x40] sm:$0xf]  ;;  %v1020_v9 = vsel %vm4182_vm2, %v748_v54, %v1019_v16  ;;  %v517_v57 = vadd.f32 %v4226_v23, %v478_v20 }
  0x52   : > { %v1516_v37 = vshrl.u32 %v1109_v7, 16  ;;  %v1519_v63 = vshll.u32 %v1109_v7, 16  ;;  %v1026_v38 = vld [vmem:[#allocation2 + $0x50] sm:$0x1]  ;;  %v4504_v61 = vcombine.low %v1109_v7, %v4496_v36  ;;  %v1529_v30 = vshrl.u32 %v4496_v36, 16  ;;  %v4108_v7 = vld [vmem:[%s5790_s3] sm:$0xff]  }
  0x53   : > { %v1513_v48 = vrot.slane %v1511_v25, 5  ;;  %1021 = vst [vmem:[#allocation2 + $0x44] sm:$0x1] %v1020_v9  ;;  %v1525_v51 = vshll.u32 %v4496_v36, 16  ;;  %v1027_v17 = vsel %vm4182_vm2, %v765_v33, %v1026_v38  ;;  %v546_v54 = vmax.f32 %v514_v62, 0.0  ;;  %1882 = vrot.lane.b32.xlu1 %v4451_v29, %s4134_s7  ;;  %3944 = vmatprep.subr.bf16.mxu0 %v4108_v7 }
  0x54   : > { %v1518_v52 = vrot.slane %v1516_v37, 4  ;;  %v1521_v43 = vrot.slane %v1519_v63, 5  ;;  %1263 = vrot.lane.b32.xlu0 %v4504_v61, %s4135_s8  ;;  %v1531_v59 = vrot.slane %v1529_v30, 4  ;;  %1028 = vst [vmem:[#allocation2 + $0x50] sm:$0x1] %v1027_v17  ;;  %v547_v19 = vmax.f32 %v515_v40, 0.0  ;;  %3945 = vmatpush3.bf16.msra.mxu0 %v4108_v7 }
  0x55   : > { %v1514_v44 = vsel %vm4349_vm11, %v4416_v39, %v1513_v48  ;;  %v1527_v42 = vrot.slane %v1525_v51, 5  ;;  %v4526_v33 = vld [vmem:[#allocation2 + $0x14] sm:$0x1]  ;;  %v3723_v55 = vpack.c.bf16 %v546_v54, %v546_v54  ;;  %v548_v62 = vmax.f32 %v516_v35, 0.0  ;;  %v2442_v7 = vld [vmem:[#allocation2 + $0xc] sm:$0xe] }
  0x56   : > { %v4524_v22 = vcombine.low %v1504_v8, %v1514_v44  ;;  %v1522_v14 = vor.u32 %v1521_v43, %v1518_v52  ;;  %v1439_v20 = vshll.u32 %v4526_v33, 16  ;;  %v3724_v39 = vpack.c.bf16 %v547_v19, %v547_v19  ;;  %v1029_v43 = vld [vmem:[#allocation2 + $0x54] sm:$0xf]  ;;  %v1033_v19 = vld [vmem:[#allocation2 + $0x5c] sm:$0x1] }
  0x57   : > { %v1532_v24 = vor.u32 %v1531_v59, %v1527_v42  ;;  %v549_v2 = vmax.f32 %v517_v57, 0.0  ;;  %vm2491_vm12 = vcmask 1042432   ;;  %vm2492_vm13 = vcmask 1046532  }
  0x58   : > { %5843 = vst [vmem:[#allocation5_spill] sm:$0xff] %v4524_v22  ;;  %v1523_v25 = vrot.slane %v1522_v14, 4  ;;  %v767_v10 = vshrl.u32 %v3723_v55, 16  ;;  %v770_v13 = vshll.u32 %v3723_v55, 16  ;;  %v3725_v8 = vpack.c.bf16 %v548_v62, %v548_v62  ;;  %1228 = vrot.lane.b32.xlu0 %v4504_v61, %s4134_s7  ;;  %1917 = vrot.lane.b32.xlu1 %v4524_v22, %s4135_s8  ;;  %vm4579_vm14 = vmor %vm2491_vm12, %vm2492_vm13 }
  0x59   : > { %v1441_v16 = vrot.slane %v1439_v20, 5  ;;  %v1533_v40 = vrot.slane %v1532_v24, 4  ;;  %v775_v35 = vshrl.u32 %v3724_v39, 16  ;;  %v778_v37 = vshll.u32 %v3724_v39, 16  ;;  %v1036_v24 = vld [vmem:[#allocation2 + $0x60] sm:$0xf] }
  0x5a   : > { %v4536_v63 = vld [vmem:[#allocation2 + $0x44] sm:$0x1]  ;;  %v1528_v9 = vsel %vm4349_vm11, %v1523_v25, %v1527_v42  ;;  %v769_v38 = vrot.slane %v767_v10, 7  ;;  %v3726_v57 = vpack.c.bf16 %v549_v2, %v549_v2  ;;  %v784_v30 = vshrl.u32 %v3725_v8, 16 }
  0x5b   : > { %v1442_v48 = vsel %vm4349_vm11, %v4453_v32, %v1441_v16  ;;  %v1535_v51 = vshll.u32 %v4536_v63, 16  ;;  %v777_v52 = vrot.slane %v775_v35, 7  ;;  %v787_v17 = vshll.u32 %v3725_v8, 16  ;;  %v4551_v44 = vld [vmem:[#allocation2 + $0x50] sm:$0x1]  ;;  %v3846_v2 = vld [vmem:[%s4211_s28 + $0x40] sm:$0xff]  }
  0x5c   : > { %v4549_v54 = vcombine.low %v1432_v60, %v1442_v48  ;;  %v772_v42 = vor.u32 %v770_v13, %v769_v38  ;;  %v773_v59 = vrot.slane %v769_v38, 4  ;;  %v786_v32 = vrot.slane %v784_v30, 7  ;;  %1230 = vrot.lane.b32.xlu0 %v4422_v46, %s4134_s7 }
  0x5d   : > { %v1537_v14 = vrot.slane %v1535_v51, 5  ;;  %v1559_v55 = vshll.u32 %v4551_v44, 16  ;;  %v780_v62 = vor.u32 %v778_v37, %v777_v52  ;;  %v782_v20 = vrot.slane %v777_v52, 4 }
  0x5e   : > { %v1030_v49 = vsel %vm4253_vm8, %v772_v42, %v1029_v43  ;;  %v789_v45 = vor.u32 %v787_v17, %v786_v32  ;;  %v790_v60 = vrot.slane %v786_v32, 4  ;;  %v792_v39 = vshrl.u32 %v3726_v57, 16 }
  0x5f   : > { %v1538_v25 = vsel %vm4349_vm11, %v1533_v40, %v1537_v14  ;;  %v1561_v10 = vrot.slane %v1559_v55, 5  ;;  %v781_v13 = vsel %vm4247_vm7, %v773_v59, %v780_v62  ;;  %1031 = vst [vmem:[#allocation2 + $0x54] sm:$0xf] %v1030_v49  ;;  %v1034_v8 = vsel %vm4182_vm2, %v782_v20, %v1033_v19  ;;  %v312_v40 = vld [vmem:[#allocation2 + $0x78] sm:$0x1] }
  0x60   : > { %v4565_v16 = vcombine.low %v1528_v9, %v1538_v25  ;;  %1032 = vst.msk [vmem:[#allocation2 + $0x58] sm:$0xf] %vm270_vm5, %v781_v13  ;;  %1035 = vst [vmem:[#allocation2 + $0x5c] sm:$0x1] %v1034_v8  ;;  %v794_v35 = vrot.slane %v792_v39, 7  ;;  %v795_v37 = vshll.u32 %v3726_v57, 16  ;;  %v1037_v38 = vsel %vm4253_vm8, %v789_v45, %v1036_v24  ;;  %1878 = vrot.lane.b32.xlu0 %v4549_v54, %s4134_s7 }
  0x61   : > { %v1562_v30 = vsel %vm4349_vm11, %v4492_v28, %v1561_v10  ;;  %1038 = vst [vmem:[#allocation2 + $0x60] sm:$0xf] %v1037_v38  ;;  %v1040_v9 = vld [vmem:[#allocation2 + $0x68] sm:$0x1]  ;;  %v3809_v48 = vunpack.c.l.bf16 %v3846_v2  ;;  %v3810_v51 = vunpack.c.h.bf16 %v3846_v2  ;;  %v3619_v52 = vrot.slane %v2442_v7, 9 }
  0x62   : > { %5844 = vst [vmem:[#allocation6_spill] sm:$0xff] %v4565_v16  ;;  %1919 = vrot.lane.b32.xlu1 %v4565_v16, %s4135_s8  ;;  %v797_v57 = vor.u32 %v795_v37, %v794_v35  ;;  %v799_v43 = vrot.slane %v794_v35, 4  ;;  %v2503_v42 = vrot.slane %v4310_v18, 5  ;;  %v368_v59 = vld [vmem:[#allocation2 + $0x80] sm:$0x1]  ;;  %v3847_v28 = vld [vmem:[%s4211_s28 + $0x48] sm:$0xff]   ;;  %v4596_v62 = vcombine.low %v1552_v27, %v1562_v30 }
  0x63   : > { %v479_v19 = vmul.f32 %v3809_v48, %v4200_v6  ;;  %v480_v32 = vmul.f32 %v3810_v51, %v4200_v6  ;;  %v313_v14 = vsel %vm4182_vm2, 0, %v312_v40  ;;  %v4589_v55 = vld [vmem:[#allocation2 + $0x18] sm:$0xe]  ;;  %v369_v27 = vsel %vm4192_vm4, 0, %v368_v59 }
  0x64   : > { %5847 = vst [vmem:[#allocation7_spill] sm:$0xff] %v4596_v62  ;;  %v798_v18 = vsel %vm4247_vm7, %v790_v60, %v797_v57  ;;  %v1041_v20 = vsel %vm4182_vm2, %v799_v43, %v1040_v9  ;;  %314 = vst [vmem:[#allocation2 + $0x78] sm:$0x1] %v313_v14  ;;  %1880 = vrot.lane.b32.xlu0 %v4394_v58, %s4134_s7  ;;  %v4608_v47 = vsel %vm4579_vm14, %v3619_v52, %v2503_v42  ;;  %vm2071_vm15 = vcmask 1043456  }
  0x65   : > { %1039 = vst.msk [vmem:[#allocation2 + $0x64] sm:$0xf] %vm270_vm5, %v798_v18  ;;  %1042 = vst [vmem:[#allocation2 + $0x68] sm:$0x1] %v1041_v20  ;;  %v4610_v50 = vrot.slane %v2503_v42, 4  ;;  %v3813_v49 = vunpack.c.l.bf16 %v3847_v28  ;;  %v518_v60 = vadd.f32 %v4226_v23, %v479_v19  ;;  %v519_v39 = vadd.f32 %v4226_v23, %v480_v32 }
  0x66   : > { %1886 = vrot.lane.b32.xlu1 %v4565_v16, %s4134_s7  ;;  %v1113_v45 = vld [vmem:[#allocation2 + $0x54] sm:$0xf]  ;;  %370 = vst [vmem:[#allocation2 + $0x80] sm:$0x1] %v369_v27  ;;  %v2510_v7 = vrot.slane %v4299_v4, 5  ;;  %v3814_v35 = vunpack.c.h.bf16 %v3847_v28  ;;  %vm1289_vm1 = vcmask 64512  }
  0x67   : > { %v4620_v25 = vld [vmem:[#allocation2 + $0x58] sm:$0xf]  ;;  %v4622_v10 = vld [vmem:[#allocation2 + $0x5c] sm:$0x1]  ;;  %v1564_v13 = vshrl.u32 %v1113_v45, 16  ;;  %v1567_v8 = vshll.u32 %v1113_v45, 16  ;;  %v481_v37 = vmul.f32 %v3813_v49, %v4200_v6 }
  0x68   : > { %v1573_v38 = vshll.u32 %v4620_v25, 16  ;;  %v1577_v40 = vshrl.u32 %v4620_v25, 16  ;;  %v1583_v30 = vshll.u32 %v4622_v10, 16  ;;  %v4629_v9 = vcombine.low %v1113_v45, %v4620_v25  ;;  %v1115_v48 = vld [vmem:[#allocation2 + $0x60] sm:$0xf]  ;;  %1884 = vrot.lane.b32.xlu0 %v4524_v22, %s4134_s7 }
  0x69   : > { %v1566_v51 = vrot.slane %v1564_v13, 4  ;;  %v1569_v52 = vrot.slane %v1567_v8, 5  ;;  %v1588_v57 = vshrl.u32 %v1115_v48, 16  ;;  %v1591_v43 = vshll.u32 %v1115_v48, 16  ;;  %v2449_v5 = vld [vmem:[#allocation2 + $0x60] sm:$0xe] }
  0x6a   : > { %5848 = vst [vmem:[#allocation8_spill] sm:$0xff] %v4629_v9  ;;  %1921 = vrot.lane.b32.xlu1 %v4596_v62, %s4135_s8  ;;  %v1575_v42 = vrot.slane %v1573_v38, 5  ;;  %v1579_v59 = vrot.slane %v1577_v40, 4  ;;  %v1585_v28 = vrot.slane %v1583_v30, 5  ;;  %v550_v19 = vmax.f32 %v518_v60, 0.0 }
  0x6b   : > { %v1570_v32 = vor.u32 %v1569_v52, %v1566_v51  ;;  %v1590_v14 = vrot.slane %v1588_v57, 4  ;;  %v1593_v18 = vrot.slane %v1591_v43, 5  ;;  %v551_v20 = vmax.f32 %v519_v39, 0.0 }
  0x6c   : > { %v1580_v27 = vor.u32 %v1579_v59, %v1575_v42  ;;  %v1116_v49 = vld [vmem:[#allocation2 + $0x64] sm:$0xf]  ;;  %v1382_v45 = vld [vmem:[#allocation2 + $0x68] sm:$0x1]  ;;  %v3727_v24 = vpack.c.bf16 %v550_v19, %v550_v19  ;;  %v482_v13 = vmul.f32 %v3814_v35, %v4200_v6  ;;  %v520_v8 = vadd.f32 %v4226_v23, %v481_v37  ;;  %1888 = vrot.lane.b32.xlu0 %v4596_v62, %s4134_s7 }
  0x6d   : > { %v1571_v2 = vrot.slane %v1570_v32, 4  ;;  %v4639_v38 = vcombine.low %v1115_v48, %v1116_v49  ;;  %v1601_v40 = vshrl.u32 %v1116_v49, 16  ;;  %v1594_v60 = vor.u32 %v1593_v18, %v1590_v14 }
  0x6e   : > { %v1581_v30 = vrot.slane %v1580_v27, 4  ;;  %v1597_v51 = vshll.u32 %v1116_v49, 16  ;;  %v1607_v52 = vshll.u32 %v1382_v45, 16  ;;  %v3728_v39 = vpack.c.bf16 %v551_v20, %v551_v20  ;;  %v1043_v27 = vld [vmem:[#allocation2 + $0x6c] sm:$0xf] }
  0x6f   : > { %5849 = vst [vmem:[#allocation9_spill] sm:$0xff] %v4639_v38  ;;  %v1576_v57 = vsel %vm4349_vm11, %v1571_v2, %v1575_v42  ;;  %v1595_v43 = vrot.slane %v1594_v60, 4  ;;  %v1603_v59 = vrot.slane %v1601_v40, 4  ;;  %v801_v6 = vshrl.u32 %v3727_v24, 16 }
  0x70   : > { %v1586_v35 = vsel %vm4349_vm11, %v1581_v30, %v1585_v28  ;;  %v1599_v37 = vrot.slane %v1597_v51, 5  ;;  %v1609_v19 = vrot.slane %v1607_v52, 5  ;;  %v804_v32 = vshll.u32 %v3727_v24, 16  ;;  %1267 = vrot.lane.b32.xlu0 %v4629_v9, %s4135_s8  ;;  %v1047_v52 = vld [vmem:[#allocation2 + $0x74] sm:$0x1] }
  0x71   : > { %v4645_v48 = vcombine.low %v1576_v57, %v1586_v35  ;;  %v803_v14 = vrot.slane %v801_v6, 7  ;;  %v809_v18 = vshrl.u32 %v3728_v39, 16  ;;  %v812_v20 = vshll.u32 %v3728_v39, 16 }
  0x72   : > { %v1600_v2 = vsel %vm4349_vm11, %v1595_v43, %v1599_v37  ;;  %v1604_v42 = vor.u32 %v1603_v59, %v1599_v37  ;;  %v521_v49 = vadd.f32 %v4226_v23, %v482_v13  ;;  %v552_v45 = vmax.f32 %v520_v8, 0.0  ;;  %v4111_v59 = vld [vmem:[%s5790_s3 + $0xc] sm:$0xff]   ;;  %v315_v37 = vld [vmem:[#allocation2 + $0x84] sm:$0x1] }
  0x73   : > { %5850 = vst [vmem:[#allocation10_spill] sm:$0xff] %v4645_v48  ;;  %1923 = vrot.lane.b32.xlu1 %v4645_v48, %s4135_s8  ;;  %v806_v24 = vor.u32 %v804_v32, %v803_v14  ;;  %v807_v28 = vrot.slane %v803_v14, 4  ;;  %v811_v40 = vrot.slane %v809_v18, 7  ;;  %v5851_v60 = vrot.slane %v4589_v55, 9  ;;  %3908 = vmatprep.subr.bf16.mxu1 %v4111_v59 }
  0x74   : > { %v1605_v51 = vrot.slane %v1604_v42, 4  ;;  %v553_v39 = vmax.f32 %v521_v49, 0.0  ;;  %v3729_v57 = vpack.c.bf16 %v552_v45, %v552_v45  ;;  %v2512_v23 = vrot.slane %v2510_v7, 4  ;;  %1232 = vrot.lane.b32.xlu0 %v4629_v9, %s4134_s7  ;;  %3909 = vmatpush3.bf16.msra.mxu1 %v4111_v59 }
  0x75   : > { %v2511_v30 = vsel %vm4579_vm14, %v5851_v60, %v2510_v7  ;;  %v814_v13 = vor.u32 %v812_v20, %v811_v40  ;;  %v816_v8 = vrot.slane %v811_v40, 4  ;;  %v1044_v43 = vsel %vm4253_vm8, %v806_v24, %v1043_v27  ;;  %v371_v20 = vld [vmem:[#allocation2 + $0x8c] sm:$0x1]  ;;  %v4688_v24 = vld [vmem:[#allocation2 + $0x24] sm:$0xe] }
  0x76   : > { %v2513_v55 = vrot.slane %v4336_v56, 5  ;;  %v1610_v6 = vsel %vm4349_vm11, %v1605_v51, %v1609_v19  ;;  %1045 = vst [vmem:[#allocation2 + $0x6c] sm:$0xf] %v1044_v43  ;;  %v3730_v4 = vpack.c.bf16 %v553_v39, %v553_v39  ;;  %v818_v7 = vshrl.u32 %v3729_v57, 16  ;;  %v318_v60 = vld [vmem:[#allocation2 + $0x90] sm:$0x1] }
  0x77   : > { %v821_v35 = vshll.u32 %v3729_v57, 16  ;;  %1890 = vrot.lane.b32.xlu1 %v4645_v48, %s4134_s7  ;;  %v815_v32 = vsel %vm4247_vm7, %v807_v28, %v814_v13  ;;  %v1048_v56 = vsel %vm4182_vm2, %v816_v8, %v1047_v52  ;;  %v5852_v14 = vrot.slane %v4526_v33, 5  ;;  %v3848_v28 = vld [vmem:[%s4211_s28 + $0x50] sm:$0xff]   ;;  %v374_v57 = vld [vmem:[#allocation2 + $0x98] sm:$0x1] }
  0x78   : > { %v2514_v18 = vsel %vm4579_vm14, %v2512_v23, %v2513_v55  ;;  %1046 = vst.msk [vmem:[#allocation2 + $0x70] sm:$0xf] %vm270_vm5, %v815_v32  ;;  %1049 = vst [vmem:[#allocation2 + $0x74] sm:$0x1] %v1048_v56  ;;  %v820_v42 = vrot.slane %v818_v7, 7  ;;  %v826_v27 = vshrl.u32 %v3730_v4, 16  ;;  %1234 = vrot.lane.b32.xlu0 %v4639_v38, %s4134_s7  ;;  %v4693_v33 = vcombine.low %v1600_v2, %v1610_v6 }
  0x79   : > { %v2507_v19 = vsel %vm4579_vm14, %v4610_v50, %v5852_v14  ;;  %v829_v49 = vshll.u32 %v3730_v4, 16  ;;  %v4686_v45 = vcombine.low %v2511_v30, %v2514_v18  ;;  %v1050_v50 = vld [vmem:[#allocation2 + $0x78] sm:$0xf]  ;;  %v316_v40 = vsel %vm4182_vm2, 0, %v315_v37  ;;  %v1054_v23 = vld [vmem:[#allocation2 + $0x80] sm:$0x1] }
  0x7a   : > { %5854 = vst [vmem:[#allocation12_spill] sm:$0xff] %v4693_v33  ;;  %v823_v51 = vor.u32 %v821_v35, %v820_v42  ;;  %v824_v52 = vrot.slane %v820_v42, 4  ;;  %v828_v30 = vrot.slane %v826_v27, 7  ;;  %317 = vst [vmem:[#allocation2 + $0x84] sm:$0x1] %v316_v40  ;;  %v372_v39 = vsel %vm4192_vm4, 0, %v371_v20 }
  0x7b   : > { %5853 = vst [vmem:[#allocation11_spill] sm:$0xff] %v4686_v45  ;;  %1269 = vrot.lane.b32.xlu1 %v4639_v38, %s4135_s8  ;;  %v4702_v2 = vcombine.low %v4608_v47, %v2507_v19  ;;  %373 = vst [vmem:[#allocation2 + $0x8c] sm:$0x1] %v372_v39  ;;  %v3817_v8 = vunpack.c.l.bf16 %v3848_v28  ;;  %v3818_v43 = vunpack.c.h.bf16 %v3848_v28  ;;  %v319_v4 = vsel %vm4182_vm2, 0, %v318_v60  ;;  %v3849_v7 = vld [vmem:[%s4211_s28 + $0x58] sm:$0xff]  }
  0x7c   : > { %v831_v55 = vor.u32 %v829_v49, %v828_v30  ;;  %v833_v59 = vrot.slane %v828_v30, 4  ;;  %v1051_v6 = vsel %vm4253_vm8, %v823_v51, %v1050_v50  ;;  %1892 = vrot.lane.b32.xlu0 %v4693_v33, %s4134_s7  ;;  %v5794_v35 = vrot.slane %v4324_v34, 5  ;;  %v4716_v37 = vld [vmem:[%s5788_s1] ss:$0 sm:$0xff]  ;;  %320 = vst [vmem:[#allocation2 + $0x90] sm:$0x1] %v319_v4 }
  0x7d   : > { %5855 = vst [vmem:[#allocation13_spill] sm:$0xff] %v4702_v2  ;;  %v1117_v47 = vld [vmem:[#allocation2 + $0x6c] sm:$0xf]  ;;  %1052 = vst [vmem:[#allocation2 + $0x78] sm:$0xf] %v1051_v6  ;;  %v483_v32 = vmul.f32 %v4716_v37, %v3817_v8  ;;  %v484_v56 = vmul.f32 %v4716_v37, %v3818_v43  ;;  %v375_v14 = vsel %vm4192_vm4, 0, %v374_v57  ;;  %v3821_v51 = vunpack.c.l.bf16 %v3849_v7 }
  0x7e   : > { %v1612_v19 = vshrl.u32 %v1117_v47, 16  ;;  %v1615_v18 = vshll.u32 %v1117_v47, 16  ;;  %v832_v20 = vsel %vm4247_vm7, %v824_v52, %v831_v55  ;;  %v1055_v42 = vsel %vm4182_vm2, %v833_v59, %v1054_v23  ;;  %376 = vst [vmem:[#allocation2 + $0x98] sm:$0x1] %v375_v14  ;;  %v4735_v50 = vld [vmem:[%s5789_s2] ss:$0 sm:$0xff] }
  0x7f   : > { %1925 = vrot.lane.b32.xlu1 %v4693_v33, %s4135_s8  ;;  %v4728_v27 = vld [vmem:[#allocation2 + $0x70] sm:$0xf]  ;;  %v1383_v49 = vld [vmem:[#allocation2 + $0x74] sm:$0x1]  ;;  %1053 = vst.msk [vmem:[#allocation2 + $0x7c] sm:$0xf] %vm270_vm5, %v832_v20  ;;  %v522_v40 = vadd.f32 %v4735_v50, %v483_v32  ;;  %v523_v60 = vadd.f32 %v4735_v50, %v484_v56  ;;  %v3822_v14 = vunpack.c.h.bf16 %v3849_v7 }
  0x80   : > { %1056 = vst [vmem:[#allocation2 + $0x80] sm:$0x1] %v1055_v42  ;;  %v1614_v52 = vrot.slane %v1612_v19, 4  ;;  %v1617_v30 = vrot.slane %v1615_v18, 5  ;;  %v1621_v39 = vshll.u32 %v4728_v27, 16  ;;  %v1625_v57 = vshrl.u32 %v4728_v27, 16 }
  0x81   : > { %v1631_v23 = vshll.u32 %v1383_v49, 16  ;;  %v4742_v8 = vcombine.low %v1117_v47, %v4728_v27  ;;  %v554_v43 = vmax.f32 %v522_v40, 0.0  ;;  %v555_v55 = vmax.f32 %v523_v60, 0.0  ;;  %v1057_v33 = vld [vmem:[#allocation2 + $0x84] sm:$0xf] }
  0x82   : > { %v1618_v59 = vor.u32 %v1617_v30, %v1614_v52  ;;  %v1623_v6 = vrot.slane %v1621_v39, 5  ;;  %v1627_v4 = vrot.slane %v1625_v57, 4  ;;  %v2519_v32 = vrot.slane %v5794_v35, 4  ;;  %v1061_v62 = vld [vmem:[#allocation2 + $0x8c] sm:$0x1] }
  0x83   : > { %1271 = vrot.lane.b32.xlu0 %v4742_v8, %s4135_s8  ;;  %v3731_v56 = vpack.c.bf16 %v554_v43, %v554_v43  ;;  %v3732_v19 = vpack.c.bf16 %v555_v55, %v555_v55  ;;  %v485_v18 = vmul.f32 %v4716_v37, %v3821_v51  ;;  %v1633_v47 = vrot.slane %v1631_v23, 5 }
  0x84   : > { %v1619_v20 = vrot.slane %v1618_v59, 4  ;;  %v1628_v42 = vor.u32 %v1627_v4, %v1623_v6  ;;  %v1119_v49 = vld [vmem:[#allocation2 + $0x78] sm:$0xf]  ;;  %v486_v40 = vmul.f32 %v4716_v37, %v3822_v14  ;;  %v2545_v9 = vrot.slane %v4620_v25, 5 }
  0x85   : > { %v1636_v60 = vshrl.u32 %v1119_v49, 16  ;;  %v1639_v52 = vshll.u32 %v1119_v49, 16  ;;  %v835_v30 = vshrl.u32 %v3731_v56, 16  ;;  %v838_v7 = vshll.u32 %v3731_v56, 16 }
  0x86   : > { %v1624_v39 = vsel %vm4349_vm11, %v1619_v20, %v1623_v6  ;;  %v1629_v57 = vrot.slane %v1628_v42, 4  ;;  %v4752_v28 = vld [vmem:[#allocation2 + $0x7c] sm:$0xf]  ;;  %v843_v55 = vshrl.u32 %v3732_v19, 16  ;;  %v524_v51 = vadd.f32 %v4735_v50, %v485_v18 }
  0x87   : > { %v4754_v43 = vld [vmem:[#allocation2 + $0x80] sm:$0x1]  ;;  %v1638_v59 = vrot.slane %v1636_v60, 4  ;;  %v1641_v23 = vrot.slane %v1639_v52, 5  ;;  %v1645_v4 = vshll.u32 %v4752_v28, 16  ;;  %v1649_v14 = vshrl.u32 %v4752_v28, 16 }
  0x88   : > { %v1634_v56 = vsel %vm4349_vm11, %v1629_v57, %v1633_v47  ;;  %v1655_v49 = vshll.u32 %v4754_v43, 16  ;;  %v837_v6 = vrot.slane %v835_v30, 7  ;;  %v845_v20 = vrot.slane %v843_v55, 7 }
  0x89   : > { %v4762_v42 = vcombine.low %v1624_v39, %v1634_v56  ;;  %v1642_v13 = vor.u32 %v1641_v23, %v1638_v59  ;;  %v1647_v35 = vrot.slane %v1645_v4, 5  ;;  %v1651_v38 = vrot.slane %v1649_v14, 4 }
  0x8a   : > { %v1657_v18 = vrot.slane %v1655_v49, 5  ;;  %v840_v60 = vor.u32 %v838_v7, %v837_v6  ;;  %v841_v52 = vrot.slane %v837_v6, 4  ;;  %v846_v48 = vshll.u32 %v3732_v19, 16  ;;  %v2446_v7 = vld [vmem:[#allocation2 + $0x3c] sm:$0xe] }
  0x8b   : > { %5856 = vst [vmem:[#allocation14_spill] sm:$0xff] %v4762_v42  ;;  %1927 = vrot.lane.b32.xlu1 %v4762_v42, %s4135_s8  ;;  %1894 = vrot.lane.b32.xlu0 %v4762_v42, %s4134_s7  ;;  %v1643_v47 = vrot.slane %v1642_v13, 4  ;;  %v1652_v30 = vor.u32 %v1651_v38, %v1647_v35  ;;  %v850_v57 = vrot.slane %v845_v20, 4  ;;  %v525_v39 = vadd.f32 %v4735_v50, %v486_v40 }
  0x8c   : > { %v848_v55 = vor.u32 %v846_v48, %v845_v20  ;;  %v1058_v59 = vsel %vm4253_vm8, %v840_v60, %v1057_v33  ;;  %v556_v23 = vmax.f32 %v524_v51, 0.0  ;;  %v5857_v38 = vrot.slane %v4324_v34, 5  ;;  %v377_v60 = vld [vmem:[#allocation2 + $0xa4] sm:$0x1] }
  0x8d   : > { %v1648_v19 = vsel %vm4349_vm11, %v1643_v47, %v1647_v35  ;;  %v1653_v4 = vrot.slane %v1652_v30, 4  ;;  %1059 = vst [vmem:[#allocation2 + $0x84] sm:$0xf] %v1058_v59  ;;  %v1062_v14 = vsel %vm4182_vm2, %v850_v57, %v1061_v62  ;;  %v557_v56 = vmax.f32 %v525_v39, 0.0 }
  0x8e   : > { %v5858_v13 = vrot.slane %v4688_v24, 9  ;;  %v5859_v33 = vrot.slane %v4404_v31, 5  ;;  %v849_v35 = vsel %vm4247_vm7, %v841_v52, %v848_v55  ;;  %1063 = vst [vmem:[#allocation2 + $0x8c] sm:$0x1] %v1062_v14  ;;  %v3733_v51 = vpack.c.bf16 %v556_v23, %v556_v23  ;;  %v321_v31 = vld [vmem:[#allocation2 + $0x9c] sm:$0x1] }
  0x8f   : > { %2675 = vrot.lane.b32.xlu1 %v4702_v2, %s4134_s7  ;;  %v1658_v34 = vsel %vm4349_vm11, %v1653_v4, %v1657_v18  ;;  %1060 = vst.msk [vmem:[#allocation2 + $0x88] sm:$0xf] %vm270_vm5, %v849_v35  ;;  %v3734_v62 = vpack.c.bf16 %v557_v56, %v557_v56  ;;  %v3623_v24 = vrot.slane %v2446_v7, 9  ;;  %v2531_v20 = vrot.slane %v4496_v36, 5  ;;  %v3850_v52 = vld [vmem:[%s4211_s28 + $0x60] sm:$0xff]  }
  0x90   : > { %v2518_v48 = vsel %vm4579_vm14, %v5858_v13, %v5857_v38  ;;  %v2521_v40 = vsel %vm4579_vm14, %v2519_v32, %v5859_v33  ;;  %v4792_v49 = vcombine.low %v1648_v19, %v1658_v34  ;;  %v852_v6 = vshrl.u32 %v3733_v51, 16  ;;  %v1064_v7 = vld [vmem:[#allocation2 + $0x90] sm:$0xf]  ;;  %v1068_v13 = vld [vmem:[#allocation2 + $0x98] sm:$0x1] }
  0x91   : > { %v855_v32 = vshll.u32 %v3733_v51, 16  ;;  %v4796_v47 = vcombine.low %v2518_v48, %v2521_v40  ;;  %v860_v30 = vshrl.u32 %v3734_v62, 16  ;;  %v863_v57 = vshll.u32 %v3734_v62, 16 }
  0x92   : > { %5860 = vst [vmem:[#allocation15_spill] sm:$0xff] %v4792_v49  ;;  %v2534_v39 = vrot.slane %v4536_v63, 5  ;;  %1896 = vrot.lane.b32.xlu0 %v4792_v49, %s4134_s7  ;;  %v854_v18 = vrot.slane %v852_v6, 7  ;;  %v5799_v55 = vrot.slane %v4340_v1, 5  ;;  %v2532_v59 = vsel %vm4579_vm14, %v3623_v24, %v2531_v20 }
  0x93   : > { %5861 = vst [vmem:[#allocation16_spill] sm:$0xff] %v4796_v47  ;;  %v2533_v23 = vrot.slane %v2531_v20, 4  ;;  %1929 = vrot.lane.b32.xlu1 %v4792_v49, %s4135_s8  ;;  %v862_v36 = vrot.slane %v860_v30, 7  ;;  %v322_v19 = vsel %vm4182_vm2, 0, %v321_v31  ;;  %v378_v63 = vsel %vm4192_vm4, 0, %v377_v60 }
  0x94   : > { %v3825_v4 = vunpack.c.l.bf16 %v3850_v52  ;;  %v1121_v14 = vld [vmem:[#allocation2 + $0x84] sm:$0xf]  ;;  %v857_v56 = vor.u32 %v855_v32, %v854_v18  ;;  %v858_v38 = vrot.slane %v854_v18, 4  ;;  %323 = vst [vmem:[#allocation2 + $0x9c] sm:$0x1] %v322_v19  ;;  %v3826_v33 = vunpack.c.h.bf16 %v3850_v52  ;;  %v3851_v52 = vld [vmem:[%s4211_s28 + $0x68] sm:$0xff]  }
  0x95   : > { %v2535_v48 = vsel %vm4579_vm14, %v2533_v23, %v2534_v39  ;;  %379 = vst [vmem:[#allocation2 + $0xa4] sm:$0x1] %v378_v63  ;;  %v4812_v40 = vld [vmem:[#allocation2 + $0x8c] sm:$0x1]  ;;  %v1660_v35 = vshrl.u32 %v1121_v14, 16  ;;  %v1663_v51 = vshll.u32 %v1121_v14, 16  ;;  %v865_v34 = vor.u32 %v863_v57, %v862_v36 }
  0x96   : > { %v867_v62 = vrot.slane %v862_v36, 4  ;;  %2677 = vrot.lane.b32.xlu0 %v4686_v45, %s4134_s7  ;;  %v4816_v24 = vld [vmem:[#allocation2 + $0x88] sm:$0xf]  ;;  %v1679_v31 = vshll.u32 %v4812_v40, 16  ;;  %v1065_v6 = vsel %vm4253_vm8, %v857_v56, %v1064_v7  ;;  %v4821_v32 = vcombine.low %v2532_v59, %v2535_v48  ;;  %v380_v23 = vld [vmem:[#allocation2 + $0xb0] sm:$0x1] }
  0x97   : > { %v487_v20 = vmul.f32 %v4716_v37, %v3825_v4  ;;  %v324_v60 = vld [vmem:[#allocation2 + $0xa8] sm:$0x1]  ;;  %2710 = vrot.lane.b32.xlu1 %v4686_v45, %s4135_s8  ;;  %v1662_v30 = vrot.slane %v1660_v35, 4  ;;  %v1665_v57 = vrot.slane %v1663_v51, 5  ;;  %v1669_v39 = vshll.u32 %v4816_v24, 16 }
  0x98   : > { %5862 = vst [vmem:[#allocation17_spill] sm:$0xff] %v4821_v32  ;;  %v1673_v18 = vshrl.u32 %v4816_v24, 16  ;;  %1066 = vst [vmem:[#allocation2 + $0x90] sm:$0xf] %v1065_v6  ;;  %v1681_v36 = vrot.slane %v1679_v31, 5  ;;  %v866_v59 = vsel %vm4247_vm7, %v858_v38, %v865_v34  ;;  %v1069_v7 = vsel %vm4182_vm2, %v867_v62, %v1068_v13 }
  0x99   : > { %v488_v19 = vmul.f32 %v4716_v37, %v3826_v33  ;;  %v1666_v63 = vor.u32 %v1665_v57, %v1662_v30  ;;  %v1671_v4 = vrot.slane %v1669_v39, 5  ;;  %1067 = vst.msk [vmem:[#allocation2 + $0x94] sm:$0xf] %vm270_vm5, %v866_v59  ;;  %1070 = vst [vmem:[#allocation2 + $0x98] sm:$0x1] %v1069_v7  ;;  %v526_v48 = vadd.f32 %v4735_v50, %v487_v20 }
  0x9a   : > { %v1675_v14 = vrot.slane %v1673_v18, 4  ;;  %v4835_v56 = vld [vmem:[#allocation2 + $0x30] sm:$0xe]  ;;  %v325_v38 = vsel %vm4182_vm2, 0, %v324_v60  ;;  %v381_v13 = vsel %vm4192_vm4, 0, %v380_v23  ;;  %v3829_v51 = vunpack.c.l.bf16 %v3851_v52 }
  0x9b   : > { %v527_v35 = vadd.f32 %v4735_v50, %v488_v19  ;;  %2712 = vrot.lane.b32.xlu1 %v4796_v47, %s4135_s8  ;;  %v1667_v33 = vrot.slane %v1666_v63, 4  ;;  %v558_v62 = vmax.f32 %v526_v48, 0.0  ;;  %326 = vst [vmem:[#allocation2 + $0xa8] sm:$0x1] %v325_v38  ;;  %382 = vst [vmem:[#allocation2 + $0xb0] sm:$0x1] %v381_v13  ;;  %v3830_v31 = vunpack.c.h.bf16 %v3851_v52 }
  0x9c   : > { %v1676_v34 = vor.u32 %v1675_v14, %v1671_v4  ;;  %v3622_v6 = vrot.slane %v4835_v56, 9  ;;  %v489_v30 = vmul.f32 %v4716_v37, %v3829_v51  ;;  %v2526_v59 = vrot.slane %v5799_v55, 4  ;;  %v1071_v55 = vld [vmem:[#allocation2 + $0x9c] sm:$0xf]  ;;  %v1075_v49 = vld [vmem:[#allocation2 + $0xa4] sm:$0x1] }
  0x9d   : > { %v559_v20 = vmax.f32 %v527_v35, 0.0  ;;  %v1672_v60 = vsel %vm4349_vm11, %v1667_v33, %v1671_v4  ;;  %v3735_v39 = vpack.c.bf16 %v558_v62, %v558_v62  ;;  %v490_v18 = vmul.f32 %v4716_v37, %v3830_v31 }
  0x9e   : > { %v1677_v57 = vrot.slane %v1676_v34, 4  ;;  %v2527_v7 = vrot.slane %v4481_v53, 5  ;;  %v528_v19 = vadd.f32 %v4735_v50, %v489_v30  ;;  %vm1338_vm3 = vcmask 130048  }
  0x9f   : > { %v4850_v23 = vld [vmem:[#allocation2 + $0x90] sm:$0xf]  ;;  %v3736_v52 = vpack.c.bf16 %v559_v20, %v559_v20  ;;  %2679 = vrot.lane.b32.xlu1 %v4796_v47, %s4134_s7  ;;  %v869_v56 = vshrl.u32 %v3735_v39, 16  ;;  %v872_v53 = vshll.u32 %v3735_v39, 16  ;;  %v529_v51 = vadd.f32 %v4735_v50, %v490_v18 }
  0xa0   : > { %5863 = vst [vmem:[#allocation18_spill] sm:$0xff] %v4850_v23  ;;  %v1682_v63 = vsel %vm4349_vm11, %v1677_v57, %v1681_v36  ;;  %v1684_v4 = vshrl.u32 %v4850_v23, 16  ;;  %v1687_v14 = vshll.u32 %v4850_v23, 16  ;;  %v4864_v35 = vld [vmem:[#allocation2 + $0x94] sm:$0xf]  ;;  %v560_v47 = vmax.f32 %v528_v19, 0.0 }
  0xa1   : > { %v4862_v48 = vcombine.low %v1672_v60, %v1682_v63  ;;  %5865 = vst [vmem:[#allocation20_spill] sm:$0xff] %v4864_v35  ;;  %v4866_v38 = vld [vmem:[#allocation2 + $0x98] sm:$0x1]  ;;  %v877_v13 = vshrl.u32 %v3736_v52, 16  ;;  %v1693_v34 = vshll.u32 %v4864_v35, 16  ;;  %v1697_v62 = vshrl.u32 %v4864_v35, 16 }
  0xa2   : > { %5866 = vst [vmem:[#allocation21_spill] sm:$0xff] %v4866_v38  ;;  %v1686_v33 = vrot.slane %v1684_v4, 4  ;;  %v1689_v36 = vrot.slane %v1687_v14, 5  ;;  %v1703_v31 = vshll.u32 %v4866_v38, 16  ;;  %v871_v20 = vrot.slane %v869_v56, 7 }
  0xa3   : > { %5864 = vst [vmem:[#allocation19_spill] sm:$0xff] %v4862_v48  ;;  %1931 = vrot.lane.b32.xlu0 %v4862_v48, %s4135_s8  ;;  %v879_v30 = vrot.slane %v877_v13, 7  ;;  %v880_v60 = vshll.u32 %v3736_v52, 16  ;;  %v1695_v63 = vrot.slane %v1693_v34, 5  ;;  %v1699_v39 = vrot.slane %v1697_v62, 4 }
  0xa4   : > { %v1690_v57 = vor.u32 %v1689_v36, %v1686_v33  ;;  %v1705_v18 = vrot.slane %v1703_v31, 5  ;;  %v874_v4 = vor.u32 %v872_v53, %v871_v20  ;;  %v875_v14 = vrot.slane %v871_v20, 4  ;;  %v4886_v36 = vld [vmem:[%s4211_s28 + $0x70] sm:$0xff]   ;;  %v383_v62 = vld [vmem:[#allocation2 + $0xbc] sm:$0x1] }
  0xa5   : > { %v882_v45 = vor.u32 %v880_v60, %v879_v30  ;;  %v1700_v2 = vor.u32 %v1699_v39, %v1695_v63  ;;  %v884_v16 = vrot.slane %v879_v30, 4  ;;  %v561_v23 = vmax.f32 %v529_v51, 0.0  ;;  %v4896_v30 = vpop.permute.xlu1 %1222  ;;  %v2447_v60 = vld [vmem:[#allocation2 + $0x48] sm:$0xe]  ;;  %v2448_v38 = vld [vmem:[#allocation2 + $0x54] sm:$0xe] }
  0xa6   : > { %v1691_v42 = vrot.slane %v1690_v57, 4  ;;  %v1072_v56 = vsel %vm4253_vm8, %v874_v4, %v1071_v55  ;;  %v3737_v19 = vpack.c.bf16 %v560_v47, %v560_v47  ;;  %v5867_v34 = vrot.slane %v4340_v1, 5  ;;  %v327_v55 = vld [vmem:[#allocation2 + $0xb4] sm:$0x1] }
  0xa7   : > { %1898 = vrot.lane.b32.xlu0 %v4862_v48, %s4134_s7  ;;  %v883_v52 = vsel %vm4247_vm7, %v875_v14, %v882_v45  ;;  %v1701_v13 = vrot.slane %v1700_v2, 4  ;;  %1073 = vst [vmem:[#allocation2 + $0x9c] sm:$0xf] %v1072_v56  ;;  %v1076_v51 = vsel %vm4182_vm2, %v884_v16, %v1075_v49  ;;  %v3738_v33 = vpack.c.bf16 %v561_v23, %v561_v23  ;;  %v4119_v23 = vld [vmem:[#allocation2 + $0x4c] sm:$0xf] }
  0xa8   : > { %v1696_v53 = vsel %vm4349_vm11, %v1691_v42, %v1695_v63  ;;  %1074 = vst.msk [vmem:[#allocation2 + $0xa0] sm:$0xf] %vm270_vm5, %v883_v52  ;;  %v2525_v45 = vsel %vm4579_vm14, %v3622_v6, %v5867_v34  ;;  %v2528_v47 = vsel %vm4579_vm14, %v2526_v59, %v2527_v7  ;;  %1077 = vst [vmem:[#allocation2 + $0xa4] sm:$0x1] %v1076_v51  ;;  %v886_v42 = vshrl.u32 %v3737_v19, 16 }
  0xa9   : > { %v889_v2 = vshll.u32 %v3737_v19, 16  ;;  %v1706_v31 = vsel %vm4349_vm11, %v1701_v13, %v1705_v18  ;;  %v894_v16 = vshrl.u32 %v3738_v33, 16  ;;  %v897_v49 = vshll.u32 %v3738_v33, 16  ;;  %v1078_v59 = vld [vmem:[#allocation2 + $0xa8] sm:$0xf] }
  0xaa   : > { %v2538_v20 = vrot.slane %v4119_v23, 5  ;;  %v4898_v1 = vcombine.low %v1696_v53, %v1706_v31  ;;  %v888_v6 = vrot.slane %v886_v42, 7  ;;  %v328_v7 = vsel %vm4182_vm2, 0, %v327_v55  ;;  %v1082_v19 = vld [vmem:[#allocation2 + $0xb0] sm:$0x1] }
  0xab   : > { %v896_v57 = vrot.slane %v894_v16, 7  ;;  %v384_v63 = vsel %vm4192_vm4, 0, %v383_v62  ;;  %v3833_v39 = vunpack.c.l.bf16 %v4886_v36  ;;  %v4909_v18 = vcombine.low %v2525_v45, %v2528_v47  ;;  %329 = vst [vmem:[#allocation2 + $0xb4] sm:$0x1] %v328_v7  ;;  %v386_v7 = vld [vmem:[#allocation2 + $0xc8] sm:$0x1] }
  0xac   : > { %5868 = vst [vmem:[#allocation22_spill] sm:$0xff] %v4898_v1  ;;  %1933 = vrot.lane.b32.xlu1 %v4898_v1, %s4135_s8  ;;  %1900 = vrot.lane.b32.xlu0 %v4898_v1, %s4134_s7  ;;  %v891_v4 = vor.u32 %v889_v2, %v888_v6  ;;  %v892_v14 = vrot.slane %v888_v6, 4  ;;  %385 = vst [vmem:[#allocation2 + $0xbc] sm:$0x1] %v384_v63  ;;  %v3624_v53 = vrot.slane %v2447_v60, 9  ;;  %v2540_v13 = vrot.slane %v2538_v20, 4 }
  0xad   : > { %5869 = vst [vmem:[#allocation23_spill] sm:$0xff] %v4909_v18  ;;  %v899_v52 = vor.u32 %v897_v49, %v896_v57  ;;  %v901_v56 = vrot.slane %v896_v57, 4  ;;  %v3834_v42 = vunpack.c.h.bf16 %v4886_v36  ;;  %v491_v45 = vmul.f32 %v4716_v37, %v3833_v39  ;;  %v4927_v49 = vpop.permute.xlu0 %1220  ;;  %v4933_v36 = vpop.permute.xlu1 %1257 }
  0xae   : > { %v4911_v51 = vld [vmem:[#allocation2 + $0x9c] sm:$0xf]  ;;  %v1079_v34 = vsel %vm4253_vm8, %v891_v4, %v1078_v59  ;;  %v4136_v16 = vmov 0   ;;  %v2541_v57 = vrot.slane %v4551_v44, 5  ;;  %v330_v59 = vld [vmem:[#allocation2 + $0xc0] sm:$0x1]  ;;  %v4949_v1 = vsel %vm4579_vm14, %v3624_v53, %v2538_v20 }
  0xaf   : > { %v4913_v33 = vld [vmem:[#allocation2 + $0xa0] sm:$0xf]  ;;  %v4919_v47 = vld [vmem:[#allocation2 + $0xa4] sm:$0x1]  ;;  %v1708_v2 = vshrl.u32 %v4911_v51, 16  ;;  %v1711_v55 = vshll.u32 %v4911_v51, 16  ;;  %v900_v6 = vsel %vm4247_vm7, %v892_v14, %v899_v52  ;;  %v1083_v60 = vsel %vm4182_vm2, %v901_v56, %v1082_v19 }
  0xb0   : > { %v1717_v62 = vshll.u32 %v4913_v33, 16  ;;  %v1721_v31 = vshrl.u32 %v4913_v33, 16  ;;  %1080 = vst [vmem:[#allocation2 + $0xa8] sm:$0xf] %v1079_v34  ;;  %271 = vst.msk [vmem:[#allocation2] sm:$0xf] %vm270_vm5, %v4136_v16  ;;  %2714 = vrot.lane.b32.xlu1 %v4909_v18, %s4135_s8  ;;  %2681 = vrot.lane.b32.xlu0 %v4909_v18, %s4134_s7  ;;  %v492_v14 = vmul.f32 %v4716_v37, %v3834_v42 }
  0xb1   : > { %272 = vst.msk [vmem:[#allocation2 + $0x4] sm:$0xf] %vm270_vm5, %v4136_v16  ;;  %276 = vst.msk [vmem:[#allocation2 + $0xcc] sm:$0xf] %vm270_vm5, %v4136_v16  ;;  %v1727_v23 = vshll.u32 %v4919_v47, 16  ;;  %v1710_v63 = vrot.slane %v1708_v2, 4  ;;  %v530_v52 = vadd.f32 %v4735_v50, %v491_v45 }
  0xb2   : > { %274 = vst.msk [vmem:[#allocation2 + $0x8] sm:$0x1] %vm273_vm0, %v4136_v16  ;;  %278 = vst.msk [vmem:[#allocation2 + $0xd4] sm:$0x1] %vm273_vm0, %v4136_v16  ;;  %v1713_v39 = vrot.slane %v1711_v55, 5  ;;  %v1719_v4 = vrot.slane %v1717_v62, 5  ;;  %v531_v42 = vadd.f32 %v4735_v50, %v492_v14 }
  0xb3   : > { %277 = vst.msk [vmem:[#allocation2 + $0xd0] sm:$0xf] %vm270_vm5, %v4136_v16  ;;  %v1723_v34 = vrot.slane %v1721_v31, 4  ;;  %1081 = vst.msk [vmem:[#allocation2 + $0xac] sm:$0xf] %vm270_vm5, %v900_v6  ;;  %v3853_v16 = vld [vmem:[%s4211_s28 + $0x78] sm:$0xff]   ;;  %v4972_v6 = vsel %vm4579_vm14, %v2540_v13, %v2541_v57 }
  0xb4   : > { %1084 = vst [vmem:[#allocation2 + $0xb0] sm:$0x1] %v1083_v60  ;;  %v1729_v18 = vrot.slane %v1727_v23, 5  ;;  %v4956_v44 = vld [vmem:[%s5790_s3 + $0x8] ss:$0 sps:$4 sm:$0xff]   ;;  %v1714_v19 = vor.u32 %v1713_v39, %v1710_v63  ;;  %v331_v20 = vsel %vm4182_vm2, 0, %v330_v59  ;;  %2716 = vrot.lane.b32.xlu1 %v4821_v32, %s4135_s8  ;;  %v3837_v55 = vunpack.c.l.bf16 %v3853_v16  ;;  %v4974_v60 = vpop.permute.xlu0 %1259  ;;  %v4976_v59 = vpop.permute.xlu1 %1261 }
  0xb5   : > { %5870 = vst [vmem:[#allocation24_spill] sm:$0xff] %v4956_v44  ;;  %v4961_v56 = vld [vmem:[%s5790_s3 + $0x14] ss:$0 sps:$4 sm:$0xff]   ;;  %v1724_v2 = vor.u32 %v1723_v34, %v1719_v4  ;;  %v387_v53 = vsel %vm4192_vm4, 0, %v386_v7  ;;  %v562_v45 = vmax.f32 %v530_v52, 0.0  ;;  %v3838_v62 = vunpack.c.h.bf16 %v3853_v16  ;;  %4085 = vmatprep.subr.msk.bf16.mxu0 %vm2071_vm15, %v4956_v44 }
  0xb6   : > { %332 = vst [vmem:[#allocation2 + $0xc0] sm:$0x1] %v331_v20  ;;  %388 = vst [vmem:[#allocation2 + $0xc8] sm:$0x1] %v387_v53  ;;  %v1715_v31 = vrot.slane %v1714_v19, 4  ;;  %v563_v63 = vmax.f32 %v531_v42, 0.0  ;;  %v493_v34 = vmul.f32 %v4716_v37, %v3837_v55  ;;  %4084 = vmatprep.subr.msk.bf16.mxu1 %vm2071_vm15, %v4961_v56 }
  0xb7   : > { %v1725_v23 = vrot.slane %v1724_v2, 4  ;;  %v4978_v7 = vld [vmem:[#allocation2 + $0xa8] sm:$0xf]  ;;  %v3739_v39 = vpack.c.bf16 %v562_v45, %v562_v45  ;;  %v494_v14 = vmul.f32 %v4716_v37, %v3838_v62  ;;  %v282_v19 = vld [vmem:[#allocation2] sm:$0x1]  ;;  %vm2038_vm6 = vcmask 195584  }
  0xb8   : > { %v1720_v13 = vsel %vm4349_vm11, %v1715_v31, %v1719_v4  ;;  %v1732_v16 = vshrl.u32 %v4978_v7, 16  ;;  %v1735_v52 = vshll.u32 %v4978_v7, 16  ;;  %2683 = vrot.lane.b32.xlu1 %v4821_v32, %s4134_s7  ;;  %v3740_v53 = vpack.c.bf16 %v563_v63, %v563_v63  ;;  %v1085_v63 = vld [vmem:[#allocation2 + $0xb4] sm:$0xf] }
  0xb9   : > { %v1730_v57 = vsel %vm4349_vm11, %v1725_v23, %v1729_v18  ;;  %v903_v42 = vshrl.u32 %v3739_v39, 16  ;;  %v906_v4 = vshll.u32 %v3739_v39, 16  ;;  %v283_v39 = vsel %vm4182_vm2, 0, %v282_v19  ;;  %v5016_v19 = vld [vmem:[%s5790_s3 + $0x18] sm:$0xff]  }
  0xba   : > { %v4992_v2 = vcombine.low %v1720_v13, %v1730_v57  ;;  %v4996_v37 = vld [vmem:[#allocation2 + $0xac] sm:$0xf]  ;;  %v1734_v45 = vrot.slane %v1732_v16, 4  ;;  %v1737_v55 = vrot.slane %v1735_v52, 5  ;;  %v911_v13 = vshrl.u32 %v3740_v53, 16  ;;  %v5007_v16 = vpop.permute.xlu0 %1224  ;;  %v5009_v52 = vpop.permute.xlu1 %1265 }
  0xbb   : > { %v4998_v20 = vld [vmem:[#allocation2 + $0xb0] sm:$0x1]  ;;  %v1741_v18 = vshll.u32 %v4996_v37, 16  ;;  %v1745_v62 = vshrl.u32 %v4996_v37, 16  ;;  %v905_v23 = vrot.slane %v903_v42, 7  ;;  %v914_v57 = vshll.u32 %v3740_v53, 16 }
  0xbc   : > { %5871 = vst [vmem:[#allocation25_spill] sm:$0xff] %v4992_v2  ;;  %1935 = vrot.lane.b32.xlu0 %v4992_v2, %s4135_s8  ;;  %v1751_v31 = vshll.u32 %v4998_v20, 16  ;;  %v1738_v32 = vor.u32 %v1737_v55, %v1734_v45  ;;  %v913_v58 = vrot.slane %v911_v13, 7  ;;  %284 = vst [vmem:[#allocation2] sm:$0x1] %v283_v39  ;;  %v3625_v39 = vrot.slane %v2448_v38, 9 }
  0xbd   : > { %v1743_v48 = vrot.slane %v1741_v18, 5  ;;  %v1747_v22 = vrot.slane %v1745_v62, 4  ;;  %v908_v29 = vor.u32 %v906_v4, %v905_v23  ;;  %v909_v35 = vrot.slane %v905_v23, 4  ;;  %v1089_v55 = vld [vmem:[#allocation2 + $0xbc] sm:$0x1] }
  0xbe   : > { %v1739_v42 = vrot.slane %v1738_v32, 4  ;;  %v1753_v45 = vrot.slane %v1751_v31, 5  ;;  %v532_v18 = vadd.f32 %v4735_v50, %v493_v34  ;;  %v916_v62 = vor.u32 %v914_v57, %v913_v58  ;;  %v5029_v13 = vpop.permute.xlu1 %1913 }
  0xbf   : > { %v1748_v53 = vor.u32 %v1747_v22, %v1743_v48  ;;  %v918_v25 = vrot.slane %v913_v58, 4  ;;  %v1086_v4 = vsel %vm4253_vm8, %v908_v29, %v1085_v63  ;;  %v533_v32 = vadd.f32 %v4735_v50, %v494_v14  ;;  %v5040_v63 = vld [vmem:[#allocation2 + $0x4] sm:$0xf] }
  0xc0   : > { %1902 = vrot.lane.b32.xlu0 %v4992_v2, %s4134_s7  ;;  %v1744_v22 = vsel %vm4349_vm11, %v1739_v42, %v1743_v48  ;;  %1087 = vst [vmem:[#allocation2 + $0xb4] sm:$0xf] %v1086_v4  ;;  %v564_v34 = vmax.f32 %v532_v18, 0.0  ;;  %v5027_v23 = vsel %vm2071_vm15, %v4956_v44, 0  ;;  %v917_v58 = vsel %vm4247_vm7, %v909_v35, %v916_v62  ;;  %v5042_v42 = vpop.permute.xlu0 %1226 }
  0xc1   : > { %v1749_v31 = vrot.slane %v1748_v53, 4  ;;  %5872 = vst [vmem:[#allocation26_spill] sm:$0xff] %v5027_v23  ;;  %v1090_v29 = vsel %vm4182_vm2, %v918_v25, %v1089_v55  ;;  %v565_v50 = vmax.f32 %v533_v32, 0.0  ;;  %3947 = vmatpush3.bf16.msra.mxu0 %v5027_v23  ;;  %v2547_v14 = vrot.slane %v2545_v9, 4  ;;  %1088 = vst.msk [vmem:[#allocation2 + $0xb8] sm:$0xf] %vm270_vm5, %v917_v58 }
  0xc2   : > { %v2548_v57 = vrot.slane %v4622_v10, 5  ;;  %1091 = vst [vmem:[#allocation2 + $0xbc] sm:$0x1] %v1090_v29  ;;  %v3741_v38 = vpack.c.bf16 %v564_v34, %v564_v34  ;;  %3980 = vmatprep.subr.bf16.mxu0 %v5016_v19  ;;  %v5049_v10 = vpop.permute.xlu1 %1915  ;;  %v5057_v62 = vcombine.low %v4949_v1, %v4972_v6  ;;  %v2546_v25 = vsel %vm4579_vm14, %v3625_v39, %v2545_v9  ;;  %v1092_v9 = vld [vmem:[#allocation2 + $0xc0] sm:$0xf] }
  0xc3   : > { %v1754_v48 = vsel %vm4349_vm11, %v1749_v31, %v1753_v45  ;;  %v3742_v53 = vpack.c.bf16 %v565_v50, %v565_v50  ;;  %v5047_v55 = vld [vmem:[#allocation2] sm:$0xf]  ;;  %v1295_v31 = vsel %vm1289_vm1, %v4317_v26, %v4896_v30  ;;  %v1298_v11 = vsel %vm1289_vm1, %v4307_v12, %v5007_v16 }
  0xc4   : > { %v5045_v35 = vcombine.low %v1744_v22, %v1754_v48  ;;  %v920_v45 = vshrl.u32 %v3741_v38, 16  ;;  %v923_v18 = vshll.u32 %v3741_v38, 16  ;;  %5874 = vst [vmem:[#allocation28_spill] sm:$0xff] %v5057_v62  ;;  %v3543_v4 = vcombine.low %v5047_v55, %v5040_v63  ;;  %v5077_v50 = vld [vmem:[%s5790_s3 + $0x20] ss:$0 sps:$4 sm:$0xff]  }
  0xc5   : > { %v928_v32 = vshrl.u32 %v3742_v53, 16  ;;  %v2549_v22 = vsel %vm4579_vm14, %v2547_v14, %v2548_v57  ;;  %v931_v58 = vshll.u32 %v3742_v53, 16  ;;  %v1342_v39 = vsel %vm1338_vm3, %v1295_v31, %v4974_v60  ;;  %5875 = vst [vmem:[#allocation29_spill] sm:$0xff] %v5077_v50  ;;  %v1096_v57 = vld [vmem:[#allocation2 + $0xc8] sm:$0x1] }
  0xc6   : > { %5873 = vst [vmem:[#allocation27_spill] sm:$0xff] %v5045_v35  ;;  %1937 = vrot.lane.b32.xlu1 %v5045_v35, %s4135_s8  ;;  %1904 = vrot.lane.b32.xlu0 %v5045_v35, %s4134_s7  ;;  %v922_v34 = vrot.slane %v920_v45, 7  ;;  %v1292_v1 = vsel %vm1289_vm1, %v3543_v4, %v4927_v49  ;;  %v1264_v38 = vpop.permute.xlu0 %1263  ;;  %v5085_v49 = vcombine.low %v2546_v25, %v2549_v22  ;;  %v333_v25 = vld [vmem:[#allocation2 + $0xcc] sm:$0x1]  ;;  %v3626_v16 = vrot.slane %v2449_v5, 9 }
  0xc7   : > { %v5068_v29 = vld [vmem:[#allocation2 + $0xb4] sm:$0xf]  ;;  %v930_v6 = vrot.slane %v928_v32, 7  ;;  %v5093_v32 = vpop.permute.xlu1 %1882  ;;  %v2073_v3 = vsel %vm2071_vm15, %v4961_v56, 0  ;;  %v5229_v56 = vld [vmem:[%s5790_s3] sm:$0xff]  }
  0xc8   : > { %v1756_v26 = vshrl.u32 %v5068_v29, 16  ;;  %v1759_v30 = vshll.u32 %v5068_v29, 16  ;;  %v925_v48 = vor.u32 %v923_v18, %v922_v34  ;;  %v926_v14 = vrot.slane %v922_v34, 4  ;;  %5876 = vst [vmem:[#allocation30_spill] sm:$0xff] %v5085_v49  ;;  %v5087_v60 = vld [vmem:[#allocation2 + $0xb8] sm:$0xf]  ;;  %3911 = vmatpush3.bf16.msra.mxu1 %v2073_v3 }
  0xc9   : > { %v5089_v53 = vld [vmem:[#allocation2 + $0xbc] sm:$0x1]  ;;  %v933_v45 = vor.u32 %v931_v58, %v930_v6  ;;  %v935_v4 = vrot.slane %v930_v6, 4  ;;  %v1340_v18 = vsel %vm1338_vm3, %v1292_v1, %v4933_v36  ;;  %v1765_v35 = vshll.u32 %v5087_v60, 16  ;;  %v389_v1 = vld [vmem:[#allocation2 + $0xd4] sm:$0x1]  ;;  %4016 = vmatprep.subr.bf16.mxu1 %v5229_v56 }
  0xca   : > { %2718 = vrot.lane.b32.xlu1 %v5057_v62, %s4135_s8  ;;  %2685 = vrot.lane.b32.xlu0 %v5057_v62, %s4134_s7  ;;  %v1758_v31 = vrot.slane %v1756_v26, 4  ;;  %v1761_v34 = vrot.slane %v1759_v30, 5  ;;  %v1769_v2 = vshrl.u32 %v5087_v60, 16  ;;  %v1775_v22 = vshll.u32 %v5089_v53, 16  ;;  %v5106_v26 = vld [vmem:[#allocation2 + $0xd0] sm:$0xf] }
  0xcb   : > { %3948 = vmatprep.mubr.msk.bf16.mxu0 %vm2038_vm6, %v1340_v18  ;;  %v934_v58 = vsel %vm4247_vm7, %v926_v14, %v933_v45  ;;  %v1093_v6 = vsel %vm4253_vm8, %v925_v48, %v1092_v9  ;;  %v1097_v36 = vsel %vm4182_vm2, %v935_v4, %v1096_v57  ;;  %5877 = vst [vmem:[#allocation31_spill] sm:$0xff] %v5106_v26  ;;  %v1767_v62 = vrot.slane %v1765_v35, 5  ;;  %v1229_v9 = vpop.permute.xlu0 %1228  ;;  %v5125_v0 = vpop.permute.xlu1 %1917 }
  0xcc   : > { %3949 = vmatmul.mubr.msk.bf16.vlgmr.msra.gmra.mrb[0].mxu0 %vm2038_vm6, %v1342_v39  ;;  %v1762_v30 = vor.u32 %v1761_v34, %v1758_v31  ;;  %v1771_v18 = vrot.slane %v1769_v2, 4  ;;  %1094 = vst [vmem:[#allocation2 + $0xc0] sm:$0xf] %v1093_v6  ;;  %1095 = vst.msk [vmem:[#allocation2 + $0xc4] sm:$0xf] %vm270_vm5, %v934_v58  ;;  %v1777_v39 = vrot.slane %v1775_v22, 5  ;;  %v1344_v57 = vsel %vm1338_vm3, %v1298_v11, %v4976_v59 }
  0xcd   : > { %1098 = vst [vmem:[#allocation2 + $0xc8] sm:$0x1] %v1097_v36  ;;  %3981 = vmatpush3.bf16.msra.mxu0 %v5016_v19  ;;  %v334_v35 = vsel %vm4182_vm2, 0, %v333_v25  ;;  %v390_v14 = vsel %vm4192_vm4, 0, %v389_v1  ;;  %v1813_v12 = vshll.u32 %v5106_v26, 16  ;;  %v1817_v19 = vshrl.u32 %v5106_v26, 16  ;;  %3952 = vmatprep.mubr.msk.bf16.mxu0 %vm2038_vm6, %v1344_v57 }
  0xce   : > { %2720 = vrot.lane.b32.xlu1 %v5085_v49, %s4135_s8  ;;  %4087 = vmatprep.subr.msk.bf16.mxu0 %vm2071_vm15, %v5077_v50  ;;  %v1763_v2 = vrot.slane %v1762_v30, 4  ;;  %v1772_v48 = vor.u32 %v1771_v18, %v1767_v62  ;;  %335 = vst [vmem:[#allocation2 + $0xcc] sm:$0x1] %v334_v35  ;;  %391 = vst [vmem:[#allocation2 + $0xd4] sm:$0x1] %v390_v14  ;;  %v1301_v31 = vsel %vm1289_vm1, %v4329_v41, %v5042_v42 }
  0xcf   : > { %v5133_v34 = vpop.permute.xlu0 %1230  ;;  %v4120_v59 = vld [vmem:[#allocation2 + $0x64] sm:$0xf]  ;;  %v4121_v58 = vld [vmem:[#allocation2 + $0x68] sm:$0x1]  ;;  %v5141_v1 = vrot.slane %v1813_v12, 5  ;;  %v1819_v30 = vrot.slane %v1817_v19, 4  ;;  %v1304_v41 = vsel %vm1289_vm1, %v4344_v15, %v1229_v9 }
  0xd0   : > { %v1768_v45 = vsel %vm4349_vm11, %v1763_v2, %v1767_v62  ;;  %v1773_v4 = vrot.slane %v1772_v48, 4  ;;  %v2552_v22 = vrot.slane %v4120_v59, 5  ;;  %v2555_v6 = vrot.slane %v4121_v58, 5 }
  0xd1   : > { %v1346_v62 = vsel %vm1338_vm3, %v1301_v31, %v1264_v38  ;;  %v1396_v14 = vshrl.u32 %v5047_v55, 16  ;;  %v1399_v12 = vshll.u32 %v5047_v55, 16  ;;  %v1820_v55 = vor.u32 %v1819_v30, %v5141_v1 }
  0xd2   : > { %2687 = vrot.lane.b32.xlu1 %v5085_v49, %s4134_s7  ;;  %v1778_v36 = vsel %vm4349_vm11, %v1773_v4, %v1777_v39  ;;  %v2553_v38 = vsel %vm4579_vm14, %v3626_v16, %v2552_v22  ;;  %v1348_v39 = vsel %vm1338_vm3, %v1304_v41, %v5009_v52  ;;  %v2554_v16 = vrot.slane %v2552_v22, 4  ;;  %v2450_v49 = vld [vmem:[#allocation2 + $0x6c] sm:$0xe] }
  0xd3   : > { %v5145_v42 = vcombine.low %v1768_v45, %v1778_v36  ;;  %v5147_v18 = vld [vmem:[#allocation2 + $0xc0] sm:$0xf]  ;;  %v5149_v5 = vld [vmem:[#allocation2 + $0xc4] sm:$0xf]  ;;  %v5163_v48 = vpop.permute.xlu0 %1878  ;;  %v1401_v23 = vrot.slane %v1399_v12, 5  ;;  %v3627_v44 = vrot.slane %v2450_v49, 9 }
  0xd4   : > { %v5151_v11 = vld [vmem:[#allocation2 + $0xc8] sm:$0x1]  ;;  %3953 = vmatmul.mubr.msk.bf16.gmra.mrb[4].mxu0 %vm2038_vm6, %v1346_v62  ;;  %v1780_v35 = vshrl.u32 %v5147_v18, 16  ;;  %v1783_v15 = vshll.u32 %v5147_v18, 16  ;;  %v1789_v9 = vshll.u32 %v5149_v5, 16  ;;  %v1793_v2 = vshrl.u32 %v5149_v5, 16  ;;  %v5172_v57 = vpop.permute.xlu1 %1919 }
  0xd5   : > { %5878 = vst [vmem:[#allocation32_spill] sm:$0xff] %v5145_v42  ;;  %3956 = vmatprep.mubr.msk.bf16.mxu0 %vm2038_vm6, %v1348_v39  ;;  %1939 = vrot.lane.b32.xlu0 %v5145_v42, %s4135_s8  ;;  %v1799_v52 = vshll.u32 %v5151_v11, 16  ;;  %v5170_v19 = vld [vmem:[#allocation2 + $0xcc] sm:$0xf]  ;;  %5880 = vst [vmem:[#allocation34_spill] sm:$0xff] %v5172_v57  ;;  %v2559_v62 = vrot.slane %v4728_v27, 5  ;;  %v2556_v27 = vsel %vm4579_vm14, %v2554_v16, %v2555_v6 }
  0xd6   : > { %5879 = vst [vmem:[#allocation33_spill] sm:$0xff] %v5170_v19  ;;  %v1782_v45 = vrot.slane %v1780_v35, 4  ;;  %v1785_v4 = vrot.slane %v1783_v15, 5  ;;  %v1791_v31 = vrot.slane %v1789_v9, 5  ;;  %v1795_v59 = vrot.slane %v1793_v2, 4 }
  0xd7   : > { %v5174_v58 = vld [vmem:[#allocation2 + $0xd4] sm:$0x1]  ;;  %v1804_v36 = vshrl.u32 %v5170_v19, 16  ;;  %v1807_v41 = vshll.u32 %v5170_v19, 16  ;;  %v1801_v25 = vrot.slane %v1799_v52, 5  ;;  %v5181_v35 = vpop.permute.xlu0 %1880  ;;  %v5185_v15 = vrot.slane %v1396_v14, 4 }
  0xd8   : > { %5881 = vst [vmem:[#allocation35_spill] sm:$0xff] %v5174_v58  ;;  %v1786_v39 = vor.u32 %v1785_v4, %v1782_v45  ;;  %v1796_v22 = vor.u32 %v1795_v59, %v1791_v31  ;;  %v1823_v57 = vshll.u32 %v5174_v58, 16  ;;  %v2451_v4 = vld [vmem:[#allocation2 + $0x78] sm:$0xe]  ;;  %v2566_v52 = vrot.slane %v4752_v28, 5  ;;  %v5190_v59 = vpop.permute.xlu1 %1886 }
  0xd9   : > { %1906 = vrot.lane.b32.xlu0 %v5145_v42, %s4134_s7  ;;  %v1806_v9 = vrot.slane %v1804_v36, 4  ;;  %v1809_v2 = vrot.slane %v1807_v41, 5  ;;  %5882 = vst [vmem:[#allocation36_spill] sm:$0xff] %v5190_v59  ;;  %v2561_v50 = vrot.slane %v2559_v62, 4  ;;  %v4122_v19 = vld [vmem:[#allocation2 + $0x74] sm:$0x1]  ;;  %v1950_v3 = vsel %vm1289_vm1, %v4549_v54, %v5181_v35 }
  0xda   : > { %v1787_v30 = vrot.slane %v1786_v39, 4  ;;  %v1797_v45 = vrot.slane %v1796_v22, 4  ;;  %v2562_v58 = vrot.slane %v4122_v19, 5  ;;  %v338_v14 = vld [vmem:[#allocation2 + $0x8] sm:$0x1]  ;;  %v1821_v12 = vrot.slane %v1820_v55, 4 }
  0xdb   : > { %v1810_v42 = vor.u32 %v1809_v2, %v1806_v9  ;;  %v1825_v16 = vrot.slane %v1823_v57, 5  ;;  %v5196_v36 = vpop.permute.xlu0 %1884  ;;  %v5198_v39 = vcombine.low %v2553_v38, %v2556_v27  ;;  %v3628_v49 = vrot.slane %v2451_v4, 9  ;;  %v2454_v27 = vld [vmem:[#allocation2 + $0x9c] sm:$0xe]  ;;  %v4124_v2 = vld [vmem:[#allocation2 + $0x78] sm:$0xf] }
  0xdc   : > { %v1792_v26 = vsel %vm4349_vm11, %v1787_v30, %v1791_v31  ;;  %v1802_v6 = vsel %vm4349_vm11, %v1797_v45, %v1801_v25  ;;  %v2568_v59 = vrot.slane %v2566_v52, 4  ;;  %v2569_v19 = vrot.slane %v4754_v43, 5 }
  0xdd   : > { %v3577_v41 = vcombine.low %v1792_v26, %v1802_v6  ;;  %v1811_v22 = vrot.slane %v1810_v42, 4  ;;  %v339_v9 = vsel %vm4192_vm4, 0, %v338_v14  ;;  %v1405_v31 = vshll.u32 %v5040_v63, 16 }
  0xde   : > { %v2560_v25 = vsel %vm4579_vm14, %v3627_v44, %v2559_v62  ;;  %v2563_v26 = vsel %vm4579_vm14, %v2561_v50, %v2562_v58  ;;  %340 = vst [vmem:[#allocation2 + $0x8] sm:$0x1] %v339_v9  ;;  %v5883_v42 = vshrl.u32 %v5040_v63, 16  ;;  %v1826_v57 = vsel %vm4349_vm11, %v1821_v12, %v1825_v16  ;;  %v5221_v44 = vpop.permute.xlu1 %1921  ;;  %v2452_v58 = vld [vmem:[#allocation2 + $0x84] sm:$0xe] }
  0xdf   : > { %1941 = vrot.lane.b32.xlu1 %v3577_v41, %s4135_s8  ;;  %1908 = vrot.lane.b32.xlu0 %v3577_v41, %s4134_s7  ;;  %v1816_v43 = vsel %vm4349_vm11, %v1811_v22, %v5141_v1  ;;  %v5219_v55 = vrot.slane %v1405_v31, 5  ;;  %v5223_v50 = vpop.permute.xlu0 %1888  ;;  %v1402_v62 = vor.u32 %v1401_v23, %v5185_v15  ;;  %v5232_v1 = vcombine.low %v2560_v25, %v2563_v26  ;;  %v2455_v41 = vld [vmem:[#allocation2 + $0xa8] sm:$0xe] }
  0xe0   : > { %v1411_v38 = vrot.slane %v5883_v42, 4  ;;  %v5235_v30 = vcombine.low %v4124_v2, %v4752_v28  ;;  %v2567_v45 = vsel %vm4579_vm14, %v3628_v49, %v2566_v52  ;;  %v2570_v23 = vsel %vm4579_vm14, %v2568_v59, %v2569_v19 }
  0xe1   : > { %v3578_v15 = vcombine.low %v1816_v43, %v1826_v57  ;;  %v1307_v4 = vsel %vm1289_vm1, %v4504_v61, %v5133_v34  ;;  %v2573_v28 = vrot.slane %v4816_v24, 5  ;;  %v3629_v6 = vrot.slane %v2452_v58, 9 }
  0xe2   : > { %v1412_v14 = vor.u32 %v1411_v38, %v5219_v55  ;;  %v3631_v52 = vrot.slane %v2454_v27, 9  ;;  %v2587_v12 = vrot.slane %v4913_v33, 5  ;;  %v2590_v59 = vrot.slane %v4919_v47, 5 }
  0xe3   : > { %2722 = vrot.lane.b32.xlu1 %v5198_v39, %s4135_s8  ;;  %2689 = vrot.lane.b32.xlu0 %v5198_v39, %s4134_s7  ;;  %v1268_v16 = vpop.permute.xlu0 %1267  ;;  %v5252_v22 = vcombine.low %v2567_v45, %v2570_v23  ;;  %v2576_v49 = vrot.slane %v4812_v40, 5  ;;  %v1403_v19 = vrot.slane %v1402_v62, 4  ;;  %v5257_v61 = vcombine.low %v4911_v51, %v4913_v33  ;;  %v2456_v40 = vld [vmem:[#allocation2 + $0xb4] sm:$0xe] }
  0xe4   : > { %v2588_v9 = vsel %vm4579_vm14, %v3631_v52, %v2587_v12  ;;  %v2589_v31 = vrot.slane %v2587_v12, 4  ;;  %v1350_v47 = vsel %vm1338_vm3, %v1307_v4, %v1268_v16  ;;  %v5268_v26 = vcombine.low %v4978_v7, %v4996_v37 }
  0xe5   : > { %v5259_v34 = vld [vmem:[#allocation2 + $0x8] sm:$0x1]  ;;  %v5263_v25 = vpop.permute.xlu1 %1923  ;;  %v2575_v51 = vrot.slane %v2573_v28, 4  ;;  %v1413_v33 = vrot.slane %v1412_v14, 4  ;;  %v3632_v38 = vrot.slane %v2455_v41, 9  ;;  %3957 = vmatmul.mubr.msk.bf16.gmra.mrb[8].mxu0 %vm2038_vm6, %v1350_v47  ;;  %v2594_v57 = vrot.slane %v4996_v37, 5 }
  0xe6   : > { %v1415_v42 = vshll.u32 %v5259_v34, 16  ;;  %v2591_v43 = vsel %vm4579_vm14, %v2589_v31, %v2590_v59  ;;  %v2597_v58 = vrot.slane %v4998_v20, 5  ;;  %v1408_v62 = vsel %vm4349_vm11, %v1403_v19, %v5219_v55  ;;  %v2457_v14 = vld [vmem:[#allocation2 + $0xc0] sm:$0xe]  ;;  %v5884_v47 = vld [vmem:[#allocation3_spill] sm:$0xff] }
  0xe7   : > { %2724 = vrot.lane.b32.xlu1 %v5232_v1, %s4135_s8  ;;  %1943 = vrot.lane.b32.xlu0 %v3578_v15, %s4135_s8  ;;  %v1233_v7 = vpop.permute.xlu0 %1232  ;;  %v5285_v2 = vcombine.low %v2588_v9, %v2591_v43  ;;  %v3633_v45 = vrot.slane %v2456_v40, 9  ;;  %v2595_v54 = vsel %vm4579_vm14, %v3632_v38, %v2594_v57  ;;  %v2596_v35 = vrot.slane %v2594_v57, 4 }
  0xe8   : > { %v1417_v27 = vrot.slane %v1415_v42, 5  ;;  %v2601_v15 = vrot.slane %v5087_v60, 5  ;;  %v2604_v37 = vrot.slane %v5089_v53, 5  ;;  %v2574_v20 = vsel %vm4579_vm14, %v3629_v6, %v2573_v28  ;;  %v2458_v6 = vld [vmem:[#allocation2 + $0xcc] sm:$0xe] }
  0xe9   : > { %v5287_v23 = vpop.permute.xlu1 %1890  ;;  %v5303_v4 = vcombine.low %v5068_v29, %v5087_v60  ;;  %v2598_v53 = vsel %vm4579_vm14, %v2596_v35, %v2597_v58  ;;  %v2577_v28 = vsel %vm4579_vm14, %v2575_v51, %v2576_v49  ;;  %v1996_v21 = vsel %vm1338_vm3, %v1950_v3, %v5049_v10  ;;  %v5889_v35 = vld [vmem:[#allocation29_spill] sm:$0xff] }
  0xea   : > { %v1418_v55 = vsel %vm4349_vm11, %v1413_v33, %v1417_v27  ;;  %v2602_v59 = vsel %vm4579_vm14, %v3633_v45, %v2601_v15  ;;  %v2603_v16 = vrot.slane %v2601_v15, 4  ;;  %v1310_v29 = vsel %vm1289_vm1, %v4422_v46, %v1233_v7  ;;  %v5886_v7 = vld [vmem:[#allocation35_spill] sm:$0xff] }
  0xeb   : > { %2691 = vrot.lane.b32.xlu1 %v5232_v1, %s4134_s7  ;;  %1236 = vrot.lane.b32.xlu0 %v4742_v8, %s4134_s7  ;;  %v3561_v52 = vcombine.low %v1408_v62, %v1418_v55  ;;  %v1235_v12 = vpop.permute.xlu0 %1234  ;;  %v5315_v60 = vcombine.low %v2595_v54, %v2598_v53  ;;  %v5323_v31 = vcombine.low %v5147_v18, %v5149_v5  ;;  %v3634_v49 = vrot.slane %v2457_v14, 9  ;;  %v5891_v55 = vld [vmem:[#allocation4_spill] sm:$0xff] }
  0xec   : > { %v2605_v9 = vsel %vm4579_vm14, %v2603_v16, %v2604_v37  ;;  %v1953_v40 = vsel %vm1289_vm1, %v5884_v47, %v5093_v32  ;;  %v2610_v51 = vrot.slane %v5149_v5, 5  ;;  %v2613_v33 = vrot.slane %v5151_v11, 5  ;;  %v5885_v32 = vld [vmem:[#allocation31_spill] sm:$0xff]  ;;  %v2453_v37 = vld [vmem:[#allocation2 + $0x90] sm:$0xe] }
  0xed   : > { %v1947_v41 = vsel %vm1289_vm1, %v3561_v52, %v5163_v48  ;;  %v1270_v19 = vpop.permute.xlu1 %1269  ;;  %v5332_v48 = vcombine.low %v2602_v59, %v2605_v9  ;;  %v3635_v42 = vrot.slane %v2458_v6, 9  ;;  %v1998_v3 = vsel %vm1338_vm3, %v1953_v40, %v5125_v0  ;;  %v5888_v0 = vld [vmem:[#allocation20_spill] sm:$0xff] }
  0xee   : > { %v1994_v46 = vsel %vm1338_vm3, %v1947_v41, %v5029_v13  ;;  %v1352_v10 = vsel %vm1338_vm3, %v1310_v29, %v1270_v19  ;;  %v4125_v13 = vld [vmem:[#allocation2 + $0x84] sm:$0xf]  ;;  %v2619_v43 = vrot.slane %v5885_v32, 5  ;;  %v2622_v57 = vrot.slane %v5886_v7, 5  ;;  %v5893_v29 = vld [vmem:[#allocation26_spill] sm:$0xff]  ;;  %v5894_v41 = vld [vmem:[#allocation21_spill] sm:$0xff] }
  0xef   : > { %1273 = vrot.lane.b32.xlu1 %v5235_v30, %s4135_s8  ;;  %1238 = vrot.lane.b32.xlu0 %v5235_v30, %s4134_s7  ;;  %v5339_v18 = vpop.permute.xlu0 %1892  ;;  %v5344_v38 = vcombine.low %v4125_v13, %v4816_v24  ;;  %v5351_v58 = vcombine.low %v2574_v20, %v2577_v28  ;;  %v2611_v5 = vsel %vm4579_vm14, %v3634_v49, %v2610_v51  ;;  %v2612_v11 = vrot.slane %v2610_v51, 4  ;;  %v5887_v24 = vld [vmem:[#allocation33_spill] sm:$0xff]  ;;  %v5890_v20 = vld [vmem:[#allocation24_spill] sm:$0xff] }
  0xf0   : > { %3912 = vmatprep.mubr.msk.bf16.mxu1 %vm2038_vm6, %v1994_v46  ;;  %3960 = vmatprep.mubr.msk.bf16.mxu0 %vm2038_vm6, %v1352_v10  ;;  %v3560_v62 = vcombine.low %v5887_v24, %v5885_v32  ;;  %v2580_v27 = vrot.slane %v5888_v0, 5  ;;  %v5366_v45 = vsel %vm4579_vm14, %v3635_v42, %v2619_v43  ;;  %v2621_v54 = vrot.slane %v2619_v43, 4  ;;  %v5892_v59 = vld [vmem:[#allocation8_spill] sm:$0xff]  ;;  %v5897_v10 = vld [vmem:[#allocation34_spill] sm:$0xff] }
  0xf1   : > { %3913 = vmatmul.mubr.msk.bf16.vlgmr.msra.gmra.mrb[0].mxu1 %vm2038_vm6, %v1996_v21  ;;  %v2868_v15 = vsel %vm2071_vm15, %v5889_v35, 0  ;;  %v1956_v14 = vsel %vm1289_vm1, %v5891_v55, %v5196_v36  ;;  %v1313_v16 = vsel %vm1289_vm1, %v5892_v59, %v1235_v12  ;;  %v3630_v36 = vrot.slane %v2453_v37, 9  ;;  %v5895_v49 = vld [vmem:[#allocation36_spill] sm:$0xff]  ;;  %v5896_v12 = vld [vmem:[#allocation5_spill] sm:$0xff]  ;;  %v1926_v40 = vpop.permute.xlu1 %1925  ;;  %v5909_v32 = vld [vmem:[#allocation22_spill] sm:$0xff] }
  0xf2   : > { %3916 = vmatprep.mubr.msk.bf16.mxu1 %vm2038_vm6, %v1998_v3  ;;  %4018 = vmatpush3.bf16.msra.mxu1 %v5229_v56  ;;  %v2614_v56 = vsel %vm4579_vm14, %v2612_v11, %v2613_v33  ;;  %v5381_v53 = vsel %vm4579_vm14, %v2621_v54, %v2622_v57  ;;  %v2582_v6 = vrot.slane %v2580_v27, 4  ;;  %v2583_v19 = vrot.slane %v5894_v41, 5  ;;  %v5898_v33 = vld [vmem:[#allocation18_spill] sm:$0xff]  ;;  %v2441_v43 = vld [vmem:[#allocation2] sm:$0xe]  ;;  %v5900_v11 = vld [vmem:[#allocation7_spill] sm:$0xff] }
  0xf3   : > { %2726 = vrot.lane.b32.xlu1 %v5252_v22, %s4135_s8  ;;  %2693 = vrot.lane.b32.xlu0 %v5252_v22, %s4134_s7  ;;  %v5377_v52 = vcombine.low %v2611_v5, %v2614_v56  ;;  %v3653_v21 = vcombine.low %v5366_v45, %v5381_v53  ;;  %v1959_v46 = vsel %vm1289_vm1, %v5896_v12, %v5895_v49  ;;  %v2496_v3 = vrot.slane %v5040_v63, 5  ;;  %v5899_v57 = vld [vmem:[#allocation6_spill] sm:$0xff] }
  0xf4   : > { %3983 = vmatpush3.bf16.msra.mxu0 %v2868_v15  ;;  %4086 = vmatprep.subr.msk.bf16.mxu1 %vm2071_vm15, %v5890_v20  ;;  %v2000_v47 = vsel %vm1338_vm3, %v1956_v14, %v5897_v10  ;;  %v2002_v51 = vsel %vm1338_vm3, %v1959_v46, %v5221_v44  ;;  %v5410_v42 = vcombine.low %v5898_v33, %v5888_v0  ;;  %v2499_v15 = vrot.slane %v5259_v34, 5  ;;  %v5901_v20 = vld [vmem:[#allocation10_spill] sm:$0xff] }
  0xf5   : > { %v1272_v28 = vpop.permute.xlu0 %1271  ;;  %v2581_v13 = vsel %vm4579_vm14, %v3630_v36, %v2580_v27  ;;  %v2584_v44 = vsel %vm4579_vm14, %v2582_v6, %v2583_v19  ;;  %v1962_v5 = vsel %vm1289_vm1, %v5899_v57, %v5223_v50  ;;  %v1965_v0 = vsel %vm1289_vm1, %v5900_v11, %v5287_v23  ;;  %v5903_v19 = vld [vmem:[#allocation13_spill] sm:$0xff]  ;;  %v5904_v46 = vld [vmem:[#allocation14_spill] sm:$0xff] }
  0xf6   : > { %4019 = vmatpush3.bf16.msra.mxu1 %v5893_v29  ;;  %v1354_v9 = vsel %vm1338_vm3, %v1313_v16, %v1272_v28  ;;  %v5417_v7 = vcombine.low %v2581_v13, %v2584_v44  ;;  %v2006_v63 = vsel %vm1338_vm3, %v1965_v0, %v1926_v40  ;;  %v3618_v27 = vrot.slane %v2441_v43, 9  ;;  %v5902_v16 = vld [vmem:[#allocation12_spill] sm:$0xff]  ;;  %v5905_v13 = vld [vmem:[#allocation15_spill] sm:$0xff] }
  0xf7   : > { %2728 = vrot.lane.b32.xlu1 %v5351_v58, %s4135_s8  ;;  %1275 = vrot.lane.b32.xlu0 %v5344_v38, %s4135_s8  ;;  %v2498_v35 = vrot.slane %v2496_v3, 4  ;;  %v2004_v50 = vsel %vm1338_vm3, %v1962_v5, %v5263_v25  ;;  %v1968_v25 = vsel %vm1289_vm1, %v5901_v20, %v5339_v18  ;;  %v5906_v5 = vld [vmem:[#allocation11_spill] sm:$0xff] }
  0xf8   : > { %3961 = vmatmul.mubr.msk.bf16.gmra.mrb[12].mxu0 %vm2038_vm6, %v1354_v9  ;;  %v2497_v56 = vsel %vm4579_vm14, %v3618_v27, %v2496_v3 }
  0xf9   : > { %3917 = vmatmul.mubr.msk.bf16.gmra.mrb[4].mxu1 %vm2038_vm6, %v2000_v47  ;;  %v2500_v34 = vsel %vm4579_vm14, %v2498_v35, %v2499_v15  ;;  %v5908_v15 = vld [vmem:[#allocation19_spill] sm:$0xff] }
  0xfa   : > { %3920 = vmatprep.mubr.msk.bf16.mxu1 %vm2038_vm6, %v2002_v51  ;;  %v3636_v59 = vcombine.low %v2497_v56, %v2500_v34  ;;  %v5910_v34 = vld [vmem:[#allocation23_spill] sm:$0xff] }
  0xfb   : > { %2695 = vrot.lane.b32.xlu1 %v5351_v58, %s4134_s7  ;;  %1240 = vrot.lane.b32.xlu0 %v5344_v38, %s4134_s7 }
  0xfd   : > { %v1928_v54 = vpop.permute.xlu1 %1927  ;;  %v1895_v37 = vpop.permute.xlu0 %1894 }
  0xfe   : > { %v2008_v14 = vsel %vm1338_vm3, %v1968_v25, %v1928_v54  ;;  %v1971_v28 = vsel %vm1289_vm1, %v5902_v16, %v1895_v37 }
  0xff   : > { %1277 = vrot.lane.b32.xlu1 %v5410_v42, %s4135_s8  ;;  %1242 = vrot.lane.b32.xlu0 %v5410_v42, %s4134_s7 }
 0x101   : > { %3921 = vmatmul.mubr.msk.bf16.gmra.mrb[8].mxu1 %vm2038_vm6, %v2004_v50  ;;  %v2676_v23 = vpop.permute.xlu1 %2675 }
 0x102   : > { %3924 = vmatprep.mubr.msk.bf16.mxu1 %vm2038_vm6, %v2006_v63  ;;  %v2744_v18 = vsel %vm1289_vm1, %v3636_v59, %v2676_v23  ;;  %v5911_v59 = vld [vmem:[#allocation17_spill] sm:$0xff] }
 0x103   : > { %2730 = vrot.lane.b32.xlu1 %v5417_v7, %s4135_s8  ;;  %2697 = vrot.lane.b32.xlu0 %v5417_v7, %s4134_s7 }
 0x104   : > { %v1897_v55 = vpop.permute.xlu0 %1896 }
 0x105   : > { %v1930_v29 = vpop.permute.xlu1 %1929  ;;  %v1974_v10 = vsel %vm1289_vm1, %v5904_v46, %v1897_v55 }
 0x106   : > { %v2010_v17 = vsel %vm1338_vm3, %v1971_v28, %v1930_v29 }
 0x107   : > { %2732 = vrot.lane.b32.xlu1 %v5285_v2, %s4135_s8  ;;  %1279 = vrot.lane.b32.xlu0 %v5257_v61, %s4135_s8 }
 0x108   : > { %v2678_v41 = vpop.permute.xlu0 %2677 }
 0x109   : > { %3925 = vmatmul.mubr.msk.bf16.gmra.mrb[12].mxu1 %vm2038_vm6, %v2008_v14  ;;  %v2711_v36 = vpop.permute.xlu1 %2710  ;;  %v2747_v9 = vsel %vm1289_vm1, %v5903_v19, %v2678_v41 }
 0x10a   : > { %3928 = vmatprep.mubr.msk.bf16.mxu1 %vm2038_vm6, %v2010_v17  ;;  %v2791_v6 = vsel %vm1338_vm3, %v2744_v18, %v2711_v36  ;;  %v5912_v17 = vld [vmem:[#allocation25_spill] sm:$0xff] }
 0x10b   : > { %2699 = vrot.lane.b32.xlu1 %v5285_v2, %s4134_s7  ;;  %1244 = vrot.lane.b32.xlu0 %v5257_v61, %s4134_s7 }
 0x10c   : > { %3984 = vmatprep.mubr.msk.bf16.mxu0 %vm2038_vm6, %v2791_v6 }
 0x10d   : > { %v2713_v49 = vpop.permute.xlu1 %2712 }
 0x10e   : > { %v2793_v12 = vsel %vm1338_vm3, %v2747_v9, %v2713_v49  ;;  %v5913_v9 = vld [vmem:[#allocation27_spill] sm:$0xff] }
 0x10f   : > { %1281 = vrot.lane.b32.xlu1 %v5268_v26, %s4135_s8  ;;  %1246 = vrot.lane.b32.xlu0 %v5268_v26, %s4134_s7 }
 0x110   : > { %3985 = vmatmul.mubr.msk.bf16.vlgmr.msra.gmra.mrb[0].mxu0 %vm2038_vm6, %v2793_v12 }
 0x111   : > { %v2680_v51 = vpop.permute.xlu1 %2679 }
 0x112   : > { %v2750_v11 = vsel %vm1289_vm1, %v5906_v5, %v2680_v51 }
 0x113   : > { %2734 = vrot.lane.b32.xlu1 %v5315_v60, %s4135_s8  ;;  %2701 = vrot.lane.b32.xlu0 %v5315_v60, %s4134_s7 }
 0x115   : > { %v1932_v47 = vpop.permute.xlu0 %1931 }
 0x116   : > { %v2012_v40 = vsel %vm1338_vm3, %v1974_v10, %v1932_v47  ;;  %v5914_v47 = vld [vmem:[#allocation28_spill] sm:$0xff] }
 0x117   : > { %2736 = vrot.lane.b32.xlu1 %v5332_v48, %s4135_s8  ;;  %1283 = vrot.lane.b32.xlu0 %v5303_v4, %s4135_s8 }
 0x118   : > { %3929 = vmatmul.mubr.msk.bf16.gmra.mrb[16].mxu1 %vm2038_vm6, %v2012_v40 }
 0x119   : > { %v1899_v33 = vpop.permute.xlu0 %1898 }
 0x11a   : > { %v1977_v44 = vsel %vm1289_vm1, %v5905_v13, %v1899_v33 }
 0x11b   : > { %2703 = vrot.lane.b32.xlu1 %v5332_v48, %s4134_s7  ;;  %1248 = vrot.lane.b32.xlu0 %v5303_v4, %s4134_s7 }
 0x11e   : > { %v1934_v3 = vpop.permute.xlu1 %1933  ;;  %v1901_v43 = vpop.permute.xlu0 %1900 }
 0x11f   : > { %1285 = vrot.lane.b32.xlu1 %v5323_v31, %s4135_s8  ;;  %1250 = vrot.lane.b32.xlu0 %v5323_v31, %s4134_s7  ;;  %v2014_v57 = vsel %vm1338_vm3, %v1977_v44, %v1934_v3  ;;  %v1980_v37 = vsel %vm1289_vm1, %v5908_v15, %v1901_v43  ;;  %v5915_v44 = vld [vmem:[#allocation32_spill] sm:$0xff]  ;;  %v5916_v43 = vld [vmem:[#allocation30_spill] sm:$0xff] }
 0x120   : > { %3932 = vmatprep.mubr.msk.bf16.mxu1 %vm2038_vm6, %v2014_v57 }
 0x122   : > { %v2715_v0 = vpop.permute.xlu1 %2714  ;;  %v2682_v54 = vpop.permute.xlu0 %2681 }
 0x123   : > { %2738 = vrot.lane.b32.xlu1 %v5377_v52, %s4135_s8  ;;  %2705 = vrot.lane.b32.xlu0 %v5377_v52, %s4134_s7  ;;  %v2795_v31 = vsel %vm1338_vm3, %v2750_v11, %v2715_v0  ;;  %v5907_v52 = vld [vmem:[#allocation16_spill] sm:$0xff] }
 0x124   : > { %3988 = vmatprep.mubr.msk.bf16.mxu0 %vm2038_vm6, %v2795_v31  ;;  %v2753_v63 = vsel %vm1289_vm1, %v5907_v52, %v2682_v54 }
 0x126   : > { %v2717_v27 = vpop.permute.xlu1 %2716 }
 0x127   : > { %2740 = vrot.lane.b32.xlu1 %v3653_v21, %s4135_s8  ;;  %1287 = vrot.lane.b32.xlu0 %v3560_v62, %s4135_s8  ;;  %v2797_v35 = vsel %vm1338_vm3, %v2753_v63, %v2717_v27  ;;  %v5917_v63 = vld [vmem:[#allocation9_spill] sm:$0xff]  ;;  %s5636_s8 = scalar_lea.vmem %s5791_s4, %s3709_s23 }
 0x128   : > { %3989 = vmatmul.mubr.msk.bf16.gmra.mrb[4].mxu0 %vm2038_vm6, %v2797_v35 }
 0x12a   : > { %v2684_v53 = vpop.permute.xlu1 %2683 }
 0x12b   : > { %v2756_v20 = vsel %vm1289_vm1, %v5910_v34, %v2684_v53 }
 0x12e   : > { %v1936_v50 = vpop.permute.xlu0 %1935 }
 0x12f   : > { %v2016_v45 = vsel %vm1338_vm3, %v1980_v37, %v1936_v50 }
 0x130   : > { %3933 = vmatmul.mubr.msk.bf16.gmra.mrb[20].mxu1 %vm2038_vm6, %v2016_v45 }
 0x132   : > { %v1903_v21 = vpop.permute.xlu0 %1902 }
 0x133   : > { %v1983_v24 = vsel %vm1289_vm1, %v5909_v32, %v1903_v21 }
 0x138   : > { %v1938_v62 = vpop.permute.xlu1 %1937  ;;  %v1905_v23 = vpop.permute.xlu0 %1904 }
 0x139   : > { %v2018_v56 = vsel %vm1338_vm3, %v1983_v24, %v1938_v62  ;;  %v1986_v18 = vsel %vm1289_vm1, %v5912_v17, %v1905_v23 }
 0x13a   : > { %3936 = vmatprep.mubr.msk.bf16.mxu1 %vm2038_vm6, %v2018_v56 }
 0x13c   : > { %v2719_v25 = vpop.permute.xlu1 %2718  ;;  %v2686_v14 = vpop.permute.xlu0 %2685 }
 0x13d   : > { %v2799_v55 = vsel %vm1338_vm3, %v2756_v20, %v2719_v25  ;;  %v2759_v16 = vsel %vm1289_vm1, %v5911_v59, %v2686_v14 }
 0x13e   : > { %3992 = vmatprep.mubr.msk.bf16.mxu0 %vm2038_vm6, %v2799_v55 }
 0x140   : > { %v2721_v28 = vpop.permute.xlu1 %2720 }
 0x141   : > { %v2801_v29 = vsel %vm1338_vm3, %v2759_v16, %v2721_v28 }
 0x142   : > { %3993 = vmatmul.mubr.msk.bf16.gmra.mrb[8].mxu0 %vm2038_vm6, %v2801_v29 }
 0x144   : > { %v2688_v41 = vpop.permute.xlu1 %2687 }
 0x145   : > { %v2762_v40 = vsel %vm1289_vm1, %v5914_v47, %v2688_v41 }
 0x147   : > { %v1940_v36 = vpop.permute.xlu0 %1939 }
 0x148   : > { %v2020_v6 = vsel %vm1338_vm3, %v1986_v18, %v1940_v36 }
 0x149   : > { %3937 = vmatmul.mubr.msk.bf16.gmra.mrb[24].mxu1 %vm2038_vm6, %v2020_v6 }
 0x14b   : > { %v1907_v19 = vpop.permute.xlu0 %1906 }
 0x14c   : > { %v1989_v49 = vsel %vm1289_vm1, %v5913_v9, %v1907_v19 }
 0x151   : > { %v1942_v12 = vpop.permute.xlu1 %1941  ;;  %v1909_v46 = vpop.permute.xlu0 %1908 }
 0x152   : > { %v2022_v10 = vsel %vm1338_vm3, %v1989_v49, %v1942_v12  ;;  %v1992_v3 = vsel %vm1289_vm1, %v5915_v44, %v1909_v46 }
 0x153   : > { %3940 = vmatprep.mubr.msk.bf16.mxu1 %vm2038_vm6, %v2022_v10 }
 0x155   : > { %v2723_v51 = vpop.permute.xlu1 %2722  ;;  %v2690_v33 = vpop.permute.xlu0 %2689 }
 0x156   : > { %v2803_v13 = vsel %vm1338_vm3, %v2762_v40, %v2723_v51  ;;  %v2765_v57 = vsel %vm1289_vm1, %v5916_v43, %v2690_v33 }
 0x157   : > { %3996 = vmatprep.mubr.msk.bf16.mxu0 %vm2038_vm6, %v2803_v13 }
 0x159   : > { %v2725_v5 = vpop.permute.xlu1 %2724  ;;  %v1944_v11 = vpop.permute.xlu0 %1943 }
 0x15a   : > { %v2805_v0 = vsel %vm1338_vm3, %v2765_v57, %v2725_v5  ;;  %v2024_v31 = vsel %vm1338_vm3, %v1992_v3, %v1944_v11 }
 0x15b   : > { %3941 = vmatmul.mubr.msk.bf16.gmra.mrb[28].mxu1 %vm2038_vm6, %v2024_v31  ;;  %3997 = vmatmul.mubr.msk.bf16.gmra.mrb[12].mxu0 %vm2038_vm6, %v2805_v0 }
 0x15d   : > { %v2692_v54 = vpop.permute.xlu1 %2691  ;;  %v1237_v52 = vpop.permute.xlu0 %1236 }
 0x15e   : > { %v1316_v27 = vsel %vm1289_vm1, %v5917_v63, %v1237_v52  ;;  %v2768_v50 = vsel %vm1289_vm1, %v5198_v39, %v2692_v54 }
 0x161   : > { %v1274_v35 = vpop.permute.xlu1 %1273  ;;  %v1239_v15 = vpop.permute.xlu0 %1238 }
 0x162   : > { %v1356_v37 = vsel %vm1338_vm3, %v1316_v27, %v1274_v35  ;;  %v1319_v32 = vsel %vm1289_vm1, %v4742_v8, %v1239_v15 }
 0x163   : > { %3964 = vmatprep.mubr.msk.bf16.mxu1 %vm2038_vm6, %v1356_v37 }
 0x165   : > { %v2727_v45 = vpop.permute.xlu1 %2726  ;;  %v2694_v53 = vpop.permute.xlu0 %2693 }
 0x166   : > { %v2807_v21 = vsel %vm1338_vm3, %v2768_v50, %v2727_v45  ;;  %v2771_v24 = vsel %vm1289_vm1, %v5232_v1, %v2694_v53 }
 0x167   : > { %4000 = vmatprep.mubr.msk.bf16.mxu0 %vm2038_vm6, %v2807_v21 }
 0x169   : > { %v2729_v62 = vpop.permute.xlu1 %2728  ;;  %v1276_v23 = vpop.permute.xlu0 %1275 }
 0x16a   : > { %v2809_v56 = vsel %vm1338_vm3, %v2771_v24, %v2729_v62  ;;  %v1358_v34 = vsel %vm1338_vm3, %v1319_v32, %v1276_v23 }
 0x16b   : > { %3965 = vmatmul.mubr.msk.bf16.vlgmr.msra.gmra.mrb[16].mxu1 %vm2038_vm6, %v1358_v34  ;;  %4001 = vmatmul.mubr.msk.bf16.gmra.mrb[16].mxu0 %vm2038_vm6, %v2809_v56 }
 0x16d   : > { %v2696_v39 = vpop.permute.xlu1 %2695  ;;  %v1241_v20 = vpop.permute.xlu0 %1240 }
 0x16e   : > { %v1322_v25 = vsel %vm1289_vm1, %v5235_v30, %v1241_v20  ;;  %v2774_v1 = vsel %vm1289_vm1, %v5252_v22, %v2696_v39 }
 0x171   : > { %v1278_v55 = vpop.permute.xlu1 %1277  ;;  %v1243_v8 = vpop.permute.xlu0 %1242 }
 0x172   : > { %v1360_v14 = vsel %vm1338_vm3, %v1322_v25, %v1278_v55  ;;  %v1325_v29 = vsel %vm1289_vm1, %v5344_v38, %v1243_v8 }
 0x173   : > { %3968 = vmatprep.mubr.msk.bf16.mxu1 %vm2038_vm6, %v1360_v14 }
 0x175   : > { %v2731_v59 = vpop.permute.xlu1 %2730  ;;  %v2698_v16 = vpop.permute.xlu0 %2697 }
 0x176   : > { %v2811_v28 = vsel %vm1338_vm3, %v2774_v1, %v2731_v59  ;;  %v2777_v30 = vsel %vm1289_vm1, %v5351_v58, %v2698_v16 }
 0x177   : > { %4004 = vmatprep.mubr.msk.bf16.mxu0 %vm2038_vm6, %v2811_v28 }
 0x179   : > { %v2733_v17 = vpop.permute.xlu1 %2732  ;;  %v1280_v18 = vpop.permute.xlu0 %1279 }
 0x17a   : > { %v2813_v36 = vsel %vm1338_vm3, %v2777_v30, %v2733_v17  ;;  %v1362_v6 = vsel %vm1338_vm3, %v1325_v29, %v1280_v18 }
 0x17b   : > { %3969 = vmatmul.mubr.msk.bf16.gmra.mrb[20].mxu1 %vm2038_vm6, %v1362_v6  ;;  %4005 = vmatmul.mubr.msk.bf16.gmra.mrb[20].mxu0 %vm2038_vm6, %v2813_v36 }
 0x17d   : > { %v2700_v22 = vpop.permute.xlu1 %2699  ;;  %v1245_v41 = vpop.permute.xlu0 %1244 }
 0x17e   : > { %v1328_v19 = vsel %vm1289_vm1, %v5410_v42, %v1245_v41  ;;  %v2780_v58 = vsel %vm1289_vm1, %v5417_v7, %v2700_v22 }
 0x181   : > { %v1282_v9 = vpop.permute.xlu1 %1281  ;;  %v1247_v38 = vpop.permute.xlu0 %1246 }
 0x182   : > { %v1364_v49 = vsel %vm1338_vm3, %v1328_v19, %v1282_v9  ;;  %v1331_v47 = vsel %vm1289_vm1, %v5257_v61, %v1247_v38 }
 0x183   : > { %3972 = vmatprep.mubr.msk.bf16.mxu1 %vm2038_vm6, %v1364_v49 }
 0x185   : > { %v2735_v12 = vpop.permute.xlu1 %2734  ;;  %v2702_v46 = vpop.permute.xlu0 %2701 }
 0x186   : > { %v2815_v10 = vsel %vm1338_vm3, %v2780_v58, %v2735_v12  ;;  %v2783_v42 = vsel %vm1289_vm1, %v5285_v2, %v2702_v46 }
 0x187   : > { %4008 = vmatprep.mubr.msk.bf16.mxu0 %vm2038_vm6, %v2815_v10 }
 0x189   : > { %v2737_v40 = vpop.permute.xlu1 %2736  ;;  %v1284_v51 = vpop.permute.xlu0 %1283 }
 0x18a   : > { %v2817_v33 = vsel %vm1338_vm3, %v2783_v42, %v2737_v40  ;;  %v1366_v13 = vsel %vm1338_vm3, %v1331_v47, %v1284_v51 }
 0x18b   : > { %3973 = vmatmul.mubr.msk.bf16.gmra.mrb[24].mxu1 %vm2038_vm6, %v1366_v13  ;;  %4009 = vmatmul.mubr.msk.bf16.gmra.mrb[24].mxu0 %vm2038_vm6, %v2817_v33 }
 0x18d   : > { %v2704_v7 = vpop.permute.xlu1 %2703  ;;  %v1249_v44 = vpop.permute.xlu0 %1248 }
 0x18e   : > { %v1334_v3 = vsel %vm1289_vm1, %v5268_v26, %v1249_v44  ;;  %v2786_v2 = vsel %vm1289_vm1, %v5315_v60, %v2704_v7 }
 0x191   : > { %v1286_v43 = vpop.permute.xlu1 %1285  ;;  %v1251_v61 = vpop.permute.xlu0 %1250 }
 0x192   : > { %v1368_v57 = vsel %vm1338_vm3, %v1334_v3, %v1286_v43  ;;  %v1337_v31 = vsel %vm1289_vm1, %v5303_v4, %v1251_v61 }
 0x193   : > { %3976 = vmatprep.mubr.msk.bf16.mxu1 %vm2038_vm6, %v1368_v57 }
 0x195   : > { %v2739_v5 = vpop.permute.xlu1 %2738  ;;  %v2706_v11 = vpop.permute.xlu0 %2705 }
 0x196   : > { %v2819_v0 = vsel %vm1338_vm3, %v2786_v2, %v2739_v5  ;;  %v2789_v26 = vsel %vm1289_vm1, %v5332_v48, %v2706_v11 }
 0x197   : > { %4012 = vmatprep.mubr.msk.bf16.mxu0 %vm2038_vm6, %v2819_v0 }
 0x199   : > { %v2741_v54 = vpop.permute.xlu1 %2740  ;;  %v1288_v52 = vpop.permute.xlu0 %1287 }
 0x19a   : > { %v2821_v63 = vsel %vm1338_vm3, %v2789_v26, %v2741_v54  ;;  %v1370_v27 = vsel %vm1338_vm3, %v1337_v31, %v1288_v52 }
 0x19b   : > { %3977 = vmatmul.mubr.msk.bf16.gmra.mrb[28].mxu1 %vm2038_vm6, %v1370_v27  ;;  %4013 = vmatmul.mubr.msk.bf16.gmra.mrb[28].mxu0 %vm2038_vm6, %v2821_v63 }
 0x1c4   : > { %v3914_v60 = vpop.f32.mrb[0].mxu1 }
 0x1c5   : > { %v2109_v35 = vpop.f32.mrb[1].mxu1 }
 0x1c6   : > { %v3915_v15 = vpop.f32.mrb[2].mxu1 }
 0x1c7   : > { %v2112_v37 = vpop.f32.mrb[3].mxu1 }
 0x1cc   : > { %v3918_v50 = vpop.f32.mrb[4].mxu1 }
 0x1cd   : > { %v2125_v4 = vpop.f32.mrb[5].mxu1 }
 0x1ce   : > { %v3919_v45 = vpop.f32.mrb[6].mxu1 }
 0x1cf   : > { %v2128_v53 = vpop.f32.mrb[7].mxu1 }
 0x1d4   : > { %v5615_v48 = vpop.f32.mrb[8].mxu1 }
 0x1d5   : > { %v5617_v21 = vpop.f32.mrb[9].mxu1 }
 0x1d6   : > { %v5619_v32 = vpop.f32.mrb[10].mxu1 }
 0x1d7   : > { %v5621_v24 = vpop.f32.mrb[11].mxu1 }
 0x1dc   : > { %v5623_v62 = vpop.f32.mrb[12].mxu1 }
 0x1dd   : > { %v5625_v23 = vpop.f32.mrb[13].mxu1 }
 0x1de   : > { %v5627_v56 = vpop.f32.mrb[14].mxu1 }
 0x1df   : > { %v5629_v34 = vpop.f32.mrb[15].mxu1 }
 0x1e3   : > { %v3986_v39 = vpop.f32.mrb[0].mxu0 }
 0x1e4   : > { %v4020_v20 = vadd.f32 %v3986_v39, %v3914_v60  ;;  %v2904_v25 = vpop.f32.mrb[1].mxu0 }
 0x1e5   : > { %v4021_v55 = vadd.f32 %v2904_v25, %v2109_v35  ;;  %v3987_v8 = vpop.f32.mrb[2].mxu0 }
 0x1e6   : > { %v3745_v14 = vpack.c.bf16 %v4020_v20, %v4020_v20  ;;  %v4022_v1 = vadd.f32 %v3987_v8, %v3915_v15  ;;  %v2907_v59 = vpop.f32.mrb[3].mxu0  ;;  %v3295_v30 = vmul.f32 %v4020_v20, %v4020_v20  ;;  %v3226_v19 = vsel %vm1289_vm1, %v4020_v20, 0.0 }
 0x1e7   : > { %v3743_v16 = vpack.c.bf16 %v4021_v55, %v4021_v55  ;;  %v3293_v28 = vmul.f32 %v4021_v55, %v4021_v55  ;;  %v4023_v29 = vadd.f32 %v2907_v59, %v2112_v37  ;;  %v3223_v18 = vsel %vm1289_vm1, %v4021_v55, 0.0 }
 0x1e8   : > { %3193 = vst.msk [vmem:[%s5636_s8 + $0x8] sm:$0xf] %vm270_vm5, %v3745_v14  ;;  %v3746_v17 = vpack.c.bf16 %v4022_v1, %v4022_v1  ;;  %v3296_v38 = vmul.f32 %v4022_v1, %v4022_v1  ;;  %v3328_v46 = vsel %vm1289_vm1, %v3295_v30, 0.0  ;;  %v3228_v10 = vsel %vm1289_vm1, %v4022_v1, 0.0 }
 0x1e9   : > { %3191 = vst.msk [vmem:[%s5636_s8] sm:$0xf] %vm270_vm5, %v3743_v16  ;;  %v3744_v36 = vpack.c.bf16 %v4023_v29, %v4023_v29  ;;  %v3224_v6 = vsel %vm1289_vm1, %v4023_v29, 0.0  ;;  %v3294_v22 = vmul.f32 %v4023_v29, %v4023_v29  ;;  %v3325_v9 = vsel %vm1289_vm1, %v3293_v28, 0.0 }
 0x1ea   : > { %3194 = vst.msk [vmem:[%s5636_s8 + $0xc] sm:$0xf] %vm270_vm5, %v3746_v17  ;;  %v3225_v41 = vadd.f32 %v3224_v6, %v3223_v18  ;;  %v3330_v40 = vsel %vm1289_vm1, %v3296_v38, 0.0 }
 0x1eb   : > { %3192 = vst.msk [vmem:[%s5636_s8 + $0x4] sm:$0xf] %vm270_vm5, %v3744_v36  ;;  %v3326_v49 = vsel %vm1289_vm1, %v3294_v22, 0.0 }
 0x1ec   : > { %v3227_v58 = vadd.f32 %v3226_v19, %v3225_v41  ;;  %v3327_v12 = vadd.f32 %v3326_v49, %v3325_v9 }
 0x1ee   : > { %v3329_v47 = vadd.f32 %v3328_v46, %v3327_v12  ;;  %v3229_v42 = vadd.f32 %v3228_v10, %v3227_v58 }
 0x1f0   : > { %v3331_v51 = vadd.f32 %v3330_v40, %v3329_v47 }
 0x1fb   : > { %v3990_v33 = vpop.f32.mrb[4].mxu0 }
 0x1fc   : > { %v4024_v13 = vadd.f32 %v3990_v33, %v3918_v50  ;;  %v2920_v7 = vpop.f32.mrb[5].mxu0 }
 0x1fd   : > { %v4025_v44 = vadd.f32 %v2920_v7, %v2125_v4  ;;  %v3991_v3 = vpop.f32.mrb[6].mxu0 }
 0x1fe   : > { %v3749_v43 = vpack.c.bf16 %v4024_v13, %v4024_v13  ;;  %v4026_v61 = vadd.f32 %v3991_v3, %v3919_v45  ;;  %v2923_v57 = vpop.f32.mrb[7].mxu0  ;;  %v3299_v27 = vmul.f32 %v4024_v13, %v4024_v13  ;;  %v3234_v37 = vsel %vm1289_vm1, %v4024_v13, 0.0 }
 0x1ff   : > { %v3747_v2 = vpack.c.bf16 %v4025_v44, %v4025_v44  ;;  %v3230_v5 = vsel %vm1289_vm1, %v4025_v44, 0.0  ;;  %v3297_v11 = vmul.f32 %v4025_v44, %v4025_v44  ;;  %v4027_v0 = vadd.f32 %v2923_v57, %v2128_v53 }
 0x200   : > { %3197 = vst.msk [vmem:[%s5636_s8 + $0x18] sm:$0xf] %vm270_vm5, %v3749_v43  ;;  %v3231_v31 = vadd.f32 %v3230_v5, %v3229_v42  ;;  %v3750_v26 = vpack.c.bf16 %v4026_v61, %v4026_v61  ;;  %v3300_v50 = vmul.f32 %v4026_v61, %v4026_v61  ;;  %v3236_v53 = vsel %vm1289_vm1, %v4026_v61, 0.0 }
 0x201   : > { %3195 = vst.msk [vmem:[%s5636_s8 + $0x10] sm:$0xf] %vm270_vm5, %v3747_v2  ;;  %v3332_v54 = vsel %vm1289_vm1, %v3297_v11, 0.0  ;;  %v3748_v52 = vpack.c.bf16 %v4027_v0, %v4027_v0  ;;  %v3232_v63 = vsel %vm1289_vm1, %v4027_v0, 0.0  ;;  %v3298_v15 = vmul.f32 %v4027_v0, %v4027_v0 }
 0x202   : > { %v3333_v60 = vadd.f32 %v3332_v54, %v3331_v51  ;;  %3198 = vst.msk [vmem:[%s5636_s8 + $0x1c] sm:$0xf] %vm270_vm5, %v3750_v26  ;;  %v3233_v35 = vadd.f32 %v3232_v63, %v3231_v31  ;;  %v3336_v20 = vsel %vm1289_vm1, %v3299_v27, 0.0  ;;  %v3338_v8 = vsel %vm1289_vm1, %v3300_v50, 0.0 }
 0x203   : > { %3196 = vst.msk [vmem:[%s5636_s8 + $0x14] sm:$0xf] %vm270_vm5, %v3748_v52  ;;  %v3334_v45 = vsel %vm1289_vm1, %v3298_v15, 0.0 }
 0x204   : > { %v3235_v4 = vadd.f32 %v3234_v37, %v3233_v35  ;;  %v3335_v39 = vadd.f32 %v3334_v45, %v3333_v60 }
 0x206   : > { %v3237_v25 = vadd.f32 %v3236_v53, %v3235_v4  ;;  %v3337_v55 = vadd.f32 %v3336_v20, %v3335_v39 }
 0x208   : > { %v3339_v14 = vadd.f32 %v3338_v8, %v3337_v55 }
 0x215   : > { %v3994_v1 = vpop.f32.mrb[8].mxu0 }
 0x216   : > { %v4028_v59 = vadd.f32 %v3994_v1, %v5615_v48  ;;  %v2936_v16 = vpop.f32.mrb[9].mxu0 }
 0x217   : > { %v4029_v28 = vadd.f32 %v2936_v16, %v5617_v21  ;;  %v3995_v29 = vpop.f32.mrb[10].mxu0 }
 0x218   : > { %v3753_v30 = vpack.c.bf16 %v4028_v59, %v4028_v59  ;;  %v4030_v17 = vadd.f32 %v3995_v29, %v5619_v32  ;;  %v2939_v18 = vpop.f32.mrb[11].mxu0  ;;  %v3303_v32 = vmul.f32 %v4028_v59, %v4028_v59  ;;  %v3242_v46 = vsel %vm1289_vm1, %v4028_v59, 0.0 }
 0x219   : > { %v3751_v36 = vpack.c.bf16 %v4029_v28, %v4029_v28  ;;  %v3238_v6 = vsel %vm1289_vm1, %v4029_v28, 0.0  ;;  %v3301_v22 = vmul.f32 %v4029_v28, %v4029_v28  ;;  %v4031_v41 = vadd.f32 %v2939_v18, %v5621_v24 }
 0x21a   : > { %3201 = vst.msk [vmem:[%s5636_s8 + $0x28] sm:$0xf] %vm270_vm5, %v3753_v30  ;;  %v3239_v19 = vadd.f32 %v3238_v6, %v3237_v25  ;;  %v3754_v48 = vpack.c.bf16 %v4030_v17, %v4030_v17  ;;  %v3304_v24 = vmul.f32 %v4030_v17, %v4030_v17  ;;  %v3244_v42 = vsel %vm1289_vm1, %v4030_v17, 0.0 }
 0x21b   : > { %3199 = vst.msk [vmem:[%s5636_s8 + $0x20] sm:$0xf] %vm270_vm5, %v3751_v36  ;;  %v3340_v21 = vsel %vm1289_vm1, %v3301_v22, 0.0  ;;  %v3752_v9 = vpack.c.bf16 %v4031_v41, %v4031_v41  ;;  %v3240_v38 = vsel %vm1289_vm1, %v4031_v41, 0.0  ;;  %v3302_v12 = vmul.f32 %v4031_v41, %v4031_v41 }
 0x21c   : > { %v3341_v49 = vadd.f32 %v3340_v21, %v3339_v14  ;;  %3202 = vst.msk [vmem:[%s5636_s8 + $0x2c] sm:$0xf] %vm270_vm5, %v3754_v48  ;;  %v3241_v58 = vadd.f32 %v3240_v38, %v3239_v19  ;;  %v3344_v51 = vsel %vm1289_vm1, %v3303_v32, 0.0  ;;  %v3346_v7 = vsel %vm1289_vm1, %v3304_v24, 0.0 }
 0x21d   : > { %3200 = vst.msk [vmem:[%s5636_s8 + $0x24] sm:$0xf] %vm270_vm5, %v3752_v9  ;;  %v3342_v47 = vsel %vm1289_vm1, %v3302_v12, 0.0 }
 0x21e   : > { %v3243_v10 = vadd.f32 %v3242_v46, %v3241_v58  ;;  %v3343_v40 = vadd.f32 %v3342_v47, %v3341_v49 }
 0x220   : > { %v3245_v33 = vadd.f32 %v3244_v42, %v3243_v10  ;;  %v3345_v13 = vadd.f32 %v3344_v51, %v3343_v40 }
 0x222   : > { %v3347_v44 = vadd.f32 %v3346_v7, %v3345_v13 }
 0x22e   : > { %v3998_v3 = vpop.f32.mrb[12].mxu0 }
 0x22f   : > { %v4032_v43 = vadd.f32 %v3998_v3, %v5623_v62  ;;  %v2952_v61 = vpop.f32.mrb[13].mxu0 }
 0x230   : > { %v4033_v57 = vadd.f32 %v2952_v61, %v5625_v23  ;;  %v3999_v2 = vpop.f32.mrb[14].mxu0 }
 0x231   : > { %v3757_v5 = vpack.c.bf16 %v4032_v43, %v4032_v43  ;;  %v4034_v11 = vadd.f32 %v3999_v2, %v5627_v56  ;;  %v2955_v0 = vpop.f32.mrb[15].mxu0  ;;  %v3307_v56 = vmul.f32 %v4032_v43, %v4032_v43  ;;  %v3250_v50 = vsel %vm1289_vm1, %v4032_v43, 0.0 }
 0x232   : > { %v3755_v31 = vpack.c.bf16 %v4033_v57, %v4033_v57  ;;  %v3246_v26 = vsel %vm1289_vm1, %v4033_v57, 0.0  ;;  %v3305_v54 = vmul.f32 %v4033_v57, %v4033_v57  ;;  %v4035_v52 = vadd.f32 %v2955_v0, %v5629_v34 }
 0x233   : > { %3205 = vst.msk [vmem:[%s5636_s8 + $0x38] sm:$0xf] %vm270_vm5, %v3757_v5  ;;  %v3247_v63 = vadd.f32 %v3246_v26, %v3245_v33  ;;  %v3758_v62 = vpack.c.bf16 %v4034_v11, %v4034_v11  ;;  %v3308_v34 = vmul.f32 %v4034_v11, %v4034_v11  ;;  %v3252_v53 = vsel %vm1289_vm1, %v4034_v11, 0.0 }
 0x234   : > { %3203 = vst.msk [vmem:[%s5636_s8 + $0x30] sm:$0xf] %vm270_vm5, %v3755_v31  ;;  %v3348_v23 = vsel %vm1289_vm1, %v3305_v54, 0.0  ;;  %v3756_v27 = vpack.c.bf16 %v4035_v52, %v4035_v52  ;;  %v3248_v60 = vsel %vm1289_vm1, %v4035_v52, 0.0  ;;  %v3306_v37 = vmul.f32 %v4035_v52, %v4035_v52 }
 0x235   : > { %v3349_v35 = vadd.f32 %v3348_v23, %v3347_v44  ;;  %3206 = vst.msk [vmem:[%s5636_s8 + $0x3c] sm:$0xf] %vm270_vm5, %v3758_v62  ;;  %v3249_v15 = vadd.f32 %v3248_v60, %v3247_v63  ;;  %v3352_v20 = vsel %vm1289_vm1, %v3307_v56, 0.0  ;;  %v3354_v8 = vsel %vm1289_vm1, %v3308_v34, 0.0 }
 0x236   : > { %3204 = vst.msk [vmem:[%s5636_s8 + $0x34] sm:$0xf] %vm270_vm5, %v3756_v27  ;;  %v3350_v45 = vsel %vm1289_vm1, %v3306_v37, 0.0 }
 0x237   : > { %v3251_v4 = vadd.f32 %v3250_v50, %v3249_v15  ;;  %v3351_v39 = vadd.f32 %v3350_v45, %v3349_v35 }
 0x239   : > { %v3253_v25 = vadd.f32 %v3252_v53, %v3251_v4  ;;  %v3353_v55 = vadd.f32 %v3352_v20, %v3351_v39 }
 0x23b   : > { %v3355_v14 = vadd.f32 %v3354_v8, %v3353_v55 }
 0x23e   : > { %v3966_v1 = vpop.f32.mrb[16].mxu1  ;;  %v4002_v59 = vpop.f32.mrb[16].mxu0 }
 0x23f   : > { %v4036_v16 = vadd.f32 %v4002_v59, %v3966_v1  ;;  %v2378_v28 = vpop.f32.mrb[17].mxu1  ;;  %v2968_v29 = vpop.f32.mrb[17].mxu0 }
 0x240   : > { %v4037_v30 = vadd.f32 %v2968_v29, %v2378_v28  ;;  %v3967_v17 = vpop.f32.mrb[18].mxu1  ;;  %v4003_v18 = vpop.f32.mrb[18].mxu0 }
 0x241   : > { %v3761_v36 = vpack.c.bf16 %v4036_v16, %v4036_v16  ;;  %v4038_v6 = vadd.f32 %v4003_v18, %v3967_v17  ;;  %v2381_v22 = vpop.f32.mrb[19].mxu1  ;;  %v2971_v41 = vpop.f32.mrb[19].mxu0  ;;  %v3311_v46 = vmul.f32 %v4036_v16, %v4036_v16  ;;  %v3258_v42 = vsel %vm1289_vm1, %v4036_v16, 0.0 }
 0x242   : > { %v3759_v19 = vpack.c.bf16 %v4037_v30, %v4037_v30  ;;  %v3254_v48 = vsel %vm1289_vm1, %v4037_v30, 0.0  ;;  %v3309_v21 = vmul.f32 %v4037_v30, %v4037_v30  ;;  %v4039_v9 = vadd.f32 %v2971_v41, %v2381_v22 }
 0x243   : > { %3209 = vst.msk [vmem:[%s5636_s8 + $0x48] sm:$0xf] %vm270_vm5, %v3761_v36  ;;  %v3255_v38 = vadd.f32 %v3254_v48, %v3253_v25  ;;  %v3762_v32 = vpack.c.bf16 %v4038_v6, %v4038_v6  ;;  %v3312_v40 = vmul.f32 %v4038_v6, %v4038_v6  ;;  %v3260_v13 = vsel %vm1289_vm1, %v4038_v6, 0.0 }
 0x244   : > { %3207 = vst.msk [vmem:[%s5636_s8 + $0x40] sm:$0xf] %vm270_vm5, %v3759_v19  ;;  %v3356_v49 = vsel %vm1289_vm1, %v3309_v21, 0.0  ;;  %v3760_v58 = vpack.c.bf16 %v4039_v9, %v4039_v9  ;;  %v3256_v12 = vsel %vm1289_vm1, %v4039_v9, 0.0  ;;  %v3310_v47 = vmul.f32 %v4039_v9, %v4039_v9 }
 0x245   : > { %v3357_v24 = vadd.f32 %v3356_v49, %v3355_v14  ;;  %3210 = vst.msk [vmem:[%s5636_s8 + $0x4c] sm:$0xf] %vm270_vm5, %v3762_v32  ;;  %v3257_v10 = vadd.f32 %v3256_v12, %v3255_v38  ;;  %v3360_v44 = vsel %vm1289_vm1, %v3311_v46, 0.0  ;;  %v3362_v61 = vsel %vm1289_vm1, %v3312_v40, 0.0 }
 0x246   : > { %3208 = vst.msk [vmem:[%s5636_s8 + $0x44] sm:$0xf] %vm270_vm5, %v3760_v58  ;;  %v3358_v33 = vsel %vm1289_vm1, %v3310_v47, 0.0 }
 0x247   : > { %v3259_v51 = vadd.f32 %v3258_v42, %v3257_v10  ;;  %v3359_v7 = vadd.f32 %v3358_v33, %v3357_v24 }
 0x249   : > { %v3261_v3 = vadd.f32 %v3260_v13, %v3259_v51  ;;  %v3361_v43 = vadd.f32 %v3360_v44, %v3359_v7 }
 0x24b   : > { %v3363_v57 = vadd.f32 %v3362_v61, %v3361_v43 }
 0x24e   : > { %v3970_v2 = vpop.f32.mrb[20].mxu1  ;;  %v4006_v5 = vpop.f32.mrb[20].mxu0 }
 0x24f   : > { %v4040_v11 = vadd.f32 %v4006_v5, %v3970_v2  ;;  %v2394_v0 = vpop.f32.mrb[21].mxu1  ;;  %v2984_v31 = vpop.f32.mrb[21].mxu0 }
 0x250   : > { %v4041_v26 = vadd.f32 %v2984_v31, %v2394_v0  ;;  %v3971_v54 = vpop.f32.mrb[22].mxu1  ;;  %v4007_v52 = vpop.f32.mrb[22].mxu0 }
 0x251   : > { %v3765_v63 = vpack.c.bf16 %v4040_v11, %v4040_v11  ;;  %v4042_v62 = vadd.f32 %v4007_v52, %v3971_v54  ;;  %v2397_v23 = vpop.f32.mrb[23].mxu1  ;;  %v2987_v27 = vpop.f32.mrb[23].mxu0  ;;  %v3315_v53 = vmul.f32 %v4040_v11, %v4040_v11  ;;  %v3266_v55 = vsel %vm1289_vm1, %v4040_v11, 0.0 }
 0x252   : > { %v3763_v60 = vpack.c.bf16 %v4041_v26, %v4041_v26  ;;  %v3262_v56 = vsel %vm1289_vm1, %v4041_v26, 0.0  ;;  %v3313_v35 = vmul.f32 %v4041_v26, %v4041_v26  ;;  %v4043_v15 = vadd.f32 %v2987_v27, %v2397_v23 }
 0x253   : > { %3213 = vst.msk [vmem:[%s5636_s8 + $0x58] sm:$0xf] %vm270_vm5, %v3765_v63  ;;  %v3263_v37 = vadd.f32 %v3262_v56, %v3261_v3  ;;  %v3766_v50 = vpack.c.bf16 %v4042_v62, %v4042_v62  ;;  %v3316_v8 = vmul.f32 %v4042_v62, %v4042_v62  ;;  %v3268_v59 = vsel %vm1289_vm1, %v4042_v62, 0.0 }
 0x254   : > { %3211 = vst.msk [vmem:[%s5636_s8 + $0x50] sm:$0xf] %vm270_vm5, %v3763_v60  ;;  %v3364_v34 = vsel %vm1289_vm1, %v3313_v35, 0.0  ;;  %v3764_v4 = vpack.c.bf16 %v4043_v15, %v4043_v15  ;;  %v3264_v45 = vsel %vm1289_vm1, %v4043_v15, 0.0  ;;  %v3314_v25 = vmul.f32 %v4043_v15, %v4043_v15 }
 0x255   : > { %v3365_v39 = vadd.f32 %v3364_v34, %v3363_v57  ;;  %3214 = vst.msk [vmem:[%s5636_s8 + $0x5c] sm:$0xf] %vm270_vm5, %v3766_v50  ;;  %v3265_v20 = vadd.f32 %v3264_v45, %v3263_v37  ;;  %v3368_v28 = vsel %vm1289_vm1, %v3315_v53, 0.0  ;;  %v3370_v17 = vsel %vm1289_vm1, %v3316_v8, 0.0 }
 0x256   : > { %3212 = vst.msk [vmem:[%s5636_s8 + $0x54] sm:$0xf] %vm270_vm5, %v3764_v4  ;;  %v3366_v1 = vsel %vm1289_vm1, %v3314_v25, 0.0 }
 0x257   : > { %v3267_v14 = vadd.f32 %v3266_v55, %v3265_v20  ;;  %v3367_v16 = vadd.f32 %v3366_v1, %v3365_v39 }
 0x259   : > { %v3269_v29 = vadd.f32 %v3268_v59, %v3267_v14  ;;  %v3369_v30 = vadd.f32 %v3368_v28, %v3367_v16 }
 0x25b   : > { %v3371_v18 = vadd.f32 %v3370_v17, %v3369_v30 }
 0x25e   : > { %v3974_v36 = vpop.f32.mrb[24].mxu1  ;;  %v4010_v6 = vpop.f32.mrb[24].mxu0 }
 0x25f   : > { %v4044_v22 = vadd.f32 %v4010_v6, %v3974_v36  ;;  %v2410_v41 = vpop.f32.mrb[25].mxu1  ;;  %v3000_v19 = vpop.f32.mrb[25].mxu0 }
 0x260   : > { %v4045_v48 = vadd.f32 %v3000_v19, %v2410_v41  ;;  %v3975_v21 = vpop.f32.mrb[26].mxu1  ;;  %v4011_v9 = vpop.f32.mrb[26].mxu0 }
 0x261   : > { %v3769_v38 = vpack.c.bf16 %v4044_v22, %v4044_v22  ;;  %v4046_v32 = vadd.f32 %v4011_v9, %v3975_v21  ;;  %v2413_v49 = vpop.f32.mrb[27].mxu1  ;;  %v3003_v58 = vpop.f32.mrb[27].mxu0  ;;  %v3319_v13 = vmul.f32 %v4044_v22, %v4044_v22  ;;  %v3274_v43 = vsel %vm1289_vm1, %v4044_v22, 0.0 }
 0x262   : > { %v3767_v12 = vpack.c.bf16 %v4045_v48, %v4045_v48  ;;  %v3270_v46 = vsel %vm1289_vm1, %v4045_v48, 0.0  ;;  %v3317_v24 = vmul.f32 %v4045_v48, %v4045_v48  ;;  %v4047_v10 = vadd.f32 %v3003_v58, %v2413_v49 }
 0x263   : > { %3217 = vst.msk [vmem:[%s5636_s8 + $0x68] sm:$0xf] %vm270_vm5, %v3769_v38  ;;  %v3271_v47 = vadd.f32 %v3270_v46, %v3269_v29  ;;  %v3770_v42 = vpack.c.bf16 %v4046_v32, %v4046_v32  ;;  %v3320_v61 = vmul.f32 %v4046_v32, %v4046_v32  ;;  %v3276_v5 = vsel %vm1289_vm1, %v4046_v32, 0.0 }
 0x264   : > { %3215 = vst.msk [vmem:[%s5636_s8 + $0x60] sm:$0xf] %vm270_vm5, %v3767_v12  ;;  %v3372_v40 = vsel %vm1289_vm1, %v3317_v24, 0.0  ;;  %v3768_v51 = vpack.c.bf16 %v4047_v10, %v4047_v10  ;;  %v3272_v33 = vsel %vm1289_vm1, %v4047_v10, 0.0  ;;  %v3318_v3 = vmul.f32 %v4047_v10, %v4047_v10 }
 0x265   : > { %v3373_v7 = vadd.f32 %v3372_v40, %v3371_v18  ;;  %3218 = vst.msk [vmem:[%s5636_s8 + $0x6c] sm:$0xf] %vm270_vm5, %v3770_v42  ;;  %v3273_v44 = vadd.f32 %v3272_v33, %v3271_v47  ;;  %v3376_v0 = vsel %vm1289_vm1, %v3319_v13, 0.0  ;;  %v3378_v54 = vsel %vm1289_vm1, %v3320_v61, 0.0 }
 0x266   : > { %3216 = vst.msk [vmem:[%s5636_s8 + $0x64] sm:$0xf] %vm270_vm5, %v3768_v51  ;;  %v3374_v2 = vsel %vm1289_vm1, %v3318_v3, 0.0 }
 0x267   : > { %v3275_v57 = vadd.f32 %v3274_v43, %v3273_v44  ;;  %v3375_v11 = vadd.f32 %v3374_v2, %v3373_v7 }
 0x269   : > { %v3277_v31 = vadd.f32 %v3276_v5, %v3275_v57  ;;  %v3377_v26 = vadd.f32 %v3376_v0, %v3375_v11 }
 0x26b   : > { %v3379_v52 = vadd.f32 %v3378_v54, %v3377_v26 }
 0x26e   : > { %v3978_v63 = vpop.f32.mrb[28].mxu1  ;;  %v4014_v62 = vpop.f32.mrb[28].mxu0 }
 0x26f   : > { %v4048_v23 = vadd.f32 %v4014_v62, %v3978_v63  ;;  %v2426_v27 = vpop.f32.mrb[29].mxu1  ;;  %v3016_v60 = vpop.f32.mrb[29].mxu0 }
 0x270   : > { %v4049_v56 = vadd.f32 %v3016_v60, %v2426_v27  ;;  %v3979_v35 = vpop.f32.mrb[30].mxu1  ;;  %v4015_v15 = vpop.f32.mrb[30].mxu0 }
 0x271   : > { %v3773_v37 = vpack.c.bf16 %v4048_v23, %v4048_v23  ;;  %v4050_v50 = vadd.f32 %v4015_v15, %v3979_v35  ;;  %v2429_v34 = vpop.f32.mrb[31].mxu1  ;;  %v3019_v4 = vpop.f32.mrb[31].mxu0  ;;  %v3323_v59 = vmul.f32 %v4048_v23, %v4048_v23  ;;  %v3282_v30 = vsel %vm1289_vm1, %v4048_v23, 0.0 }
 0x272   : > { %v3771_v45 = vpack.c.bf16 %v4049_v56, %v4049_v56  ;;  %v3278_v53 = vsel %vm1289_vm1, %v4049_v56, 0.0  ;;  %v3321_v39 = vmul.f32 %v4049_v56, %v4049_v56  ;;  %v4051_v20 = vadd.f32 %v3019_v4, %v2429_v34 }
 0x273   : > { %3221 = vst.msk [vmem:[%s5636_s8 + $0x78] sm:$0xf] %vm270_vm5, %v3773_v37  ;;  %v3279_v25 = vadd.f32 %v3278_v53, %v3277_v31  ;;  %v3774_v55 = vpack.c.bf16 %v4050_v50, %v4050_v50  ;;  %v3324_v17 = vmul.f32 %v4050_v50, %v4050_v50  ;;  %v3284_v6 = vsel %vm1289_vm1, %v4050_v50, 0.0 }
 0x274   : > { %3219 = vst.msk [vmem:[%s5636_s8 + $0x70] sm:$0xf] %vm270_vm5, %v3771_v45  ;;  %v3380_v8 = vsel %vm1289_vm1, %v3321_v39, 0.0  ;;  %v3772_v14 = vpack.c.bf16 %v4051_v20, %v4051_v20  ;;  %v3280_v1 = vsel %vm1289_vm1, %v4051_v20, 0.0  ;;  %v3322_v29 = vmul.f32 %v4051_v20, %v4051_v20 }
 0x275   : > { %v3381_v16 = vadd.f32 %v3380_v8, %v3379_v52  ;;  %3222 = vst.msk [vmem:[%s5636_s8 + $0x7c] sm:$0xf] %vm270_vm5, %v3774_v55  ;;  %v3281_v28 = vadd.f32 %v3280_v1, %v3279_v25  ;;  %v3384_v41 = vsel %vm1289_vm1, %v3323_v59, 0.0  ;;  %v3386_v21 = vsel %vm1289_vm1, %v3324_v17, 0.0 }
 0x276   : > { %3220 = vst.msk [vmem:[%s5636_s8 + $0x74] sm:$0xf] %vm270_vm5, %v3772_v14  ;;  %v3382_v36 = vsel %vm1289_vm1, %v3322_v29, 0.0 }
 0x277   : > { %v3283_v18 = vadd.f32 %v3282_v30, %v3281_v28  ;;  %v3383_v22 = vadd.f32 %v3382_v36, %v3381_v16 }
 0x279   : > { %v3285_v19 = vadd.f32 %v3284_v6, %v3283_v18  ;;  %v3385_v48 = vadd.f32 %v3384_v41, %v3383_v22 }
 0x27b   : > { %v3286_v9 = vrot.slane %v3285_v19, 4  ;;  %v3387_v38 = vadd.f32 %v3386_v21, %v3385_v48 }
 0x27d   : > { %v3287_v32 = vadd.f32 %v3286_v9, %v3285_v19  ;;  %v3388_v49 = vrot.slane %v3387_v38, 4 }
 0x27f   : > { %v3288_v58 = vrot.slane %v3287_v32, 2  ;;  %v3389_v12 = vadd.f32 %v3388_v49, %v3387_v38 }
 0x281   : > { %v3289_v46 = vadd.f32 %v3288_v58, %v3287_v32  ;;  %v3390_v24 = vrot.slane %v3389_v12, 2 }
 0x283   : > { %v3290_v10 = vrot.slane %v3289_v46, 1  ;;  %v3391_v47 = vadd.f32 %v3390_v24, %v3389_v12 }
 0x285   : > { %v3291_v42 = vadd.f32 %v3290_v10, %v3289_v46  ;;  %v3392_v40 = vrot.slane %v3391_v47, 1 }
 0x287   : > { %3292 = vst.msk [vmem:[%s265_s10] sm:$0x1] %vm273_vm0, %v3291_v42  ;;  %v3393_v51 = vadd.f32 %v3392_v40, %v3391_v47 }
 0x289   : > { %3394 = vst.msk [vmem:[%s268_s13] sm:$0x1] %vm273_vm0, %v3393_v51 }
 0x28a PF: > { %s17_s21 = sadd.s32 1, %s4132_s21  }
 0x28b   : > { %p14_p4 = scmp.ge.s32.totalorder %s17_s21, 4  }
 0x28d   :  { %16 = sbr.rel (!%p14_p4) target bundleno = 1 (0x1), region = 94 }

</bundles_post_ra>
